<compile_context>
chip_gen: v5e
topology: v5e:2x2
jax: 0.10.0
libtpu: 0.0.40
codegen_flags: <defaults>
</compile_context>

<pallas_src>
import math
from functools import partial

import jax
import jax.numpy as jnp
from jax.experimental import pallas as pl
from jax.experimental.pallas import tpu as pltpu


MAX_TM = 1024  # largest batch tile; tunable.


def _round_up(x, m):
    return ((x + m - 1) // m) * m


def _pad_to(a, shape):
    pads = [(0, s - d) for d, s in zip(a.shape, shape)]
    return jnp.pad(a, pads)


def _choose_tiling(B):
    """Pick (tm, n_tiles, b_pad): even #tiles (v7x megacore), big tiles."""
    n_tiles = max(2, pl.cdiv(B, MAX_TM))
    if n_tiles % 2:
        n_tiles += 1
    tm = _round_up(pl.cdiv(B, n_tiles), 8)
    return tm, n_tiles, tm * n_tiles


# --------------------------------------------------------------------------
# Pallas kernel: full MLP forward for one batch tile; all weights in VMEM.
# --------------------------------------------------------------------------
def _denoiser_kernel(t_ref, q_ref, pose_ref, ftab_ref,
                     wt1_ref, bt1_ref, wt2_ref, bt2_ref,
                     wp1_ref, bp1_ref, wp2_ref, bp2_ref,
                     wiq_ref, wip_ref, wit_ref, bi_ref,
                     wr1_ref, br1_ref, wr2_ref, br2_ref,
                     wo_ref, bo_ref,
                     out_ref):
    f32 = jnp.float32
    bf16 = jnp.bfloat16

    def mm(x, w):
        # bf16 x bf16 -> f32 accumulation on the MXU.
        return jnp.dot(x.astype(bf16), w, preferred_element_type=f32)

    def silu(z):
        return z * jax.nn.sigmoid(z)

    # --- fused sinusoidal time embedding -------------------------------------
    # ftab row 0 = freqs duplicated over the sin|cos halves, row 1 = phase
    # (0 for the sin half, pi/2 for the cos half): cos(x) == sin(x + pi/2),
    # so one transcendental array covers the whole embedding.
    ftab = ftab_ref[...]                                           # [2, te_dim]
    te_raw = jnp.sin(t_ref[...] * ftab[0:1, :] + ftab[1:2, :])     # [tm, te_dim]

    # --- time_mlp: Linear -> SiLU -> Linear ----------------------------------
    h = mm(te_raw, wt1_ref[...]) + bt1_ref[...]
    te = mm(silu(h), wt2_ref[...]) + bt2_ref[...]

    # --- pose_embed: Linear -> SiLU -> Linear --------------------------------
    h = mm(pose_ref[...], wp1_ref[...]) + bp1_ref[...]
    pe = mm(silu(h), wp2_ref[...]) + bp2_ref[...]

    # --- input_proj on the (implicit) concat [q_t, pe, te] -------------------
    x = (mm(q_ref[...], wiq_ref[...]) + mm(pe, wip_ref[...])
         + mm(te, wit_ref[...]) + bi_ref[...])

    # --- residual blocks: x = x + fc2(silu(fc1(x)))  (dropout = identity) ----
    num_blocks = wr1_ref.shape[0]
    for i in range(num_blocks):            # static unroll, num_blocks is small
        h = mm(x, wr1_ref[i]) + br1_ref[i]
        x = x + (mm(silu(h), wr2_ref[i]) + br2_ref[i])

    # --- output_proj: lane-dense (padded to 128) bf16 store ------------------
    out_ref[...] = (mm(x, wo_ref[...]) + bo_ref[...]).astype(out_ref.dtype)


# --------------------------------------------------------------------------
# Parameter construction
# --------------------------------------------------------------------------
def init_params(key, dof, pose_dim, hidden_dim, time_embed_dim, pose_embed_dim,
                num_blocks):
    """f32 parameters (torch-Linear-like scale), weights stored as [in, out]."""
    def linear(key, fan_in, fan_out):
        k_w, k_b = jax.random.split(key)
        bound = 1.0 / math.sqrt(fan_in)
        w = jax.random.uniform(k_w, (fan_in, fan_out), jnp.float32, -bound, bound)
        b = jax.random.uniform(k_b, (1, fan_out), jnp.float32, -bound, bound)
        return w, b

    keys = jax.random.split(key, 6 + 2 * num_blocks)
    ki = iter(keys)
    p = {}
    p["wt1"], p["bt1"] = linear(next(ki), time_embed_dim, time_embed_dim)
    p["wt2"], p["bt2"] = linear(next(ki), time_embed_dim, time_embed_dim)
    p["wp1"], p["bp1"] = linear(next(ki), pose_dim, pose_embed_dim)
    p["wp2"], p["bp2"] = linear(next(ki), pose_embed_dim, pose_embed_dim)

    in_dim = dof + pose_embed_dim + time_embed_dim
    p["wi"], p["bi"] = linear(next(ki), in_dim, hidden_dim)

    wr1, br1, wr2, br2 = [], [], [], []
    for _ in range(num_blocks):
        w1, b1 = linear(next(ki), hidden_dim, hidden_dim)
        w2, b2 = linear(next(ki), hidden_dim, hidden_dim)
        wr1.append(w1); br1.append(b1); wr2.append(w2); br2.append(b2)
    p["wr1"] = jnp.stack(wr1)               # [nb, H, H]
    p["br1"] = jnp.stack(br1)               # [nb, 1, H]
    p["wr2"] = jnp.stack(wr2)
    p["br2"] = jnp.stack(br2)

    p["wo"], p["bo"] = linear(next(ki), hidden_dim, dof)
    return p


def _freq_phase_table(time_embed_dim):
    """[2, te_dim] f32: row0 = freqs (duplicated), row1 = phase (0 | pi/2)."""
    assert time_embed_dim % 2 == 0 and time_embed_dim >= 4, \
        "time_embed_dim must be even and >= 4"
    half = time_embed_dim // 2
    k = jnp.arange(half, dtype=jnp.float32)
    freqs = jnp.exp(-math.log(10000.0) * k / (half - 1))
    freqs_full = jnp.concatenate([freqs, freqs])[None, :]
    phase = jnp.concatenate(
        [jnp.zeros((half,), jnp.float32),
         jnp.full((half,), math.pi / 2.0, jnp.float32)])[None, :]
    return jnp.concatenate([freqs_full, phase], axis=0)            # [2, te_dim]


def prepare_kernel_params(p, dof, pose_dim, pose_embed_dim, time_embed_dim):
    """Cast weights to bf16 and pad to MXU/lane-friendly shapes (done once)."""
    bf16 = jnp.bfloat16
    dq = _round_up(dof, 8)
    dp = _round_up(pose_dim, 8)
    dout = _round_up(dof, 128)
    hidden = p["wi"].shape[1]

    kp = {}
    kp["ftab"] = _freq_phase_table(time_embed_dim)                 # f32 [2,te]

    kp["wt1"] = p["wt1"].astype(bf16); kp["bt1"] = p["bt1"]
    kp["wt2"] = p["wt2"].astype(bf16); kp["bt2"] = p["bt2"]
    kp["wp1"] = _pad_to(p["wp1"], (dp, pose_embed_dim)).astype(bf16)
    kp["bp1"] = p["bp1"]
    kp["wp2"] = p["wp2"].astype(bf16); kp["bp2"] = p["bp2"]

    wi = p["wi"]  # rows ordered as concat([q_t, pe, te])
    kp["wiq"] = _pad_to(wi[:dof], (dq, hidden)).astype(bf16)
    kp["wip"] = wi[dof:dof + pose_embed_dim].astype(bf16)
    kp["wit"] = wi[dof + pose_embed_dim:].astype(bf16)
    kp["bi"] = p["bi"]

    kp["wr1"] = p["wr1"].astype(bf16); kp["br1"] = p["br1"]
    kp["wr2"] = p["wr2"].astype(bf16); kp["br2"] = p["br2"]

    kp["wo"] = _pad_to(p["wo"], (hidden, dout)).astype(bf16)
    kp["bo"] = _pad_to(p["bo"], (1, dout))
    return kp


_KPARAM_ORDER = ("wt1", "bt1", "wt2", "bt2",
                 "wp1", "bp1", "wp2", "bp2",
                 "wiq", "wip", "wit", "bi",
                 "wr1", "br1", "wr2", "br2",
                 "wo", "bo")


# --------------------------------------------------------------------------
# Python wrapper
# --------------------------------------------------------------------------
@partial(jax.jit, static_argnames=("single_buffer_weights",))
def res_mlp_denoiser(kparams, q_t, pose, t, single_buffer_weights=True):
    B, dof = q_t.shape
    dq = kparams["wiq"].shape[0]
    dp = kparams["wp1"].shape[0]
    dout = kparams["wo"].shape[1]

    # Batch tiling: >=2 (even) grid steps so both v7x TensorCores get work;
    # tm grows with B (up to MAX_TM) so per-step MXU work dwarfs the ~0.35us
    # per-grid-step overhead and fills the 256-wide MXU on v6e/v7x.
    tm, n_tiles, b_pad = _choose_tiling(B)

    q_p = _pad_to(q_t.astype(jnp.float32), (b_pad, dq))
    pose_p = _pad_to(pose.astype(jnp.float32), (b_pad, dp))
    t_p = _pad_to(t.astype(jnp.float32)[:, None], (b_pad, 1))

    def act_spec(width):
        return pl.BlockSpec((tm, width), lambda i: (i, 0))

    res_kwargs = {}
    if single_buffer_weights and hasattr(pl, "Buffered"):
        # Weights never change across the grid -> single buffer saves VMEM.
        res_kwargs["pipeline_mode"] = pl.Buffered(1)

    def resident_spec(a):
        # Full array, constant block index -> fetched once, VMEM-resident.
        return pl.BlockSpec(a.shape, lambda i, _n=a.ndim: (0,) * _n,
                            **res_kwargs)

    weights = [kparams[name] for name in _KPARAM_ORDER]
    ftab = kparams["ftab"]

    out = pl.pallas_call(
        _denoiser_kernel,
        out_shape=jax.ShapeDtypeStruct((b_pad, dout), jnp.bfloat16),
        grid=(n_tiles,),
        in_specs=[act_spec(1), act_spec(dq), act_spec(dp), resident_spec(ftab)]
                 + [resident_spec(w) for w in weights],
        out_specs=pl.BlockSpec((tm, dout), lambda i: (i, 0)),
        compiler_params=pltpu.CompilerParams(
            dimension_semantics=("parallel",),
            vmem_limit_bytes=48 * 1024 * 1024),
    )(t_p, q_p, pose_p, ftab, *weights)

    return out[:B, :dof].astype(jnp.float32)


# --------------------------------------------------------------------------
# Pure-JAX f32 reference (mirrors the PyTorch forward) for correctness check.
# --------------------------------------------------------------------------
def sinusoidal_time_embedding(t, dim):
    half = dim // 2
    freqs = jnp.exp(-math.log(10000.0) * jnp.arange(half, dtype=jnp.float32)
                    / (half - 1))[None, :]
    args = t.astype(jnp.float32)[:, None] * freqs
    return jnp.concatenate([jnp.sin(args), jnp.cos(args)], axis=-1)


def reference_forward(params, q_t, pose, t, time_embed_dim):
    silu = jax.nn.silu
    te = sinusoidal_time_embedding(t, time_embed_dim)
    te = silu(te @ params["wt1"] + params["bt1"]) @ params["wt2"] + params["bt2"]
    pe = silu(pose @ params["wp1"] + params["bp1"]) @ params["wp2"] + params["bp2"]
    x = jnp.concatenate([q_t, pe, te], axis=-1) @ params["wi"] + params["bi"]
    for i in range(params["wr1"].shape[0]):
        h = silu(x @ params["wr1"][i] + params["br1"][i])
        x = x + (h @ params["wr2"][i] + params["br2"][i])
    return x @ params["wo"] + params["bo"]


# --------------------------------------------------------------------------
if __name__ == "__main__":
    # Small shapes consistent with the module's forward.
    B = 8
    dof = 7
    pose_dim = 6
    hidden_dim = 256
    time_embed_dim = 32
    pose_embed_dim = 32
    num_blocks = 3
    T = 1000

    key = jax.random.PRNGKey(0)
    k_params, k_q, k_p, k_t = jax.random.split(key, 4)

    params = init_params(k_params, dof, pose_dim, hidden_dim, time_embed_dim,
                         pose_embed_dim, num_blocks)
    kparams = prepare_kernel_params(params, dof, pose_dim, pose_embed_dim,
                                    time_embed_dim)

    q_t = jax.random.normal(k_q, (B, dof), jnp.float32)
    pose = jax.random.normal(k_p, (B, pose_dim), jnp.float32)
    t = jax.random.randint(k_t, (B,), 0, T, jnp.int32)

    try:
        out = jax.block_until_ready(
            res_mlp_denoiser(kparams, q_t, pose, t, single_buffer_weights=True))
    except Exception:
        # Fallback for jax versions that reject single-buffered BlockSpecs.
        out = jax.block_until_ready(
            res_mlp_denoiser(kparams, q_t, pose, t, single_buffer_weights=False))

    ref = reference_forward(params, q_t, pose, t, time_embed_dim)
    assert out.shape == (B, dof)
    # Weights/activations go through bf16 (f32 accumulation), so tolerance is
    # loosened relative to the pure-f32 reference.
    assert jnp.allclose(out, ref, atol=5e-2, rtol=5e-2), "mismatch vs reference"

    print("KERNEL_OK")
</pallas_src>

<mosaic_0001>
module attributes {stable_mosaic.version = 11 : i64} {
  func.func @_denoiser_kernel(%arg0: i32, %arg1: memref<8x1xf32, #tpu.memory_space<vmem>>, %arg2: memref<8x8xf32, #tpu.memory_space<vmem>>, %arg3: memref<8x8xf32, #tpu.memory_space<vmem>>, %arg4: memref<2x32xf32, #tpu.memory_space<vmem>>, %arg5: memref<32x32xbf16, #tpu.memory_space<vmem>>, %arg6: memref<1x32xf32, #tpu.memory_space<vmem>>, %arg7: memref<32x32xbf16, #tpu.memory_space<vmem>>, %arg8: memref<1x32xf32, #tpu.memory_space<vmem>>, %arg9: memref<8x32xbf16, #tpu.memory_space<vmem>>, %arg10: memref<1x32xf32, #tpu.memory_space<vmem>>, %arg11: memref<32x32xbf16, #tpu.memory_space<vmem>>, %arg12: memref<1x32xf32, #tpu.memory_space<vmem>>, %arg13: memref<8x256xbf16, #tpu.memory_space<vmem>>, %arg14: memref<32x256xbf16, #tpu.memory_space<vmem>>, %arg15: memref<32x256xbf16, #tpu.memory_space<vmem>>, %arg16: memref<1x256xf32, #tpu.memory_space<vmem>>, %arg17: memref<3x256x256xbf16, #tpu.memory_space<vmem>>, %arg18: memref<3x1x256xf32, #tpu.memory_space<vmem>>, %arg19: memref<3x256x256xbf16, #tpu.memory_space<vmem>>, %arg20: memref<3x1x256xf32, #tpu.memory_space<vmem>>, %arg21: memref<256x128xbf16, #tpu.memory_space<vmem>>, %arg22: memref<1x128xf32, #tpu.memory_space<vmem>>, %arg23: memref<8x128xbf16, #tpu.memory_space<vmem>>) attributes {dimension_semantics = [#tpu.dimension_semantics<parallel>], iteration_bounds = array<i64: 2>, scalar_prefetch = 0 : i64, scratch_operands = 0 : i64, tpu.core_type = #tpu.core_type<tc>, window_params = [{transform_indices = @transform_0, window_bounds = array<i64: 8, 1>}, {transform_indices = @transform_1, window_bounds = array<i64: 8, 8>}, {transform_indices = @transform_2, window_bounds = array<i64: 8, 8>}, {pipeline_mode = #tpu.pipeline_mode<synchronous>, transform_indices = @transform_3, window_bounds = array<i64: 2, 32>}, {pipeline_mode = #tpu.pipeline_mode<synchronous>, transform_indices = @transform_4, window_bounds = array<i64: 32, 32>}, {pipeline_mode = #tpu.pipeline_mode<synchronous>, transform_indices = @transform_5, window_bounds = array<i64: 1, 32>}, {pipeline_mode = #tpu.pipeline_mode<synchronous>, transform_indices = @transform_6, window_bounds = array<i64: 32, 32>}, {pipeline_mode = #tpu.pipeline_mode<synchronous>, transform_indices = @transform_7, window_bounds = array<i64: 1, 32>}, {pipeline_mode = #tpu.pipeline_mode<synchronous>, transform_indices = @transform_8, window_bounds = array<i64: 8, 32>}, {pipeline_mode = #tpu.pipeline_mode<synchronous>, transform_indices = @transform_9, window_bounds = array<i64: 1, 32>}, {pipeline_mode = #tpu.pipeline_mode<synchronous>, transform_indices = @transform_10, window_bounds = array<i64: 32, 32>}, {pipeline_mode = #tpu.pipeline_mode<synchronous>, transform_indices = @transform_11, window_bounds = array<i64: 1, 32>}, {pipeline_mode = #tpu.pipeline_mode<synchronous>, transform_indices = @transform_12, window_bounds = array<i64: 8, 256>}, {pipeline_mode = #tpu.pipeline_mode<synchronous>, transform_indices = @transform_13, window_bounds = array<i64: 32, 256>}, {pipeline_mode = #tpu.pipeline_mode<synchronous>, transform_indices = @transform_14, window_bounds = array<i64: 32, 256>}, {pipeline_mode = #tpu.pipeline_mode<synchronous>, transform_indices = @transform_15, window_bounds = array<i64: 1, 256>}, {pipeline_mode = #tpu.pipeline_mode<synchronous>, transform_indices = @transform_16, window_bounds = array<i64: 3, 256, 256>}, {pipeline_mode = #tpu.pipeline_mode<synchronous>, transform_indices = @transform_17, window_bounds = array<i64: 3, 1, 256>}, {pipeline_mode = #tpu.pipeline_mode<synchronous>, transform_indices = @transform_18, window_bounds = array<i64: 3, 256, 256>}, {pipeline_mode = #tpu.pipeline_mode<synchronous>, transform_indices = @transform_19, window_bounds = array<i64: 3, 1, 256>}, {pipeline_mode = #tpu.pipeline_mode<synchronous>, transform_indices = @transform_20, window_bounds = array<i64: 256, 128>}, {pipeline_mode = #tpu.pipeline_mode<synchronous>, transform_indices = @transform_21, window_bounds = array<i64: 1, 128>}, {transform_indices = @transform_22, window_bounds = array<i64: 8, 128>}]} {
    %c0 = arith.constant 0 : index
    %c0_0 = arith.constant 0 : index
    %0 = vector.load %arg4[%c0, %c0_0] : memref<2x32xf32, #tpu.memory_space<vmem>>, vector<2x32xf32>
    %c0_1 = arith.constant 0 : index
    %c0_2 = arith.constant 0 : index
    %1 = vector.load %arg1[%c0_1, %c0_2] : memref<8x1xf32, #tpu.memory_space<vmem>>, vector<8x1xf32>
    %2 = vector.extract_strided_slice %0 {offsets = [0, 0], sizes = [1, 32], strides = [1, 1]} : vector<2x32xf32> to vector<1x32xf32>
    %3 = vector.broadcast %1 : vector<8x1xf32> to vector<8x32xf32>
    %4 = vector.broadcast %2 : vector<1x32xf32> to vector<8x32xf32>
    %5 = arith.mulf %3, %4 : vector<8x32xf32>
    %6 = vector.extract_strided_slice %0 {offsets = [1, 0], sizes = [1, 32], strides = [1, 1]} : vector<2x32xf32> to vector<1x32xf32>
    %7 = vector.broadcast %6 : vector<1x32xf32> to vector<8x32xf32>
    %8 = arith.addf %5, %7 : vector<8x32xf32>
    %9 = math.sin %8 : vector<8x32xf32>
    %c0_3 = arith.constant 0 : index
    %c0_4 = arith.constant 0 : index
    %10 = vector.load %arg5[%c0_3, %c0_4] : memref<32x32xbf16, #tpu.memory_space<vmem>>, vector<32x32xbf16>
    %11 = arith.truncf %9 : vector<8x32xf32> to vector<8x32xbf16>
    %cst = arith.constant dense<0.000000e+00> : vector<8x32xf32>
    %12 = tpu.matmul %11, %10, %cst {dimension_numbers = #tpu.dot_dimension_numbers<[1], [0], [0], [1], [0, 0, 1, 1], [], []>} : vector<8x32xbf16>, vector<32x32xbf16>, vector<8x32xf32> -> vector<8x32xf32>
    %c0_5 = arith.constant 0 : index
    %c0_6 = arith.constant 0 : index
    %13 = vector.load %arg6[%c0_5, %c0_6] : memref<1x32xf32, #tpu.memory_space<vmem>>, vector<1x32xf32>
    %14 = vector.broadcast %13 : vector<1x32xf32> to vector<8x32xf32>
    %15 = arith.addf %12, %14 : vector<8x32xf32>
    %16 = arith.negf %15 : vector<8x32xf32>
    %17 = math.exp %16 : vector<8x32xf32>
    %cst_7 = arith.constant 1.000000e+00 : f32
    %18 = vector.broadcast %cst_7 : f32 to vector<8x32xf32>
    %19 = arith.addf %18, %17 : vector<8x32xf32>
    %20 = arith.divf %18, %19 : vector<8x32xf32>
    %21 = arith.mulf %15, %20 : vector<8x32xf32>
    %c0_8 = arith.constant 0 : index
    %c0_9 = arith.constant 0 : index
    %22 = vector.load %arg7[%c0_8, %c0_9] : memref<32x32xbf16, #tpu.memory_space<vmem>>, vector<32x32xbf16>
    %23 = arith.truncf %21 : vector<8x32xf32> to vector<8x32xbf16>
    %cst_10 = arith.constant dense<0.000000e+00> : vector<8x32xf32>
    %24 = tpu.matmul %23, %22, %cst_10 {dimension_numbers = #tpu.dot_dimension_numbers<[1], [0], [0], [1], [0, 0, 1, 1], [], []>} : vector<8x32xbf16>, vector<32x32xbf16>, vector<8x32xf32> -> vector<8x32xf32>
    %c0_11 = arith.constant 0 : index
    %c0_12 = arith.constant 0 : index
    %25 = vector.load %arg8[%c0_11, %c0_12] : memref<1x32xf32, #tpu.memory_space<vmem>>, vector<1x32xf32>
    %26 = vector.broadcast %25 : vector<1x32xf32> to vector<8x32xf32>
    %27 = arith.addf %24, %26 : vector<8x32xf32>
    %c0_13 = arith.constant 0 : index
    %c0_14 = arith.constant 0 : index
    %28 = vector.load %arg3[%c0_13, %c0_14] : memref<8x8xf32, #tpu.memory_space<vmem>>, vector<8x8xf32>
    %c0_15 = arith.constant 0 : index
    %c0_16 = arith.constant 0 : index
    %29 = vector.load %arg9[%c0_15, %c0_16] : memref<8x32xbf16, #tpu.memory_space<vmem>>, vector<8x32xbf16>
    %30 = arith.truncf %28 : vector<8x8xf32> to vector<8x8xbf16>
    %cst_17 = arith.constant dense<0.000000e+00> : vector<8x32xf32>
    %31 = tpu.matmul %30, %29, %cst_17 {dimension_numbers = #tpu.dot_dimension_numbers<[1], [0], [0], [1], [0, 0, 1, 1], [], []>} : vector<8x8xbf16>, vector<8x32xbf16>, vector<8x32xf32> -> vector<8x32xf32>
    %c0_18 = arith.constant 0 : index
    %c0_19 = arith.constant 0 : index
    %32 = vector.load %arg10[%c0_18, %c0_19] : memref<1x32xf32, #tpu.memory_space<vmem>>, vector<1x32xf32>
    %33 = vector.broadcast %32 : vector<1x32xf32> to vector<8x32xf32>
    %34 = arith.addf %31, %33 : vector<8x32xf32>
    %35 = arith.negf %34 : vector<8x32xf32>
    %36 = math.exp %35 : vector<8x32xf32>
    %cst_20 = arith.constant 1.000000e+00 : f32
    %37 = vector.broadcast %cst_20 : f32 to vector<8x32xf32>
    %38 = arith.addf %37, %36 : vector<8x32xf32>
    %39 = arith.divf %37, %38 : vector<8x32xf32>
    %40 = arith.mulf %34, %39 : vector<8x32xf32>
    %c0_21 = arith.constant 0 : index
    %c0_22 = arith.constant 0 : index
    %41 = vector.load %arg11[%c0_21, %c0_22] : memref<32x32xbf16, #tpu.memory_space<vmem>>, vector<32x32xbf16>
    %42 = arith.truncf %40 : vector<8x32xf32> to vector<8x32xbf16>
    %cst_23 = arith.constant dense<0.000000e+00> : vector<8x32xf32>
    %43 = tpu.matmul %42, %41, %cst_23 {dimension_numbers = #tpu.dot_dimension_numbers<[1], [0], [0], [1], [0, 0, 1, 1], [], []>} : vector<8x32xbf16>, vector<32x32xbf16>, vector<8x32xf32> -> vector<8x32xf32>
    %c0_24 = arith.constant 0 : index
    %c0_25 = arith.constant 0 : index
    %44 = vector.load %arg12[%c0_24, %c0_25] : memref<1x32xf32, #tpu.memory_space<vmem>>, vector<1x32xf32>
    %45 = vector.broadcast %44 : vector<1x32xf32> to vector<8x32xf32>
    %46 = arith.addf %43, %45 : vector<8x32xf32>
    %c0_26 = arith.constant 0 : index
    %c0_27 = arith.constant 0 : index
    %47 = vector.load %arg2[%c0_26, %c0_27] : memref<8x8xf32, #tpu.memory_space<vmem>>, vector<8x8xf32>
    %c0_28 = arith.constant 0 : index
    %c0_29 = arith.constant 0 : index
    %48 = vector.load %arg13[%c0_28, %c0_29] : memref<8x256xbf16, #tpu.memory_space<vmem>>, vector<8x256xbf16>
    %49 = arith.truncf %47 : vector<8x8xf32> to vector<8x8xbf16>
    %cst_30 = arith.constant dense<0.000000e+00> : vector<8x256xf32>
    %50 = tpu.matmul %49, %48, %cst_30 {dimension_numbers = #tpu.dot_dimension_numbers<[1], [0], [0], [1], [0, 0, 1, 1], [], []>} : vector<8x8xbf16>, vector<8x256xbf16>, vector<8x256xf32> -> vector<8x256xf32>
    %c0_31 = arith.constant 0 : index
    %c0_32 = arith.constant 0 : index
    %51 = vector.load %arg14[%c0_31, %c0_32] : memref<32x256xbf16, #tpu.memory_space<vmem>>, vector<32x256xbf16>
    %52 = arith.truncf %46 : vector<8x32xf32> to vector<8x32xbf16>
    %cst_33 = arith.constant dense<0.000000e+00> : vector<8x256xf32>
    %53 = tpu.matmul %52, %51, %cst_33 {dimension_numbers = #tpu.dot_dimension_numbers<[1], [0], [0], [1], [0, 0, 1, 1], [], []>} : vector<8x32xbf16>, vector<32x256xbf16>, vector<8x256xf32> -> vector<8x256xf32>
    %54 = arith.addf %50, %53 : vector<8x256xf32>
    %c0_34 = arith.constant 0 : index
    %c0_35 = arith.constant 0 : index
    %55 = vector.load %arg15[%c0_34, %c0_35] : memref<32x256xbf16, #tpu.memory_space<vmem>>, vector<32x256xbf16>
    %56 = arith.truncf %27 : vector<8x32xf32> to vector<8x32xbf16>
    %cst_36 = arith.constant dense<0.000000e+00> : vector<8x256xf32>
    %57 = tpu.matmul %56, %55, %cst_36 {dimension_numbers = #tpu.dot_dimension_numbers<[1], [0], [0], [1], [0, 0, 1, 1], [], []>} : vector<8x32xbf16>, vector<32x256xbf16>, vector<8x256xf32> -> vector<8x256xf32>
    %58 = arith.addf %54, %57 : vector<8x256xf32>
    %c0_37 = arith.constant 0 : index
    %c0_38 = arith.constant 0 : index
    %59 = vector.load %arg16[%c0_37, %c0_38] : memref<1x256xf32, #tpu.memory_space<vmem>>, vector<1x256xf32>
    %60 = vector.broadcast %59 : vector<1x256xf32> to vector<8x256xf32>
    %61 = arith.addf %58, %60 : vector<8x256xf32>
    %c0_39 = arith.constant 0 : index
    %c0_40 = arith.constant 0 : index
    %c0_41 = arith.constant 0 : index
    %62 = vector.load %arg17[%c0_39, %c0_40, %c0_41] : memref<3x256x256xbf16, #tpu.memory_space<vmem>>, vector<1x256x256xbf16>
    %63 = vector.shape_cast %62 : vector<1x256x256xbf16> to vector<256x256xbf16>
    %64 = arith.truncf %61 : vector<8x256xf32> to vector<8x256xbf16>
    %cst_42 = arith.constant dense<0.000000e+00> : vector<8x256xf32>
    %65 = tpu.matmul %64, %63, %cst_42 {dimension_numbers = #tpu.dot_dimension_numbers<[1], [0], [0], [1], [0, 0, 1, 1], [], []>} : vector<8x256xbf16>, vector<256x256xbf16>, vector<8x256xf32> -> vector<8x256xf32>
    %c0_43 = arith.constant 0 : index
    %c0_44 = arith.constant 0 : index
    %c0_45 = arith.constant 0 : index
    %66 = vector.load %arg18[%c0_43, %c0_44, %c0_45] : memref<3x1x256xf32, #tpu.memory_space<vmem>>, vector<1x1x256xf32>
    %67 = vector.shape_cast %66 : vector<1x1x256xf32> to vector<1x256xf32>
    %68 = vector.broadcast %67 : vector<1x256xf32> to vector<8x256xf32>
    %69 = arith.addf %65, %68 : vector<8x256xf32>
    %70 = arith.negf %69 : vector<8x256xf32>
    %71 = math.exp %70 : vector<8x256xf32>
    %cst_46 = arith.constant 1.000000e+00 : f32
    %72 = vector.broadcast %cst_46 : f32 to vector<8x256xf32>
    %73 = arith.addf %72, %71 : vector<8x256xf32>
    %74 = arith.divf %72, %73 : vector<8x256xf32>
    %75 = arith.mulf %69, %74 : vector<8x256xf32>
    %c0_47 = arith.constant 0 : index
    %c0_48 = arith.constant 0 : index
    %c0_49 = arith.constant 0 : index
    %76 = vector.load %arg19[%c0_47, %c0_48, %c0_49] : memref<3x256x256xbf16, #tpu.memory_space<vmem>>, vector<1x256x256xbf16>
    %77 = vector.shape_cast %76 : vector<1x256x256xbf16> to vector<256x256xbf16>
    %78 = arith.truncf %75 : vector<8x256xf32> to vector<8x256xbf16>
    %cst_50 = arith.constant dense<0.000000e+00> : vector<8x256xf32>
    %79 = tpu.matmul %78, %77, %cst_50 {dimension_numbers = #tpu.dot_dimension_numbers<[1], [0], [0], [1], [0, 0, 1, 1], [], []>} : vector<8x256xbf16>, vector<256x256xbf16>, vector<8x256xf32> -> vector<8x256xf32>
    %c0_51 = arith.constant 0 : index
    %c0_52 = arith.constant 0 : index
    %c0_53 = arith.constant 0 : index
    %80 = vector.load %arg20[%c0_51, %c0_52, %c0_53] : memref<3x1x256xf32, #tpu.memory_space<vmem>>, vector<1x1x256xf32>
    %81 = vector.shape_cast %80 : vector<1x1x256xf32> to vector<1x256xf32>
    %82 = vector.broadcast %81 : vector<1x256xf32> to vector<8x256xf32>
    %83 = arith.addf %79, %82 : vector<8x256xf32>
    %84 = arith.addf %61, %83 : vector<8x256xf32>
    %c1 = arith.constant 1 : index
    %c0_54 = arith.constant 0 : index
    %c0_55 = arith.constant 0 : index
    %85 = vector.load %arg17[%c1, %c0_54, %c0_55] : memref<3x256x256xbf16, #tpu.memory_space<vmem>>, vector<1x256x256xbf16>
    %86 = vector.shape_cast %85 : vector<1x256x256xbf16> to vector<256x256xbf16>
    %87 = arith.truncf %84 : vector<8x256xf32> to vector<8x256xbf16>
    %cst_56 = arith.constant dense<0.000000e+00> : vector<8x256xf32>
    %88 = tpu.matmul %87, %86, %cst_56 {dimension_numbers = #tpu.dot_dimension_numbers<[1], [0], [0], [1], [0, 0, 1, 1], [], []>} : vector<8x256xbf16>, vector<256x256xbf16>, vector<8x256xf32> -> vector<8x256xf32>
    %c1_57 = arith.constant 1 : index
    %c0_58 = arith.constant 0 : index
    %c0_59 = arith.constant 0 : index
    %89 = vector.load %arg18[%c1_57, %c0_58, %c0_59] : memref<3x1x256xf32, #tpu.memory_space<vmem>>, vector<1x1x256xf32>
    %90 = vector.shape_cast %89 : vector<1x1x256xf32> to vector<1x256xf32>
    %91 = vector.broadcast %90 : vector<1x256xf32> to vector<8x256xf32>
    %92 = arith.addf %88, %91 : vector<8x256xf32>
    %93 = arith.negf %92 : vector<8x256xf32>
    %94 = math.exp %93 : vector<8x256xf32>
    %cst_60 = arith.constant 1.000000e+00 : f32
    %95 = vector.broadcast %cst_60 : f32 to vector<8x256xf32>
    %96 = arith.addf %95, %94 : vector<8x256xf32>
    %97 = arith.divf %95, %96 : vector<8x256xf32>
    %98 = arith.mulf %92, %97 : vector<8x256xf32>
    %c1_61 = arith.constant 1 : index
    %c0_62 = arith.constant 0 : index
    %c0_63 = arith.constant 0 : index
    %99 = vector.load %arg19[%c1_61, %c0_62, %c0_63] : memref<3x256x256xbf16, #tpu.memory_space<vmem>>, vector<1x256x256xbf16>
    %100 = vector.shape_cast %99 : vector<1x256x256xbf16> to vector<256x256xbf16>
    %101 = arith.truncf %98 : vector<8x256xf32> to vector<8x256xbf16>
    %cst_64 = arith.constant dense<0.000000e+00> : vector<8x256xf32>
    %102 = tpu.matmul %101, %100, %cst_64 {dimension_numbers = #tpu.dot_dimension_numbers<[1], [0], [0], [1], [0, 0, 1, 1], [], []>} : vector<8x256xbf16>, vector<256x256xbf16>, vector<8x256xf32> -> vector<8x256xf32>
    %c1_65 = arith.constant 1 : index
    %c0_66 = arith.constant 0 : index
    %c0_67 = arith.constant 0 : index
    %103 = vector.load %arg20[%c1_65, %c0_66, %c0_67] : memref<3x1x256xf32, #tpu.memory_space<vmem>>, vector<1x1x256xf32>
    %104 = vector.shape_cast %103 : vector<1x1x256xf32> to vector<1x256xf32>
    %105 = vector.broadcast %104 : vector<1x256xf32> to vector<8x256xf32>
    %106 = arith.addf %102, %105 : vector<8x256xf32>
    %107 = arith.addf %84, %106 : vector<8x256xf32>
    %c2 = arith.constant 2 : index
    %c0_68 = arith.constant 0 : index
    %c0_69 = arith.constant 0 : index
    %108 = vector.load %arg17[%c2, %c0_68, %c0_69] : memref<3x256x256xbf16, #tpu.memory_space<vmem>>, vector<1x256x256xbf16>
    %109 = vector.shape_cast %108 : vector<1x256x256xbf16> to vector<256x256xbf16>
    %110 = arith.truncf %107 : vector<8x256xf32> to vector<8x256xbf16>
    %cst_70 = arith.constant dense<0.000000e+00> : vector<8x256xf32>
    %111 = tpu.matmul %110, %109, %cst_70 {dimension_numbers = #tpu.dot_dimension_numbers<[1], [0], [0], [1], [0, 0, 1, 1], [], []>} : vector<8x256xbf16>, vector<256x256xbf16>, vector<8x256xf32> -> vector<8x256xf32>
    %c2_71 = arith.constant 2 : index
    %c0_72 = arith.constant 0 : index
    %c0_73 = arith.constant 0 : index
    %112 = vector.load %arg18[%c2_71, %c0_72, %c0_73] : memref<3x1x256xf32, #tpu.memory_space<vmem>>, vector<1x1x256xf32>
    %113 = vector.shape_cast %112 : vector<1x1x256xf32> to vector<1x256xf32>
    %114 = vector.broadcast %113 : vector<1x256xf32> to vector<8x256xf32>
    %115 = arith.addf %111, %114 : vector<8x256xf32>
    %116 = arith.negf %115 : vector<8x256xf32>
    %117 = math.exp %116 : vector<8x256xf32>
    %cst_74 = arith.constant 1.000000e+00 : f32
    %118 = vector.broadcast %cst_74 : f32 to vector<8x256xf32>
    %119 = arith.addf %118, %117 : vector<8x256xf32>
    %120 = arith.divf %118, %119 : vector<8x256xf32>
    %121 = arith.mulf %115, %120 : vector<8x256xf32>
    %c2_75 = arith.constant 2 : index
    %c0_76 = arith.constant 0 : index
    %c0_77 = arith.constant 0 : index
    %122 = vector.load %arg19[%c2_75, %c0_76, %c0_77] : memref<3x256x256xbf16, #tpu.memory_space<vmem>>, vector<1x256x256xbf16>
    %123 = vector.shape_cast %122 : vector<1x256x256xbf16> to vector<256x256xbf16>
    %124 = arith.truncf %121 : vector<8x256xf32> to vector<8x256xbf16>
    %cst_78 = arith.constant dense<0.000000e+00> : vector<8x256xf32>
    %125 = tpu.matmul %124, %123, %cst_78 {dimension_numbers = #tpu.dot_dimension_numbers<[1], [0], [0], [1], [0, 0, 1, 1], [], []>} : vector<8x256xbf16>, vector<256x256xbf16>, vector<8x256xf32> -> vector<8x256xf32>
    %c2_79 = arith.constant 2 : index
    %c0_80 = arith.constant 0 : index
    %c0_81 = arith.constant 0 : index
    %126 = vector.load %arg20[%c2_79, %c0_80, %c0_81] : memref<3x1x256xf32, #tpu.memory_space<vmem>>, vector<1x1x256xf32>
    %127 = vector.shape_cast %126 : vector<1x1x256xf32> to vector<1x256xf32>
    %128 = vector.broadcast %127 : vector<1x256xf32> to vector<8x256xf32>
    %129 = arith.addf %125, %128 : vector<8x256xf32>
    %130 = arith.addf %107, %129 : vector<8x256xf32>
    %c0_82 = arith.constant 0 : index
    %c0_83 = arith.constant 0 : index
    %131 = vector.load %arg21[%c0_82, %c0_83] : memref<256x128xbf16, #tpu.memory_space<vmem>>, vector<256x128xbf16>
    %132 = arith.truncf %130 : vector<8x256xf32> to vector<8x256xbf16>
    %cst_84 = arith.constant dense<0.000000e+00> : vector<8x128xf32>
    %133 = tpu.matmul %132, %131, %cst_84 {dimension_numbers = #tpu.dot_dimension_numbers<[1], [0], [0], [1], [0, 0, 1, 1], [], []>} : vector<8x256xbf16>, vector<256x128xbf16>, vector<8x128xf32> -> vector<8x128xf32>
    %c0_85 = arith.constant 0 : index
    %c0_86 = arith.constant 0 : index
    %134 = vector.load %arg22[%c0_85, %c0_86] : memref<1x128xf32, #tpu.memory_space<vmem>>, vector<1x128xf32>
    %135 = vector.broadcast %134 : vector<1x128xf32> to vector<8x128xf32>
    %136 = arith.addf %133, %135 : vector<8x128xf32>
    %137 = arith.truncf %136 : vector<8x128xf32> to vector<8x128xbf16>
    %c0_87 = arith.constant 0 : index
    %c0_88 = arith.constant 0 : index
    %138 = vector.load %arg23[%c0_87, %c0_88] : memref<8x128xbf16, #tpu.memory_space<vmem>>, vector<8x128xbf16>
    tpu.vector_store %arg23[%c0_87, %c0_88], %137 {strides = array<i32>} : memref<8x128xbf16, #tpu.memory_space<vmem>>, vector<8x128xbf16>,
    return
  }
  func.func @transform_0(%arg0: i32) -> (i32, i32) {
    %c0_i32 = arith.constant 0 : i32
    %c0_i32_0 = arith.constant 0 : i32
    return %arg0, %c0_i32 : i32, i32
  }
  func.func @transform_1(%arg0: i32) -> (i32, i32) {
    %c0_i32 = arith.constant 0 : i32
    %c0_i32_0 = arith.constant 0 : i32
    return %arg0, %c0_i32 : i32, i32
  }
  func.func @transform_2(%arg0: i32) -> (i32, i32) {
    %c0_i32 = arith.constant 0 : i32
    %c0_i32_0 = arith.constant 0 : i32
    return %arg0, %c0_i32 : i32, i32
  }
  func.func @transform_3(%arg0: i32) -> (i32, i32) {
    %c0_i32 = arith.constant 0 : i32
    %c0_i32_0 = arith.constant 0 : i32
    %c0_i32_1 = arith.constant 0 : i32
    return %c0_i32, %c0_i32_0 : i32, i32
  }
  func.func @transform_4(%arg0: i32) -> (i32, i32) {
    %c0_i32 = arith.constant 0 : i32
    %c0_i32_0 = arith.constant 0 : i32
    %c0_i32_1 = arith.constant 0 : i32
    return %c0_i32, %c0_i32_0 : i32, i32
  }
  func.func @transform_5(%arg0: i32) -> (i32, i32) {
    %c0_i32 = arith.constant 0 : i32
    %c0_i32_0 = arith.constant 0 : i32
    %c0_i32_1 = arith.constant 0 : i32
    return %c0_i32, %c0_i32_0 : i32, i32
  }
  func.func @transform_6(%arg0: i32) -> (i32, i32) {
    %c0_i32 = arith.constant 0 : i32
    %c0_i32_0 = arith.constant 0 : i32
    %c0_i32_1 = arith.constant 0 : i32
    return %c0_i32, %c0_i32_0 : i32, i32
  }
  func.func @transform_7(%arg0: i32) -> (i32, i32) {
    %c0_i32 = arith.constant 0 : i32
    %c0_i32_0 = arith.constant 0 : i32
    %c0_i32_1 = arith.constant 0 : i32
    return %c0_i32, %c0_i32_0 : i32, i32
  }
  func.func @transform_8(%arg0: i32) -> (i32, i32) {
    %c0_i32 = arith.constant 0 : i32
    %c0_i32_0 = arith.constant 0 : i32
    %c0_i32_1 = arith.constant 0 : i32
    return %c0_i32, %c0_i32_0 : i32, i32
  }
  func.func @transform_9(%arg0: i32) -> (i32, i32) {
    %c0_i32 = arith.constant 0 : i32
    %c0_i32_0 = arith.constant 0 : i32
    %c0_i32_1 = arith.constant 0 : i32
    return %c0_i32, %c0_i32_0 : i32, i32
  }
  func.func @transform_10(%arg0: i32) -> (i32, i32) {
    %c0_i32 = arith.constant 0 : i32
    %c0_i32_0 = arith.constant 0 : i32
    %c0_i32_1 = arith.constant 0 : i32
    return %c0_i32, %c0_i32_0 : i32, i32
  }
  func.func @transform_11(%arg0: i32) -> (i32, i32) {
    %c0_i32 = arith.constant 0 : i32
    %c0_i32_0 = arith.constant 0 : i32
    %c0_i32_1 = arith.constant 0 : i32
    return %c0_i32, %c0_i32_0 : i32, i32
  }
  func.func @transform_12(%arg0: i32) -> (i32, i32) {
    %c0_i32 = arith.constant 0 : i32
    %c0_i32_0 = arith.constant 0 : i32
    %c0_i32_1 = arith.constant 0 : i32
    return %c0_i32, %c0_i32_0 : i32, i32
  }
  func.func @transform_13(%arg0: i32) -> (i32, i32) {
    %c0_i32 = arith.constant 0 : i32
    %c0_i32_0 = arith.constant 0 : i32
    %c0_i32_1 = arith.constant 0 : i32
    return %c0_i32, %c0_i32_0 : i32, i32
  }
  func.func @transform_14(%arg0: i32) -> (i32, i32) {
    %c0_i32 = arith.constant 0 : i32
    %c0_i32_0 = arith.constant 0 : i32
    %c0_i32_1 = arith.constant 0 : i32
    return %c0_i32, %c0_i32_0 : i32, i32
  }
  func.func @transform_15(%arg0: i32) -> (i32, i32) {
    %c0_i32 = arith.constant 0 : i32
    %c0_i32_0 = arith.constant 0 : i32
    %c0_i32_1 = arith.constant 0 : i32
    return %c0_i32, %c0_i32_0 : i32, i32
  }
  func.func @transform_16(%arg0: i32) -> (i32, i32, i32) {
    %c0_i32 = arith.constant 0 : i32
    %c0_i32_0 = arith.constant 0 : i32
    %c0_i32_1 = arith.constant 0 : i32
    %c0_i32_2 = arith.constant 0 : i32
    return %c0_i32, %c0_i32_0, %c0_i32_1 : i32, i32, i32
  }
  func.func @transform_17(%arg0: i32) -> (i32, i32, i32) {
    %c0_i32 = arith.constant 0 : i32
    %c0_i32_0 = arith.constant 0 : i32
    %c0_i32_1 = arith.constant 0 : i32
    %c0_i32_2 = arith.constant 0 : i32
    return %c0_i32, %c0_i32_0, %c0_i32_1 : i32, i32, i32
  }
  func.func @transform_18(%arg0: i32) -> (i32, i32, i32) {
    %c0_i32 = arith.constant 0 : i32
    %c0_i32_0 = arith.constant 0 : i32
    %c0_i32_1 = arith.constant 0 : i32
    %c0_i32_2 = arith.constant 0 : i32
    return %c0_i32, %c0_i32_0, %c0_i32_1 : i32, i32, i32
  }
  func.func @transform_19(%arg0: i32) -> (i32, i32, i32) {
    %c0_i32 = arith.constant 0 : i32
    %c0_i32_0 = arith.constant 0 : i32
    %c0_i32_1 = arith.constant 0 : i32
    %c0_i32_2 = arith.constant 0 : i32
    return %c0_i32, %c0_i32_0, %c0_i32_1 : i32, i32, i32
  }
  func.func @transform_20(%arg0: i32) -> (i32, i32) {
    %c0_i32 = arith.constant 0 : i32
    %c0_i32_0 = arith.constant 0 : i32
    %c0_i32_1 = arith.constant 0 : i32
    return %c0_i32, %c0_i32_0 : i32, i32
  }
  func.func @transform_21(%arg0: i32) -> (i32, i32) {
    %c0_i32 = arith.constant 0 : i32
    %c0_i32_0 = arith.constant 0 : i32
    %c0_i32_1 = arith.constant 0 : i32
    return %c0_i32, %c0_i32_0 : i32, i32
  }
  func.func @transform_22(%arg0: i32) -> (i32, i32) {
    %c0_i32 = arith.constant 0 : i32
    %c0_i32_0 = arith.constant 0 : i32
    return %arg0, %c0_i32 : i32, i32
  }
}

module attributes {stable_mosaic.version = 11 : i64} {
  func.func @_denoiser_kernel(%arg0: i32, %arg1: memref<8x1xf32, #tpu.memory_space<vmem>>, %arg2: memref<8x8xf32, #tpu.memory_space<vmem>>, %arg3: memref<8x8xf32, #tpu.memory_space<vmem>>, %arg4: memref<2x32xf32, #tpu.memory_space<vmem>>, %arg5: memref<32x32xbf16, #tpu.memory_space<vmem>>, %arg6: memref<1x32xf32, #tpu.memory_space<vmem>>, %arg7: memref<32x32xbf16, #tpu.memory_space<vmem>>, %arg8: memref<1x32xf32, #tpu.memory_space<vmem>>, %arg9: memref<8x32xbf16, #tpu.memory_space<vmem>>, %arg10: memref<1x32xf32, #tpu.memory_space<vmem>>, %arg11: memref<32x32xbf16, #tpu.memory_space<vmem>>, %arg12: memref<1x32xf32, #tpu.memory_space<vmem>>, %arg13: memref<8x256xbf16, #tpu.memory_space<vmem>>, %arg14: memref<32x256xbf16, #tpu.memory_space<vmem>>, %arg15: memref<32x256xbf16, #tpu.memory_space<vmem>>, %arg16: memref<1x256xf32, #tpu.memory_space<vmem>>, %arg17: memref<3x256x256xbf16, #tpu.memory_space<vmem>>, %arg18: memref<3x1x256xf32, #tpu.memory_space<vmem>>, %arg19: memref<3x256x256xbf16, #tpu.memory_space<vmem>>, %arg20: memref<3x1x256xf32, #tpu.memory_space<vmem>>, %arg21: memref<256x128xbf16, #tpu.memory_space<vmem>>, %arg22: memref<1x128xf32, #tpu.memory_space<vmem>>, %arg23: memref<8x128xbf16, #tpu.memory_space<vmem>>) attributes {dimension_semantics = [#tpu.dimension_semantics<parallel>], iteration_bounds = array<i64: 2>, scalar_prefetch = 0 : i64, scratch_operands = 0 : i64, tpu.core_type = #tpu.core_type<tc>, window_params = [{transform_indices = @transform_0, window_bounds = array<i64: 8, 1>}, {transform_indices = @transform_1, window_bounds = array<i64: 8, 8>}, {transform_indices = @transform_2, window_bounds = array<i64: 8, 8>}, {pipeline_mode = #tpu.pipeline_mode<synchronous>, transform_indices = @transform_3, window_bounds = array<i64: 2, 32>}, {pipeline_mode = #tpu.pipeline_mode<synchronous>, transform_indices = @transform_4, window_bounds = array<i64: 32, 32>}, {pipeline_mode = #tpu.pipeline_mode<synchronous>, transform_indices = @transform_5, window_bounds = array<i64: 1, 32>}, {pipeline_mode = #tpu.pipeline_mode<synchronous>, transform_indices = @transform_6, window_bounds = array<i64: 32, 32>}, {pipeline_mode = #tpu.pipeline_mode<synchronous>, transform_indices = @transform_7, window_bounds = array<i64: 1, 32>}, {pipeline_mode = #tpu.pipeline_mode<synchronous>, transform_indices = @transform_8, window_bounds = array<i64: 8, 32>}, {pipeline_mode = #tpu.pipeline_mode<synchronous>, transform_indices = @transform_9, window_bounds = array<i64: 1, 32>}, {pipeline_mode = #tpu.pipeline_mode<synchronous>, transform_indices = @transform_10, window_bounds = array<i64: 32, 32>}, {pipeline_mode = #tpu.pipeline_mode<synchronous>, transform_indices = @transform_11, window_bounds = array<i64: 1, 32>}, {pipeline_mode = #tpu.pipeline_mode<synchronous>, transform_indices = @transform_12, window_bounds = array<i64: 8, 256>}, {pipeline_mode = #tpu.pipeline_mode<synchronous>, transform_indices = @transform_13, window_bounds = array<i64: 32, 256>}, {pipeline_mode = #tpu.pipeline_mode<synchronous>, transform_indices = @transform_14, window_bounds = array<i64: 32, 256>}, {pipeline_mode = #tpu.pipeline_mode<synchronous>, transform_indices = @transform_15, window_bounds = array<i64: 1, 256>}, {pipeline_mode = #tpu.pipeline_mode<synchronous>, transform_indices = @transform_16, window_bounds = array<i64: 3, 256, 256>}, {pipeline_mode = #tpu.pipeline_mode<synchronous>, transform_indices = @transform_17, window_bounds = array<i64: 3, 1, 256>}, {pipeline_mode = #tpu.pipeline_mode<synchronous>, transform_indices = @transform_18, window_bounds = array<i64: 3, 256, 256>}, {pipeline_mode = #tpu.pipeline_mode<synchronous>, transform_indices = @transform_19, window_bounds = array<i64: 3, 1, 256>}, {pipeline_mode = #tpu.pipeline_mode<synchronous>, transform_indices = @transform_20, window_bounds = array<i64: 256, 128>}, {pipeline_mode = #tpu.pipeline_mode<synchronous>, transform_indices = @transform_21, window_bounds = array<i64: 1, 128>}, {transform_indices = @transform_22, window_bounds = array<i64: 8, 128>}]} {
    %c0 = arith.constant 0 : index
    %c0_0 = arith.constant 0 : index
    %0 = vector.load %arg4[%c0, %c0_0] : memref<2x32xf32, #tpu.memory_space<vmem>>, vector<2x32xf32>
    %c0_1 = arith.constant 0 : index
    %c0_2 = arith.constant 0 : index
    %1 = vector.load %arg1[%c0_1, %c0_2] : memref<8x1xf32, #tpu.memory_space<vmem>>, vector<8x1xf32>
    %2 = vector.extract_strided_slice %0 {offsets = [0, 0], sizes = [1, 32], strides = [1, 1]} : vector<2x32xf32> to vector<1x32xf32>
    %3 = vector.broadcast %1 : vector<8x1xf32> to vector<8x32xf32>
    %4 = vector.broadcast %2 : vector<1x32xf32> to vector<8x32xf32>
    %5 = arith.mulf %3, %4 : vector<8x32xf32>
    %6 = vector.extract_strided_slice %0 {offsets = [1, 0], sizes = [1, 32], strides = [1, 1]} : vector<2x32xf32> to vector<1x32xf32>
    %7 = vector.broadcast %6 : vector<1x32xf32> to vector<8x32xf32>
    %8 = arith.addf %5, %7 : vector<8x32xf32>
    %9 = math.sin %8 : vector<8x32xf32>
    %c0_3 = arith.constant 0 : index
    %c0_4 = arith.constant 0 : index
    %10 = vector.load %arg5[%c0_3, %c0_4] : memref<32x32xbf16, #tpu.memory_space<vmem>>, vector<32x32xbf16>
    %11 = arith.truncf %9 : vector<8x32xf32> to vector<8x32xbf16>
    %cst = arith.constant dense<0.000000e+00> : vector<8x32xf32>
    %12 = tpu.matmul %11, %10, %cst {dimension_numbers = #tpu.dot_dimension_numbers<[1], [0], [0], [1], [0, 0, 1, 1], [], []>} : vector<8x32xbf16>, vector<32x32xbf16>, vector<8x32xf32> -> vector<8x32xf32>
    %c0_5 = arith.constant 0 : index
    %c0_6 = arith.constant 0 : index
    %13 = vector.load %arg6[%c0_5, %c0_6] : memref<1x32xf32, #tpu.memory_space<vmem>>, vector<1x32xf32>
    %14 = vector.broadcast %13 : vector<1x32xf32> to vector<8x32xf32>
    %15 = arith.addf %12, %14 : vector<8x32xf32>
    %16 = arith.negf %15 : vector<8x32xf32>
    %17 = math.exp %16 : vector<8x32xf32>
    %cst_7 = arith.constant 1.000000e+00 : f32
    %18 = vector.broadcast %cst_7 : f32 to vector<8x32xf32>
    %19 = arith.addf %18, %17 : vector<8x32xf32>
    %20 = arith.divf %18, %19 : vector<8x32xf32>
    %21 = arith.mulf %15, %20 : vector<8x32xf32>
    %c0_8 = arith.constant 0 : index
    %c0_9 = arith.constant 0 : index
    %22 = vector.load %arg7[%c0_8, %c0_9] : memref<32x32xbf16, #tpu.memory_space<vmem>>, vector<32x32xbf16>
    %23 = arith.truncf %21 : vector<8x32xf32> to vector<8x32xbf16>
    %cst_10 = arith.constant dense<0.000000e+00> : vector<8x32xf32>
    %24 = tpu.matmul %23, %22, %cst_10 {dimension_numbers = #tpu.dot_dimension_numbers<[1], [0], [0], [1], [0, 0, 1, 1], [], []>} : vector<8x32xbf16>, vector<32x32xbf16>, vector<8x32xf32> -> vector<8x32xf32>
    %c0_11 = arith.constant 0 : index
    %c0_12 = arith.constant 0 : index
    %25 = vector.load %arg8[%c0_11, %c0_12] : memref<1x32xf32, #tpu.memory_space<vmem>>, vector<1x32xf32>
    %26 = vector.broadcast %25 : vector<1x32xf32> to vector<8x32xf32>
    %27 = arith.addf %24, %26 : vector<8x32xf32>
    %c0_13 = arith.constant 0 : index
    %c0_14 = arith.constant 0 : index
    %28 = vector.load %arg3[%c0_13, %c0_14] : memref<8x8xf32, #tpu.memory_space<vmem>>, vector<8x8xf32>
    %c0_15 = arith.constant 0 : index
    %c0_16 = arith.constant 0 : index
    %29 = vector.load %arg9[%c0_15, %c0_16] : memref<8x32xbf16, #tpu.memory_space<vmem>>, vector<8x32xbf16>
    %30 = arith.truncf %28 : vector<8x8xf32> to vector<8x8xbf16>
    %cst_17 = arith.constant dense<0.000000e+00> : vector<8x32xf32>
    %31 = tpu.matmul %30, %29, %cst_17 {dimension_numbers = #tpu.dot_dimension_numbers<[1], [0], [0], [1], [0, 0, 1, 1], [], []>} : vector<8x8xbf16>, vector<8x32xbf16>, vector<8x32xf32> -> vector<8x32xf32>
    %c0_18 = arith.constant 0 : index
    %c0_19 = arith.constant 0 : index
    %32 = vector.load %arg10[%c0_18, %c0_19] : memref<1x32xf32, #tpu.memory_space<vmem>>, vector<1x32xf32>
    %33 = vector.broadcast %32 : vector<1x32xf32> to vector<8x32xf32>
    %34 = arith.addf %31, %33 : vector<8x32xf32>
    %35 = arith.negf %34 : vector<8x32xf32>
    %36 = math.exp %35 : vector<8x32xf32>
    %cst_20 = arith.constant 1.000000e+00 : f32
    %37 = vector.broadcast %cst_20 : f32 to vector<8x32xf32>
    %38 = arith.addf %37, %36 : vector<8x32xf32>
    %39 = arith.divf %37, %38 : vector<8x32xf32>
    %40 = arith.mulf %34, %39 : vector<8x32xf32>
    %c0_21 = arith.constant 0 : index
    %c0_22 = arith.constant 0 : index
    %41 = vector.load %arg11[%c0_21, %c0_22] : memref<32x32xbf16, #tpu.memory_space<vmem>>, vector<32x32xbf16>
    %42 = arith.truncf %40 : vector<8x32xf32> to vector<8x32xbf16>
    %cst_23 = arith.constant dense<0.000000e+00> : vector<8x32xf32>
    %43 = tpu.matmul %42, %41, %cst_23 {dimension_numbers = #tpu.dot_dimension_numbers<[1], [0], [0], [1], [0, 0, 1, 1], [], []>} : vector<8x32xbf16>, vector<32x32xbf16>, vector<8x32xf32> -> vector<8x32xf32>
    %c0_24 = arith.constant 0 : index
    %c0_25 = arith.constant 0 : index
    %44 = vector.load %arg12[%c0_24, %c0_25] : memref<1x32xf32, #tpu.memory_space<vmem>>, vector<1x32xf32>
    %45 = vector.broadcast %44 : vector<1x32xf32> to vector<8x32xf32>
    %46 = arith.addf %43, %45 : vector<8x32xf32>
    %c0_26 = arith.constant 0 : index
    %c0_27 = arith.constant 0 : index
    %47 = vector.load %arg2[%c0_26, %c0_27] : memref<8x8xf32, #tpu.memory_space<vmem>>, vector<8x8xf32>
    %c0_28 = arith.constant 0 : index
    %c0_29 = arith.constant 0 : index
    %48 = vector.load %arg13[%c0_28, %c0_29] : memref<8x256xbf16, #tpu.memory_space<vmem>>, vector<8x256xbf16>
    %49 = arith.truncf %47 : vector<8x8xf32> to vector<8x8xbf16>
    %cst_30 = arith.constant dense<0.000000e+00> : vector<8x256xf32>
    %50 = tpu.matmul %49, %48, %cst_30 {dimension_numbers = #tpu.dot_dimension_numbers<[1], [0], [0], [1], [0, 0, 1, 1], [], []>} : vector<8x8xbf16>, vector<8x256xbf16>, vector<8x256xf32> -> vector<8x256xf32>
    %c0_31 = arith.constant 0 : index
    %c0_32 = arith.constant 0 : index
    %51 = vector.load %arg14[%c0_31, %c0_32] : memref<32x256xbf16, #tpu.memory_space<vmem>>, vector<32x256xbf16>
    %52 = arith.truncf %46 : vector<8x32xf32> to vector<8x32xbf16>
    %cst_33 = arith.constant dense<0.000000e+00> : vector<8x256xf32>
    %53 = tpu.matmul %52, %51, %cst_33 {dimension_numbers = #tpu.dot_dimension_numbers<[1], [0], [0], [1], [0, 0, 1, 1], [], []>} : vector<8x32xbf16>, vector<32x256xbf16>, vector<8x256xf32> -> vector<8x256xf32>
    %54 = arith.addf %50, %53 : vector<8x256xf32>
    %c0_34 = arith.constant 0 : index
    %c0_35 = arith.constant 0 : index
    %55 = vector.load %arg15[%c0_34, %c0_35] : memref<32x256xbf16, #tpu.memory_space<vmem>>, vector<32x256xbf16>
    %56 = arith.truncf %27 : vector<8x32xf32> to vector<8x32xbf16>
    %cst_36 = arith.constant dense<0.000000e+00> : vector<8x256xf32>
    %57 = tpu.matmul %56, %55, %cst_36 {dimension_numbers = #tpu.dot_dimension_numbers<[1], [0], [0], [1], [0, 0, 1, 1], [], []>} : vector<8x32xbf16>, vector<32x256xbf16>, vector<8x256xf32> -> vector<8x256xf32>
    %58 = arith.addf %54, %57 : vector<8x256xf32>
    %c0_37 = arith.constant 0 : index
    %c0_38 = arith.constant 0 : index
    %59 = vector.load %arg16[%c0_37, %c0_38] : memref<1x256xf32, #tpu.memory_space<vmem>>, vector<1x256xf32>
    %60 = vector.broadcast %59 : vector<1x256xf32> to vector<8x256xf32>
    %61 = arith.addf %58, %60 : vector<8x256xf32>
    %c0_39 = arith.constant 0 : index
    %c0_40 = arith.constant 0 : index
    %c0_41 = arith.constant 0 : index
    %62 = vector.load %arg17[%c0_39, %c0_40, %c0_41] : memref<3x256x256xbf16, #tpu.memory_space<vmem>>, vector<1x256x256xbf16>
    %63 = vector.shape_cast %62 : vector<1x256x256xbf16> to vector<256x256xbf16>
    %64 = arith.truncf %61 : vector<8x256xf32> to vector<8x256xbf16>
    %cst_42 = arith.constant dense<0.000000e+00> : vector<8x256xf32>
    %65 = tpu.matmul %64, %63, %cst_42 {dimension_numbers = #tpu.dot_dimension_numbers<[1], [0], [0], [1], [0, 0, 1, 1], [], []>} : vector<8x256xbf16>, vector<256x256xbf16>, vector<8x256xf32> -> vector<8x256xf32>
    %c0_43 = arith.constant 0 : index
    %c0_44 = arith.constant 0 : index
    %c0_45 = arith.constant 0 : index
    %66 = vector.load %arg18[%c0_43, %c0_44, %c0_45] : memref<3x1x256xf32, #tpu.memory_space<vmem>>, vector<1x1x256xf32>
    %67 = vector.shape_cast %66 : vector<1x1x256xf32> to vector<1x256xf32>
    %68 = vector.broadcast %67 : vector<1x256xf32> to vector<8x256xf32>
    %69 = arith.addf %65, %68 : vector<8x256xf32>
    %70 = arith.negf %69 : vector<8x256xf32>
    %71 = math.exp %70 : vector<8x256xf32>
    %cst_46 = arith.constant 1.000000e+00 : f32
    %72 = vector.broadcast %cst_46 : f32 to vector<8x256xf32>
    %73 = arith.addf %72, %71 : vector<8x256xf32>
    %74 = arith.divf %72, %73 : vector<8x256xf32>
    %75 = arith.mulf %69, %74 : vector<8x256xf32>
    %c0_47 = arith.constant 0 : index
    %c0_48 = arith.constant 0 : index
    %c0_49 = arith.constant 0 : index
    %76 = vector.load %arg19[%c0_47, %c0_48, %c0_49] : memref<3x256x256xbf16, #tpu.memory_space<vmem>>, vector<1x256x256xbf16>
    %77 = vector.shape_cast %76 : vector<1x256x256xbf16> to vector<256x256xbf16>
    %78 = arith.truncf %75 : vector<8x256xf32> to vector<8x256xbf16>
    %cst_50 = arith.constant dense<0.000000e+00> : vector<8x256xf32>
    %79 = tpu.matmul %78, %77, %cst_50 {dimension_numbers = #tpu.dot_dimension_numbers<[1], [0], [0], [1], [0, 0, 1, 1], [], []>} : vector<8x256xbf16>, vector<256x256xbf16>, vector<8x256xf32> -> vector<8x256xf32>
    %c0_51 = arith.constant 0 : index
    %c0_52 = arith.constant 0 : index
    %c0_53 = arith.constant 0 : index
    %80 = vector.load %arg20[%c0_51, %c0_52, %c0_53] : memref<3x1x256xf32, #tpu.memory_space<vmem>>, vector<1x1x256xf32>
    %81 = vector.shape_cast %80 : vector<1x1x256xf32> to vector<1x256xf32>
    %82 = vector.broadcast %81 : vector<1x256xf32> to vector<8x256xf32>
    %83 = arith.addf %79, %82 : vector<8x256xf32>
    %84 = arith.addf %61, %83 : vector<8x256xf32>
    %c1 = arith.constant 1 : index
    %c0_54 = arith.constant 0 : index
    %c0_55 = arith.constant 0 : index
    %85 = vector.load %arg17[%c1, %c0_54, %c0_55] : memref<3x256x256xbf16, #tpu.memory_space<vmem>>, vector<1x256x256xbf16>
    %86 = vector.shape_cast %85 : vector<1x256x256xbf16> to vector<256x256xbf16>
    %87 = arith.truncf %84 : vector<8x256xf32> to vector<8x256xbf16>
    %cst_56 = arith.constant dense<0.000000e+00> : vector<8x256xf32>
    %88 = tpu.matmul %87, %86, %cst_56 {dimension_numbers = #tpu.dot_dimension_numbers<[1], [0], [0], [1], [0, 0, 1, 1], [], []>} : vector<8x256xbf16>, vector<256x256xbf16>, vector<8x256xf32> -> vector<8x256xf32>
    %c1_57 = arith.constant 1 : index
    %c0_58 = arith.constant 0 : index
    %c0_59 = arith.constant 0 : index
    %89 = vector.load %arg18[%c1_57, %c0_58, %c0_59] : memref<3x1x256xf32, #tpu.memory_space<vmem>>, vector<1x1x256xf32>
    %90 = vector.shape_cast %89 : vector<1x1x256xf32> to vector<1x256xf32>
    %91 = vector.broadcast %90 : vector<1x256xf32> to vector<8x256xf32>
    %92 = arith.addf %88, %91 : vector<8x256xf32>
    %93 = arith.negf %92 : vector<8x256xf32>
    %94 = math.exp %93 : vector<8x256xf32>
    %cst_60 = arith.constant 1.000000e+00 : f32
    %95 = vector.broadcast %cst_60 : f32 to vector<8x256xf32>
    %96 = arith.addf %95, %94 : vector<8x256xf32>
    %97 = arith.divf %95, %96 : vector<8x256xf32>
    %98 = arith.mulf %92, %97 : vector<8x256xf32>
    %c1_61 = arith.constant 1 : index
    %c0_62 = arith.constant 0 : index
    %c0_63 = arith.constant 0 : index
    %99 = vector.load %arg19[%c1_61, %c0_62, %c0_63] : memref<3x256x256xbf16, #tpu.memory_space<vmem>>, vector<1x256x256xbf16>
    %100 = vector.shape_cast %99 : vector<1x256x256xbf16> to vector<256x256xbf16>
    %101 = arith.truncf %98 : vector<8x256xf32> to vector<8x256xbf16>
    %cst_64 = arith.constant dense<0.000000e+00> : vector<8x256xf32>
    %102 = tpu.matmul %101, %100, %cst_64 {dimension_numbers = #tpu.dot_dimension_numbers<[1], [0], [0], [1], [0, 0, 1, 1], [], []>} : vector<8x256xbf16>, vector<256x256xbf16>, vector<8x256xf32> -> vector<8x256xf32>
    %c1_65 = arith.constant 1 : index
    %c0_66 = arith.constant 0 : index
    %c0_67 = arith.constant 0 : index
    %103 = vector.load %arg20[%c1_65, %c0_66, %c0_67] : memref<3x1x256xf32, #tpu.memory_space<vmem>>, vector<1x1x256xf32>
    %104 = vector.shape_cast %103 : vector<1x1x256xf32> to vector<1x256xf32>
    %105 = vector.broadcast %104 : vector<1x256xf32> to vector<8x256xf32>
    %106 = arith.addf %102, %105 : vector<8x256xf32>
    %107 = arith.addf %84, %106 : vector<8x256xf32>
    %c2 = arith.constant 2 : index
    %c0_68 = arith.constant 0 : index
    %c0_69 = arith.constant 0 : index
    %108 = vector.load %arg17[%c2, %c0_68, %c0_69] : memref<3x256x256xbf16, #tpu.memory_space<vmem>>, vector<1x256x256xbf16>
    %109 = vector.shape_cast %108 : vector<1x256x256xbf16> to vector<256x256xbf16>
    %110 = arith.truncf %107 : vector<8x256xf32> to vector<8x256xbf16>
    %cst_70 = arith.constant dense<0.000000e+00> : vector<8x256xf32>
    %111 = tpu.matmul %110, %109, %cst_70 {dimension_numbers = #tpu.dot_dimension_numbers<[1], [0], [0], [1], [0, 0, 1, 1], [], []>} : vector<8x256xbf16>, vector<256x256xbf16>, vector<8x256xf32> -> vector<8x256xf32>
    %c2_71 = arith.constant 2 : index
    %c0_72 = arith.constant 0 : index
    %c0_73 = arith.constant 0 : index
    %112 = vector.load %arg18[%c2_71, %c0_72, %c0_73] : memref<3x1x256xf32, #tpu.memory_space<vmem>>, vector<1x1x256xf32>
    %113 = vector.shape_cast %112 : vector<1x1x256xf32> to vector<1x256xf32>
    %114 = vector.broadcast %113 : vector<1x256xf32> to vector<8x256xf32>
    %115 = arith.addf %111, %114 : vector<8x256xf32>
    %116 = arith.negf %115 : vector<8x256xf32>
    %117 = math.exp %116 : vector<8x256xf32>
    %cst_74 = arith.constant 1.000000e+00 : f32
    %118 = vector.broadcast %cst_74 : f32 to vector<8x256xf32>
    %119 = arith.addf %118, %117 : vector<8x256xf32>
    %120 = arith.divf %118, %119 : vector<8x256xf32>
    %121 = arith.mulf %115, %120 : vector<8x256xf32>
    %c2_75 = arith.constant 2 : index
    %c0_76 = arith.constant 0 : index
    %c0_77 = arith.constant 0 : index
    %122 = vector.load %arg19[%c2_75, %c0_76, %c0_77] : memref<3x256x256xbf16, #tpu.memory_space<vmem>>, vector<1x256x256xbf16>
    %123 = vector.shape_cast %122 : vector<1x256x256xbf16> to vector<256x256xbf16>
    %124 = arith.truncf %121 : vector<8x256xf32> to vector<8x256xbf16>
    %cst_78 = arith.constant dense<0.000000e+00> : vector<8x256xf32>
    %125 = tpu.matmul %124, %123, %cst_78 {dimension_numbers = #tpu.dot_dimension_numbers<[1], [0], [0], [1], [0, 0, 1, 1], [], []>} : vector<8x256xbf16>, vector<256x256xbf16>, vector<8x256xf32> -> vector<8x256xf32>
    %c2_79 = arith.constant 2 : index
    %c0_80 = arith.constant 0 : index
    %c0_81 = arith.constant 0 : index
    %126 = vector.load %arg20[%c2_79, %c0_80, %c0_81] : memref<3x1x256xf32, #tpu.memory_space<vmem>>, vector<1x1x256xf32>
    %127 = vector.shape_cast %126 : vector<1x1x256xf32> to vector<1x256xf32>
    %128 = vector.broadcast %127 : vector<1x256xf32> to vector<8x256xf32>
    %129 = arith.addf %125, %128 : vector<8x256xf32>
    %130 = arith.addf %107, %129 : vector<8x256xf32>
    %c0_82 = arith.constant 0 : index
    %c0_83 = arith.constant 0 : index
    %131 = vector.load %arg21[%c0_82, %c0_83] : memref<256x128xbf16, #tpu.memory_space<vmem>>, vector<256x128xbf16>
    %132 = arith.truncf %130 : vector<8x256xf32> to vector<8x256xbf16>
    %cst_84 = arith.constant dense<0.000000e+00> : vector<8x128xf32>
    %133 = tpu.matmul %132, %131, %cst_84 {dimension_numbers = #tpu.dot_dimension_numbers<[1], [0], [0], [1], [0, 0, 1, 1], [], []>} : vector<8x256xbf16>, vector<256x128xbf16>, vector<8x128xf32> -> vector<8x128xf32>
    %c0_85 = arith.constant 0 : index
    %c0_86 = arith.constant 0 : index
    %134 = vector.load %arg22[%c0_85, %c0_86] : memref<1x128xf32, #tpu.memory_space<vmem>>, vector<1x128xf32>
    %135 = vector.broadcast %134 : vector<1x128xf32> to vector<8x128xf32>
    %136 = arith.addf %133, %135 : vector<8x128xf32>
    %137 = arith.truncf %136 : vector<8x128xf32> to vector<8x128xbf16>
    %c0_87 = arith.constant 0 : index
    %c0_88 = arith.constant 0 : index
    %138 = vector.load %arg23[%c0_87, %c0_88] : memref<8x128xbf16, #tpu.memory_space<vmem>>, vector<8x128xbf16>
    tpu.vector_store %arg23[%c0_87, %c0_88], %137 {strides = array<i32>} : memref<8x128xbf16, #tpu.memory_space<vmem>>, vector<8x128xbf16>,
    return
  }
  func.func @transform_0(%arg0: i32) -> (i32, i32) {
    %c0_i32 = arith.constant 0 : i32
    %c0_i32_0 = arith.constant 0 : i32
    return %arg0, %c0_i32 : i32, i32
  }
  func.func @transform_1(%arg0: i32) -> (i32, i32) {
    %c0_i32 = arith.constant 0 : i32
    %c0_i32_0 = arith.constant 0 : i32
    return %arg0, %c0_i32 : i32, i32
  }
  func.func @transform_2(%arg0: i32) -> (i32, i32) {
    %c0_i32 = arith.constant 0 : i32
    %c0_i32_0 = arith.constant 0 : i32
    return %arg0, %c0_i32 : i32, i32
  }
  func.func @transform_3(%arg0: i32) -> (i32, i32) {
    %c0_i32 = arith.constant 0 : i32
    %c0_i32_0 = arith.constant 0 : i32
    %c0_i32_1 = arith.constant 0 : i32
    return %c0_i32, %c0_i32_0 : i32, i32
  }
  func.func @transform_4(%arg0: i32) -> (i32, i32) {
    %c0_i32 = arith.constant 0 : i32
    %c0_i32_0 = arith.constant 0 : i32
    %c0_i32_1 = arith.constant 0 : i32
    return %c0_i32, %c0_i32_0 : i32, i32
  }
  func.func @transform_5(%arg0: i32) -> (i32, i32) {
    %c0_i32 = arith.constant 0 : i32
    %c0_i32_0 = arith.constant 0 : i32
    %c0_i32_1 = arith.constant 0 : i32
    return %c0_i32, %c0_i32_0 : i32, i32
  }
  func.func @transform_6(%arg0: i32) -> (i32, i32) {
    %c0_i32 = arith.constant 0 : i32
    %c0_i32_0 = arith.constant 0 : i32
    %c0_i32_1 = arith.constant 0 : i32
    return %c0_i32, %c0_i32_0 : i32, i32
  }
  func.func @transform_7(%arg0: i32) -> (i32, i32) {
    %c0_i32 = arith.constant 0 : i32
    %c0_i32_0 = arith.constant 0 : i32
    %c0_i32_1 = arith.constant 0 : i32
    return %c0_i32, %c0_i32_0 : i32, i32
  }
  func.func @transform_8(%arg0: i32) -> (i32, i32) {
    %c0_i32 = arith.constant 0 : i32
    %c0_i32_0 = arith.constant 0 : i32
    %c0_i32_1 = arith.constant 0 : i32
    return %c0_i32, %c0_i32_0 : i32, i32
  }
  func.func @transform_9(%arg0: i32) -> (i32, i32) {
    %c0_i32 = arith.constant 0 : i32
    %c0_i32_0 = arith.constant 0 : i32
    %c0_i32_1 = arith.constant 0 : i32
    return %c0_i32, %c0_i32_0 : i32, i32
  }
  func.func @transform_10(%arg0: i32) -> (i32, i32) {
    %c0_i32 = arith.constant 0 : i32
    %c0_i32_0 = arith.constant 0 : i32
    %c0_i32_1 = arith.constant 0 : i32
    return %c0_i32, %c0_i32_0 : i32, i32
  }
  func.func @transform_11(%arg0: i32) -> (i32, i32) {
    %c0_i32 = arith.constant 0 : i32
    %c0_i32_0 = arith.constant 0 : i32
    %c0_i32_1 = arith.constant 0 : i32
    return %c0_i32, %c0_i32_0 : i32, i32
  }
  func.func @transform_12(%arg0: i32) -> (i32, i32) {
    %c0_i32 = arith.constant 0 : i32
    %c0_i32_0 = arith.constant 0 : i32
    %c0_i32_1 = arith.constant 0 : i32
    return %c0_i32, %c0_i32_0 : i32, i32
  }
  func.func @transform_13(%arg0: i32) -> (i32, i32) {
    %c0_i32 = arith.constant 0 : i32
    %c0_i32_0 = arith.constant 0 : i32
    %c0_i32_1 = arith.constant 0 : i32
    return %c0_i32, %c0_i32_0 : i32, i32
  }
  func.func @transform_14(%arg0: i32) -> (i32, i32) {
    %c0_i32 = arith.constant 0 : i32
    %c0_i32_0 = arith.constant 0 : i32
    %c0_i32_1 = arith.constant 0 : i32
    return %c0_i32, %c0_i32_0 : i32, i32
  }
  func.func @transform_15(%arg0: i32) -> (i32, i32) {
    %c0_i32 = arith.constant 0 : i32
    %c0_i32_0 = arith.constant 0 : i32
    %c0_i32_1 = arith.constant 0 : i32
    return %c0_i32, %c0_i32_0 : i32, i32
  }
  func.func @transform_16(%arg0: i32) -> (i32, i32, i32) {
    %c0_i32 = arith.constant 0 : i32
    %c0_i32_0 = arith.constant 0 : i32
    %c0_i32_1 = arith.constant 0 : i32
    %c0_i32_2 = arith.constant 0 : i32
    return %c0_i32, %c0_i32_0, %c0_i32_1 : i32, i32, i32
  }
  func.func @transform_17(%arg0: i32) -> (i32, i32, i32) {
    %c0_i32 = arith.constant 0 : i32
    %c0_i32_0 = arith.constant 0 : i32
    %c0_i32_1 = arith.constant 0 : i32
    %c0_i32_2 = arith.constant 0 : i32
    return %c0_i32, %c0_i32_0, %c0_i32_1 : i32, i32, i32
  }
  func.func @transform_18(%arg0: i32) -> (i32, i32, i32) {
    %c0_i32 = arith.constant 0 : i32
    %c0_i32_0 = arith.constant 0 : i32
    %c0_i32_1 = arith.constant 0 : i32
    %c0_i32_2 = arith.constant 0 : i32
    return %c0_i32, %c0_i32_0, %c0_i32_1 : i32, i32, i32
  }
  func.func @transform_19(%arg0: i32) -> (i32, i32, i32) {
    %c0_i32 = arith.constant 0 : i32
    %c0_i32_0 = arith.constant 0 : i32
    %c0_i32_1 = arith.constant 0 : i32
    %c0_i32_2 = arith.constant 0 : i32
    return %c0_i32, %c0_i32_0, %c0_i32_1 : i32, i32, i32
  }
  func.func @transform_20(%arg0: i32) -> (i32, i32) {
    %c0_i32 = arith.constant 0 : i32
    %c0_i32_0 = arith.constant 0 : i32
    %c0_i32_1 = arith.constant 0 : i32
    return %c0_i32, %c0_i32_0 : i32, i32
  }
  func.func @transform_21(%arg0: i32) -> (i32, i32) {
    %c0_i32 = arith.constant 0 : i32
    %c0_i32_0 = arith.constant 0 : i32
    %c0_i32_1 = arith.constant 0 : i32
    return %c0_i32, %c0_i32_0 : i32, i32
  }
  func.func @transform_22(%arg0: i32) -> (i32, i32) {
    %c0_i32 = arith.constant 0 : i32
    %c0_i32_0 = arith.constant 0 : i32
    return %arg0, %c0_i32 : i32, i32
  }
}

</mosaic_0001>

<bundles_post_ra>
// kernel: res_mlp_denoiser.1
= control target key start
LH: loop header
LB: loop body
LE: loop exit
PB: predicated region body
PF: predicated region fallthrough
CT: control target
= control target key end

     0   :  { %s5654_s0 = inlined_call_operand.vmem [shape: f32[16,1], index: 0, kind: input, shape index: {}]   ;;  %s5655_s1 = inlined_call_operand.vmem [shape: f32[16,8], index: 1, kind: input, shape index: {}]   ;;  %s5656_s2 = inlined_call_operand.vmem [shape: f32[16,8], index: 2, kind: input, shape index: {}]   ;;  %s5657_s3 = inlined_call_operand.vmem [shape: f32[2,32], index: 3, kind: input, shape index: {}]   ;;  %s5658_s4 = inlined_call_operand.vmem [shape: bf16[32,32], index: 4, kind: input, shape index: {}]   ;;  %s5659_s5 = inlined_call_operand.hbm [shape: f32[1,32], index: 5, kind: input, shape index: {}]   ;;  %s5660_s6 = inlined_call_operand.vmem [shape: bf16[32,32], index: 6, kind: input, shape index: {}]   ;;  %s5661_s7 = inlined_call_operand.hbm [shape: f32[1,32], index: 7, kind: input, shape index: {}]   ;;  %s5662_s8 = inlined_call_operand.hbm [shape: bf16[8,32], index: 8, kind: input, shape index: {}]   ;;  %s5663_s9 = inlined_call_operand.hbm [shape: f32[1,32], index: 9, kind: input, shape index: {}]   ;;  %s5664_s10 = inlined_call_operand.hbm [shape: bf16[32,32], index: 10, kind: input, shape index: {}]   ;;  %s5665_s11 = inlined_call_operand.hbm [shape: f32[1,32], index: 11, kind: input, shape index: {}]   ;;  %s5666_s12 = inlined_call_operand.vmem [shape: bf16[8,256], index: 12, kind: input, shape index: {}]   ;;  %s5667_s13 = inlined_call_operand.vmem [shape: bf16[32,256], index: 13, kind: input, shape index: {}]   ;;  %s5668_s14 = inlined_call_operand.hbm [shape: bf16[32,256], index: 14, kind: input, shape index: {}]   ;;  %s5669_s15 = inlined_call_operand.hbm [shape: f32[1,256], index: 15, kind: input, shape index: {}]   ;;  %s5670_s16 = inlined_call_operand.hbm [shape: bf16[3,256,256], index: 16, kind: input, shape index: {}]   ;;  %s5671_s17 = inlined_call_operand.vmem [shape: f32[3,1,256], index: 17, kind: input, shape index: {}]   ;;  %s5672_s18 = inlined_call_operand.hbm [shape: bf16[3,256,256], index: 18, kind: input, shape index: {}]   ;;  %s5673_s19 = inlined_call_operand.vmem [shape: f32[3,1,256], index: 19, kind: input, shape index: {}]   ;;  %s5674_s20 = inlined_call_operand.hbm [shape: bf16[256,128], index: 20, kind: input, shape index: {}]   ;;  %s5675_s21 = inlined_call_operand.hbm [shape: f32[1,128], index: 21, kind: input, shape index: {}]   ;;  %s5676_s22 = inlined_call_operand.vmem [shape: bf16[16,128], index: 22, kind: output, shape index: {}]  }
   0x1   :  { %5681 = sst [smem:[#allocation28_spill]] %s5654_s0 }
   0x2   :  { %5682 = sst [smem:[#allocation29_spill]] %s5655_s1 }
   0x3   :  { %5683 = sst [smem:[#allocation30_spill]] %s5656_s2 }
   0x4   :  { %5684 = sst [smem:[#allocation31_spill]] %s5657_s3 }
   0x5   :  { %5685 = sst [smem:[#allocation32_spill]] %s5658_s4 }
   0x6   :  { %5686 = sst [smem:[#allocation33_spill]] %s5659_s5 }
   0x7   :  { %5687 = sst [smem:[#allocation34_spill]] %s5660_s6 }
   0x8   :  { %5688 = sst [smem:[#allocation35_spill]] %s5661_s7 }
   0x9   :  { %5689 = sst [smem:[#allocation36_spill]] %s5662_s8 }
   0xa   :  { %5690 = sst [smem:[#allocation37_spill]] %s5663_s9 }
   0xb   :  { %5691 = sst [smem:[#allocation38_spill]] %s5665_s11 }
   0xc   :  { %5692 = sst [smem:[#allocation39_spill]] %s5669_s15 }
   0xd   :  { %27 = vsyncpa [#allocation3], 0 }
   0xe   :  { %28 = vsyncpa [#allocation5], 0 }
   0xf   :  { %29 = vsyncpa [#allocation8], 0 }
  0x10   :  { %30 = vsyncpa [#allocation11], 0 }
  0x11   :  { %31 = vsyncpa [#allocation14], 0 }
  0x12   :  { %32 = vsyncpa [#allocation17], 0 }
  0x13   :  { %33 = vsyncpa [#allocation20], 0  ;;  %s5290_s3 = smov 0  }
  0x14 LB: > { %s5693_s7 = sld [smem:[#allocation35_spill]]  ;;  %s5299_s4 = sadd.s32 4294967295, %s5150_s3   ;;  %s5150_s3 = sphi %s5290_s3, %s39_s3  }
  0x15   : > { %p3410_p0 = scmp.ge.s32.totalorder %s5150_s3, 1  ;;  %p547_p1 = scmp.lt.s32.totalorder %s5150_s3, 3 }
  0x16   : > { %p4663_p2 = scmp.eq.s32.totalorder %s5299_s4, 0  ;;  %s5152_s23 = smov [#allocation4]  }
  0x17   : > { %p5304_p3 = pnand %p3410_p0, %p547_p1  ;;  %s582_s1 = sshll.u32 %s5152_s23, 4  ;;  %s583_s1 = int_to_ptr.vmem [resolvable:$true] %s582_s1 }
  0x18   : > { %s5695_s9 = sld [smem:[#allocation37_spill]]  ;;  %s5153_s28 = smov [#allocation7]  }
  0x19   : > { %p4626_p4 = pneg %p5304_p3  ;;  %s5696_s11 = sld [smem:[#allocation38_spill]] }
  0x1a   : > { %s580_s30 = sshll.u32 %s5693_s7, 4  ;;  %s606_s29 = sshll.u32 %s5153_s28, 4  ;;  %s581_s30 = int_to_ptr.hbm [resolvable:$true] %s580_s30  ;;  %s607_s29 = int_to_ptr.vmem [resolvable:$true] %s606_s29 }
  0x1b   : > { %p5318_p5 = pnand %p4663_p2, %p4626_p4  ;;  %s5154_s23 = smov [#allocation10]  }
  0x1c   : > { %s632_s5 = sshll.u32 %s5154_s23, 4  ;;  %s5698_s15 = sld [smem:[#allocation39_spill]]  ;;  %s633_s5 = int_to_ptr.vmem [resolvable:$true] %s632_s5 }
  0x1d   : > { %4632 = dma.hbm_to_vmem [thread:$0]  (!%p5318_p5), %s581_s30, 16, %s583_s1, [#allocation5]  }
  0x1e   : > { %s604_s6 = sshll.u32 %s5695_s9, 4  ;;  %s5155_s7 = smov [#allocation13]   ;;  %s605_s6 = int_to_ptr.hbm [resolvable:$true] %s604_s6 }
  0x1f   : > { %s630_s2 = sshll.u32 %s5696_s11, 4  ;;  %s664_s9 = sshll.u32 %s5155_s7, 4  ;;  %s631_s2 = int_to_ptr.hbm [resolvable:$true] %s630_s2  ;;  %s665_s9 = int_to_ptr.vmem [resolvable:$true] %s664_s9 }
  0x20   : > { %4638 = dma.hbm_to_vmem [thread:$0]  (!%p5318_p5), %s605_s6, 16, %s607_s29, [#allocation8]  }
  0x21   : > { %4644 = dma.hbm_to_vmem [thread:$0]  (!%p5318_p5), %s631_s2, 16, %s633_s5, [#allocation11]  }
  0x22   : > { %s662_s26 = sshll.u32 %s5698_s15, 4  ;;  %s690_s30 = sshll.u32 %s5672_s18, 4  ;;  %s663_s26 = int_to_ptr.hbm [resolvable:$true] %s662_s26  ;;  %s691_s30 = int_to_ptr.hbm [resolvable:$true] %s690_s30 }
  0x23   : > { %4650 = dma.hbm_to_vmem [thread:$0]  (!%p5318_p5), %s663_s26, 32, %s665_s9, [#allocation14]  }
  0x24   : > { %s5156_s1 = smov [#allocation16]   ;;  %s5699_s24 = sld [smem:[#allocation33_spill]] }
  0x25   : > { %s692_s6 = sshll.u32 %s5156_s1, 4  ;;  %s5679_s2 = smov 128   ;;  %s693_s6 = int_to_ptr.vmem [resolvable:$true] %s692_s6 }
  0x26   : > { %s5158_s7 = smov 8   ;;  %s5700_s8 = sld [smem:[#allocation36_spill]] }
  0x27   : > { %4656 = dma.hbm_to_vmem [thread:$0]  (!%p5318_p5), %s691_s30, 12288, %s693_s6, [#allocation17], %s5679_s2, %s5679_s2, %s5158_s7  }
  0x28   : > { %s5159_s26 = smov [#allocation2]   ;;  %s5160_s1 = smov [#allocation6]  }
  0x29   : > { %s567_s28 = sshll.u32 %s5159_s26, 4  ;;  %s594_s29 = sshll.u32 %s5160_s1, 4  ;;  %s568_s28 = int_to_ptr.vmem [resolvable:$true] %s567_s28  ;;  %s595_s29 = int_to_ptr.vmem [resolvable:$true] %s594_s29 }
  0x2a   : > { %s565_s25 = sshll.u32 %s5699_s24, 4  ;;  %s615_s15 = sshll.u32 %s5664_s10, 4  ;;  %s566_s25 = int_to_ptr.hbm [resolvable:$true] %s565_s25  ;;  %s616_s15 = int_to_ptr.hbm [resolvable:$true] %s615_s15 }
  0x2b   : > { %4629 = dma.hbm_to_vmem [thread:$0]  (!%p5318_p5), %s566_s25, 16, %s568_s28, [#allocation3]  }
  0x2c   : > { %s592_s9 = sshll.u32 %s5700_s8, 4  ;;  %s5161_s30 = smov [#allocation9]   ;;  %s593_s9 = int_to_ptr.hbm [resolvable:$true] %s592_s9 }
  0x2d   : > { %4635 = dma.hbm_to_vmem [thread:$0]  (!%p5318_p5), %s593_s9, 64, %s595_s29, [#allocation5]  }
  0x2e   : > { %s617_s6 = sshll.u32 %s5161_s30, 4  ;;  %s647_s26 = sshll.u32 %s5668_s14, 4  ;;  %s618_s6 = int_to_ptr.vmem [resolvable:$true] %s617_s6  ;;  %s648_s26 = int_to_ptr.hbm [resolvable:$true] %s647_s26 }
  0x2f   : > { %s5162_s25 = smov 64   ;;  %s5163_s28 = smov 4  }
  0x30   : > { %4641 = dma.hbm_to_vmem [thread:$0]  (!%p5318_p5), %s616_s15, 256, %s618_s6, [#allocation8], %s5162_s25, %s5162_s25, %s5163_s28  }
  0x31   : > { %s5164_s1 = smov [#allocation12]   ;;  %s673_s9 = sshll.u32 %s5670_s16, 4  ;;  %s674_s9 = int_to_ptr.hbm [resolvable:$true] %s673_s9 }
  0x32   : > { %s649_s23 = sshll.u32 %s5164_s1, 4  ;;  %s5701_s29 = smov 128   ;;  %s650_s23 = int_to_ptr.vmem [resolvable:$true] %s649_s23 }
  0x33   : > { %4647 = dma.hbm_to_vmem [thread:$0]  (!%p5318_p5), %s648_s26, 512, %s650_s23, [#allocation11], %s5701_s29, %s5701_s29, %s5158_s7  }
  0x34   : > { %s707_s15 = sshll.u32 %s5674_s20, 4  ;;  %s5165_s6 = smov [#allocation15]   ;;  %s708_s15 = int_to_ptr.hbm [resolvable:$true] %s707_s15 }
  0x35   : > { %s675_s5 = sshll.u32 %s5165_s6, 4  ;;  %s5166_s2 = smov [#allocation18]   ;;  %s676_s5 = int_to_ptr.vmem [resolvable:$true] %s675_s5 }
  0x36   : > { %4653 = dma.hbm_to_vmem [thread:$0]  (!%p5318_p5), %s674_s9, 12288, %s676_s5, [#allocation14], %s5701_s29, %s5701_s29, %s5158_s7  }
  0x37   : > { %s709_s1 = sshll.u32 %s5166_s2, 4  ;;  %s722_s26 = sshll.u32 %s5675_s21, 4  ;;  %s710_s1 = int_to_ptr.vmem [resolvable:$true] %s709_s1  ;;  %s723_s26 = int_to_ptr.hbm [resolvable:$true] %s722_s26 }
  0x38   : > { %4659 = dma.hbm_to_vmem [thread:$0]  (!%p5318_p5), %s708_s15, 2048, %s710_s1, [#allocation17], %s5162_s25, %s5162_s25, %s5163_s28  }
  0x39   : > { %s5167_s23 = smov [#allocation19]   ;;  %758 = sbr.rel (%p5304_p3) target bundleno = 1782 (0x6f6), region = 108 }
  0x3a   : > { %s724_s30 = sshll.u32 %s5167_s23, 4  ;;  %s725_s30 = int_to_ptr.vmem [resolvable:$true] %s724_s30 }
  0x3b   : > { %4662 = dma.hbm_to_vmem [thread:$0]  (!%p5318_p5), %s723_s26, 16, %s725_s30, [#allocation20]  }
  0x3e   : > { %5121 = dma.done.wait (%p4663_p2), [#allocation3], 16  }
  0x3f   : > { %5123 = vsyncadd (%p4663_p2), [#allocation3], 4294967280 }
  0x40   : > { %5125 = dma.done.wait (%p4663_p2), [#allocation5], 80  }
  0x41   : > { %5127 = vsyncadd (%p4663_p2), [#allocation5], 4294967216 }
  0x42   : > { %5129 = dma.done.wait (%p4663_p2), [#allocation8], 272  }
  0x43   : > { %5131 = vsyncadd (%p4663_p2), [#allocation8], 4294967024 }
  0x44   : > { %5133 = dma.done.wait (%p4663_p2), [#allocation11], 528  }
  0x45   : > { %5135 = vsyncadd (%p4663_p2), [#allocation11], 4294966768 }
  0x46   : > { %5137 = dma.done.wait (%p4663_p2), [#allocation14], 12320  }
  0x47   : > { %5139 = vsyncadd (%p4663_p2), [#allocation14], 4294954976 }
  0x48   : > { %5141 = dma.done.wait (%p4663_p2), [#allocation17], 14336  }
  0x49   : > { %5143 = vsyncadd (%p4663_p2), [#allocation17], 4294952960 }
  0x4a   : > { %5145 = dma.done.wait (%p4663_p2), [#allocation20], 16  }
  0x4b   : > { %5147 = vsyncadd (%p4663_p2), [#allocation20], 4294967280  ;;  %p882_p6 = scmp.lt.s32.totalorder %s5299_s4, 1  ;;  %v5168_v0 = vmov 0   ;;  %s5702_s7 = sld [smem:[#allocation28_spill]]  ;;  %vm1171_vm0 = vcmask 1043456  }
  0x4c   : > { %4718 = vset.pattern.permute.xlu0 %v5168_v0  ;;  %s5703_s29 = sld [smem:[#allocation30_spill]]  ;;  %v1161_v2 = vld [vmem:[#allocation6] sm:$0xf]  ;;  %vm1167_vm1 = vcmask 64512   ;;  %v5169_v25 = vmov 683565275  }
  0x4d   : > { %s5709_s4 = smov (!%p882_p6, %s5299_s4), 1  ;;  %v1173_v3 = vsel %vm1171_vm0, %v1161_v2, 0  ;;  %s5704_s5 = sld [smem:[#allocation31_spill]]  ;;  %v5170_v27 = vmov 2475754826  }
  0x4e   : > { %s5418_s8 = sshll.u32 %s5709_s4, 3  ;;  %1182 = vmatpush.bf16.msra.mxu2 %v1173_v3  ;;  %s5705_s24 = sld [smem:[#allocation32_spill]]  ;;  %v5171_v30 = vmov 2131351028   ;;  %v5172_v33 = vmov 2102212464  }
  0x4f   : > { %v5173_v36 = vmov 920167782   ;;  %v5174_v39 = vmov 1326507024   ;;  %s5706_s27 = sld [smem:[#allocation34_spill]] }
  0x50   : > { %s5707_s23 = sld [smem:[#allocation29_spill]] }
  0x51   : > { %s885_s25 = scalar_lea.vmem %s5702_s7, %s5418_s8 }
  0x52   : > { %v900_v1 = vld [vmem:[%s885_s25] sm:$0xff]  ;;  %s893_s11 = scalar_lea.vmem %s5703_s29, %s5418_s8 }
  0x53   : > { %903 = vperm.xlu0 %4718, %v900_v1   ;;  %v1160_v4 = vld [vmem:[%s893_s11] sm:$0xff]  ;;  %s3440_s11 = sshll.u32 %s5709_s4, 2 }
  0x54   : > { %v1162_v5 = vpack.c.bf16 %v1160_v4, %v1160_v4  ;;  %v899_v6 = vld [vmem:[%s5704_s5] sm:$0x3]  ;;  %v4357_v11 = vld [vmem:[%s5705_s24 + $0x8] sm:$0xff]  ;;  %s897_s6 = scalar_lea.vmem %s5676_s22, %s3440_s11 }
  0x55   : > { %v906_v7 = vperm.slane %v899_v6, 0  ;;  %v908_v8 = vperm.slane %v899_v6, 1  ;;  %1096 = vmatpush.bf16.msra.mxu0 %v4357_v11  ;;  %v4356_v13 = vld [vmem:[%s5705_s24] sm:$0xff] }
  0x56   : > { %3463 = vmatmul.msk.bf16.vlgmr.msra.gmra.mxu2 %vm1167_vm1, %v1162_v5  ;;  %s889_s30 = scalar_lea.vmem %s5707_s23, %s5418_s8 }
  0x59   : > { %1097 = vmatpush.bf16.msra.mxu0 %v4356_v13 }
  0xc5   : > { %v904_v9 = vpop.permute.xlu0 %903 }
  0xc6   : > { %v907_v10 = vmul.f32 %v906_v7, %v904_v9 }
  0xc8   : > { %v5436_v12 = vadd.f32 %v908_v8, %v907_v10 }
  0xca   : > { %v913_v14 = vand.u32 2139095040, %v5436_v12  ;;  %v910_v17 = vand.u32 2147483647, %v5436_v12  ;;  %vm912_vm14 = vcmp.lt.s32.totalorder %v5436_v12, 0 }
  0xcc   : > { %v914_v15 = vshrl.u32 %v913_v14, 23  ;;  %v917_v19 = vand.u32 8388607, %v910_v17  ;;  %vm911_vm15 = vcmp.le.f32.partialorder %v910_v17, 0.7853982 }
  0xce   : > { %v3441_v16 = vadd.s32 4294967169, %v914_v15  ;;  %v918_v23 = vor.u32 8388608, %v917_v19 }
  0xd0   : > { %v920_v18 = vadd.s32 1, %v3441_v16  ;;  %v5456_v46 = vshll.u32 %v918_v23, 8 }
  0xd2   : > { %vm921_vm2 = vcmp.gt.s32.totalorder %v920_v18, 0  ;;  %v959_v55 = vand.u32 65535, %v5456_v46  ;;  %v960_v60 = vshrl.u32 %v5456_v46, 16 }
  0xd3   : > { %v922_v20 = vsel %vm921_vm2, %v920_v18, 0 }
  0xd4   : > { %v924_v21 = vand.u32 31, %v922_v20  ;;  %v5447_v24 = vshrl.u32 %v922_v20, 5 }
  0xd6   : > { %v5445_v22 = vsub.s32 32, %v924_v21  ;;  %v927_v26 = vshll.u32 %v5169_v25, %v924_v21  ;;  %v930_v28 = vshll.u32 %v5170_v27, %v924_v21  ;;  %v933_v32 = vshll.u32 %v5171_v30, %v924_v21 }
  0xd7   : > { %v936_v35 = vshll.u32 %v5172_v33, %v924_v21  ;;  %v939_v38 = vshll.u32 %v5173_v36, %v924_v21  ;;  %vm942_vm3 = vcmp.lt.s32.totalorder %v5447_v24, 1  ;;  %vm945_vm4 = vcmp.lt.s32.totalorder %v5447_v24, 4 }
  0xd8   : > { %v928_v29 = vshrl.u32 %v5170_v27, %v5445_v22  ;;  %v931_v31 = vshrl.u32 %v5171_v30, %v5445_v22  ;;  %v934_v34 = vshrl.u32 %v5172_v33, %v5445_v22  ;;  %v937_v37 = vshrl.u32 %v5173_v36, %v5445_v22 }
  0xd9   : > { %v940_v40 = vshrl.u32 %v5174_v39, %v5445_v22  ;;  %vm944_vm5 = vcmp.lt.s32.totalorder %v5447_v24, 3  ;;  %vm943_vm6 = vcmp.lt.s32.totalorder %v5447_v24, 2  ;;  %v926_v19 = vshrl.u32 %v5169_v25, %v5445_v22 }
  0xda   : > { %v929_v41 = vor.u32 %v928_v29, %v927_v26  ;;  %v932_v42 = vor.u32 %v931_v31, %v930_v28  ;;  %v935_v43 = vor.u32 %v934_v34, %v933_v32  ;;  %v938_v44 = vor.u32 %v937_v37, %v936_v35 }
  0xdb   : > { %v941_v45 = vor.u32 %v940_v40, %v939_v38 }
  0xdc   : > { %v950_v47 = vsel %vm942_vm3, %v929_v41, %v932_v42  ;;  %v954_v48 = vsel %vm942_vm3, %v932_v42, %v935_v43  ;;  %v951_v49 = vsel %vm945_vm4, %v938_v44, 920167782  ;;  %v947_v13 = vsel %vm945_vm4, %v935_v43, 2102212464 }
  0xdd   : > { %v955_v50 = vsel %vm945_vm4, %v941_v45, 1326507024  ;;  %v952_v51 = vsel %vm944_vm5, %v935_v43, %v951_v49  ;;  %v946_v29 = vsel %vm942_vm3, %v926_v19, %v929_v41  ;;  %v948_v30 = vsel %vm944_vm5, %v932_v42, %v947_v13 }
  0xde   : > { %v956_v52 = vsel %vm944_vm5, %v938_v44, %v955_v50  ;;  %v953_v53 = vsel %vm943_vm6, %v950_v47, %v952_v51  ;;  %v949_v22 = vsel %vm943_vm6, %v946_v29, %v948_v30  ;;  %vm1053_vm5 = vweird.f32 %v5436_v12  ;;  %v4719_v30 = vld [vmem:[#allocation7] ss:$0 sm:$0xff] }
  0xdf   : > { %v957_v54 = vsel %vm943_vm6, %v954_v48, %v956_v52  ;;  %v983_v58 = vand.u32 65535, %v953_v53  ;;  %v984_v59 = vshrl.u32 %v953_v53, 16  ;;  %v1003_v37 = vmul.u32 %v5456_v46, %v949_v22  ;;  %v4360_v22 = vld [vmem:[#allocation9] sm:$0xff] }
  0xe0   : > { %v961_v56 = vand.u32 65535, %v957_v54  ;;  %v962_v57 = vshrl.u32 %v957_v54, 16  ;;  %vm1086_vm6 = vcmask 261120  }
  0xe1   : > { %v986_v62 = vmul.u32 %v984_v59, %v959_v55  ;;  %v987_v1 = vmul.u32 %v983_v58, %v960_v60  ;;  %v985_v4 = vmul.u32 %v983_v58, %v959_v55  ;;  %v988_v7 = vmul.u32 %v984_v59, %v960_v60 }
  0xe2   : > { %v964_v61 = vmul.u32 %v962_v57, %v959_v55  ;;  %v965_v63 = vmul.u32 %v961_v56, %v960_v60  ;;  %v963_v2 = vmul.u32 %v961_v56, %v959_v55  ;;  %v966_v6 = vmul.u32 %v962_v57, %v960_v60 }
  0xe3   : > { %v989_v5 = vshll.u32 %v986_v62, 16  ;;  %v991_v9 = vshll.u32 %v987_v1, 16  ;;  %v990_v27 = vshrl.u32 %v986_v62, 16  ;;  %v992_v33 = vshrl.u32 %v987_v1, 16 }
  0xe4   : > { %v967_v3 = vshll.u32 %v964_v61, 16  ;;  %v969_v8 = vshll.u32 %v965_v63, 16  ;;  %v968_v23 = vshrl.u32 %v964_v61, 16  ;;  %v970_v31 = vshrl.u32 %v965_v63, 16 }
  0xe5   : > { %vm993_vm8 = vc.u32 %v985_v4, %v989_v5  ;;  %v995_v11 = vadd.s32 %v989_v5, %v985_v4 }
  0xe6   : > { %vm971_vm7 = vc.u32 %v963_v2, %v967_v3  ;;  %v973_v10 = vadd.s32 %v967_v3, %v963_v2  ;;  %v994_v15 = vsel %vm993_vm8, 1, %v5168_v0 }
  0xe7   : > { %v972_v14 = vsel %vm971_vm7, 1, %v5168_v0  ;;  %v996_v18 = vadd.s32 %v994_v15, %v988_v7  ;;  %vm997_vm10 = vc.u32 %v995_v11, %v991_v9  ;;  %v999_v35 = vadd.s32 %v995_v11, %v991_v9 }
  0xe8   : > { %v974_v16 = vadd.s32 %v972_v14, %v966_v6  ;;  %vm975_vm9 = vc.u32 %v973_v10, %v969_v8  ;;  %v998_v21 = vsel %vm997_vm10, 1, %v5168_v0 }
  0xe9   : > { %v976_v20 = vsel %vm975_vm9, 1, %v5168_v0  ;;  %v1000_v28 = vadd.s32 %v998_v21, %v996_v18 }
  0xea   : > { %v978_v26 = vadd.s32 %v976_v20, %v974_v16 }
  0xeb   : > { %v1001_v34 = vadd.s32 %v1000_v28, %v990_v27 }
  0xec   : > { %v979_v32 = vadd.s32 %v978_v26, %v968_v23 }
  0xed   : > { %v1002_v0 = vadd.s32 %v1001_v34, %v992_v33  ;;  %v4361_v33 = vld [vmem:[#allocation9 + $0x8] sm:$0xff] }
  0xee   : > { %v980_v25 = vadd.s32 %v979_v32, %v970_v31  ;;  %v1184_v31 = vpop.f32.mrf.mxu2  ;;  %1238 = vmatpush.bf16.msra.mxu3 %v4361_v33  ;;  %v3498_v33 = vld [vmem:[#allocation12 + $0x8] sm:$0xf0] }
  0xef   : > { %v1006_v36 = vadd.s32 1, %v1002_v0  ;;  %v1185_v32 = vadd.f32 %v4719_v30, %v1184_v31  ;;  %v3506_v30 = vld [vmem:[#allocation12 + $0x18] sm:$0xf0] }
  0xf0   : > { %vm1005_vm11 = vc.u32 %v980_v25, %v999_v35  ;;  %v1004_v49 = vadd.s32 %v999_v35, %v980_v25 }
  0xf1   : > { %v1007_v38 = vsel %vm1005_vm11, %v1006_v36, %v1002_v0  ;;  %v3464_v34 = vmul.f32 -1.442695, %v1185_v32 }
  0xf2   : > { %v1008_v39 = vadd.s32 %v1007_v38, %v1003_v37  ;;  %1239 = vmatpush.bf16.msra.mxu3 %v4360_v22  ;;  %v4721_v22 = vld [vmem:[#allocation10] ss:$0 sm:$0xff] }
  0xf3   : > { %4724 = vpow2.f32 %v3464_v34 }
  0xf4   : > { %v1009_v40 = vadd.s32 536870912, %v1008_v39 }
  0xf6   : > { %v1010_v41 = vshrl.u32 %v1009_v40, 30  ;;  %v1186_v25 = vpop.f32.mrf.mxu2 }
  0xf7   : > { %v3504_v25 = vld [vmem:[#allocation12 + $0x10] sm:$0xf] }
  0xf8   : > { %v1011_v43 = vshll.u32 %v1010_v41, 30  ;;  %v1034_v62 = vsub.s32 4, %v1010_v41 }
  0xf9   : > { %v4725_v35 = vpop.eup %4724 }
  0xfa   : > { %v1012_v42 = vsub.s32 %v1008_v39, %v1011_v43  ;;  %v1035_v4 = vsel %vm912_vm14, %v1034_v62, %v1010_v41  ;;  %v1191_v0 = vadd.f32 1.0, %v4725_v35  ;;  %v4369_v35 = vld [vmem:[#allocation12 + $0x14] sm:$0xf0] }
  0xfb   : > { %v1037_v7 = vsel %vm911_vm15, 0, %v1035_v4 }
  0xfc   : > { %vm1013_vm12 = vcmp.lt.s32.totalorder %v1012_v42, 0  ;;  %v1014_v44 = vsub.s32 0, %v1012_v42  ;;  %v1054_v13 = vadd.s32 3, %v1037_v7  ;;  %4726 = vrcp.f32 %v1191_v0  ;;  %v4362_v7 = vld [vmem:[%s5667_s13 + $0x4] sm:$0xf] }
  0xfd   : > { %v1203_v37 = vand.u32 2147483648, %v1191_v0  ;;  %vm1197_vm7 = vweird.f32 %v1191_v0  ;;  %v1201_v39 = vand.u32 2147483647, %v1191_v0 }
  0xfe   : > { %v1015_v45 = vsel %vm1013_vm12, %v1014_v44, %v1012_v42  ;;  %v1055_v18 = vand.u32 3, %v1054_v13 }
  0xff   : > { %v1016_v47 = vclz %v1015_v45  ;;  %v1204_v41 = vor.u32 1.1754944e-38, %v1203_v37  ;;  %vm1202_vm10 = vcmp.eq.f32.partialorder %v1201_v39, 8.507059e+37  ;;  %v4367_v39 = vld [vmem:[#allocation12 + $0x4] sm:$0xf0] }
 0x100   : > { %vm1057_vm2 = vcmp.eq.s32.totalorder %v1055_v18, 0  ;;  %vm1060_vm3 = vcmp.eq.s32.totalorder %v1055_v18, 2  ;;  %vm1056_vm4 = vcmp.lt.s32.totalorder %v1055_v18, 2 }
 0x101   : > { %v3442_v48 = vadd.s32 4294967294, %v1016_v47 }
 0x103   : > { %vm3443_vm13 = vcmp.lt.s32.totalorder %v3442_v48, 0 }
 0x104   : > { %v1019_v24 = vsel %vm3443_vm13, 0, %v3442_v48  ;;  %v4359_v48 = vld [vmem:[%s5706_s27 + $0x8] sm:$0xff] }
 0x105   : > { %v1020_v50 = vsub.s32 32, %v1019_v24  ;;  %v1024_v51 = vsub.s32 4294967266, %v1019_v24  ;;  %v1021_v52 = vshll.u32 %v1012_v42, %v1019_v24  ;;  %v4720_v24 = vld [vmem:[#allocation2] ss:$0 sm:$0xff]  ;;  %1153 = vmatpush.bf16.msra.mxu1 %v4359_v48 }
 0x107   : > { %v1022_v53 = vshrl.u32 %v1004_v49, %v1020_v50  ;;  %v1025_v54 = vadd.s32 127, %v1024_v51  ;;  %v4358_v50 = vld [vmem:[%s5706_s27] sm:$0xff] }
 0x109   : > { %v1023_v46 = vor.u32 %v1022_v53, %v1021_v52  ;;  %v1026_v55 = vshll.u32 %v1025_v54, 23  ;;  %1154 = vmatpush.bf16.msra.mxu1 %v4358_v50  ;;  %v3484_v53 = vld [vmem:[%s5667_s13 + $0x10] sm:$0xf]  ;;  %v4365_v54 = vld [vmem:[%s5667_s13 + $0x14] sm:$0xf0] }
 0x10a   : > { %v4400_v50 = vld [vmem:[#allocation15 + $0xf4] sm:$0xf] }
 0x10b   : > { %v1027_v56 = vor.u32 4788187, %v1026_v55  ;;  %v1030_v58 = vcvt.s32.f32 %v1023_v46  ;;  %v3485_v46 = vor.u32 %v4365_v54, %v3484_v53  ;;  %v3626_v53 = vld [vmem:[#allocation15 + $0xe0] sm:$0xf]  ;;  %v4399_v54 = vld [vmem:[#allocation15 + $0xe4] sm:$0xf0] }
 0x10d   : > { %v1028_v57 = vand.u32 2147483647, %v1027_v56  ;;  %1282 = vmatpush.bf16.msrb.mxu2 %v3485_v46 }
 0x10f   : > { %v1031_v59 = vmul.f32 %v1030_v58, %v1028_v57 }
 0x111   : > { %v1032_v60 = vxor.u32 2147483648, %v1031_v59 }
 0x113   : > { %v1033_v61 = vsel %vm912_vm14, %v1032_v60, %v1031_v59 }
 0x114   : > { %v1036_v63 = vsel %vm911_vm15, %v5436_v12, %v1033_v61  ;;  %v4727_v12 = vpop.eup %4726 }
 0x115   : > { %v1038_v1 = vmul.f32 %v1036_v63, %v1036_v63  ;;  %v1193_v36 = vmul.f32 %v4727_v12, %v1191_v0  ;;  %vm1198_vm8 = vweird.f32 %v4727_v12 }
 0x116   : > { %vm1199_vm9 = vmor %vm1197_vm7, %vm1198_vm8 }
 0x117   : > { %v1039_v2 = vmul.f32 -0.001358992, %v1038_v1  ;;  %v1046_v3 = vmul.f32 -0.00019511016, %v1038_v1  ;;  %v1194_v38 = vsub.f32 1.0, %v1193_v36  ;;  %v3505_v36 = vor.u32 %v4369_v35, %v3504_v25 }
 0x118   : > { %v3602_v35 = vld [vmem:[#allocation15 + $0xb0] sm:$0xf] }
 0x119   : > { %v1040_v5 = vadd.f32 0.041655596, %v1039_v2  ;;  %v1047_v6 = vadd.f32 0.008332121, %v1046_v3  ;;  %v1195_v40 = vmul.f32 %v4727_v12, %v1194_v38  ;;  %v4363_v2 = vld [vmem:[%s5667_s13 + $0x4] sm:$0xf0] }
 0x11a   : > { %v3496_v38 = vld [vmem:[#allocation12] sm:$0xf] }
 0x11b   : > { %v1041_v8 = vmul.f32 %v1040_v5, %v1038_v1  ;;  %v1048_v9 = vmul.f32 %v1047_v6, %v1038_v1  ;;  %v1196_v43 = vadd.f32 %v4727_v12, %v1195_v40  ;;  %v4364_v5 = vld [vmem:[%s5667_s13 + $0x14] sm:$0xf]  ;;  %v3486_v6 = vld [vmem:[%s5667_s13 + $0x18] sm:$0xf0]  ;;  %v3497_v40 = vor.u32 %v4367_v39, %v3496_v38  ;;  %v3538_v39 = vld [vmem:[#allocation15 + $0x30] sm:$0xf] }
 0x11d   : > { %v1042_v10 = vadd.f32 -0.4999988, %v1041_v8  ;;  %v1049_v11 = vadd.f32 -0.16666654, %v1048_v9  ;;  %v1200_v42 = vsel %vm1199_vm9, %v4727_v12, %v1196_v43  ;;  %v3489_v9 = vor.u32 %v4364_v5, %v3486_v6  ;;  %v4722_v43 = vld [vmem:[#allocation4] ss:$0 sm:$0xff] }
 0x11e   : > { %v1205_v44 = vsel %vm1202_vm10, %v1204_v41, %v1200_v42  ;;  %v4396_v5 = vld [vmem:[#allocation15 + $0xd4] sm:$0xf]  ;;  %v3620_v6 = vld [vmem:[#allocation15 + $0xd8] sm:$0xf0] }
 0x11f   : > { %v1043_v14 = vmul.f32 %v1042_v10, %v1038_v1  ;;  %v1050_v15 = vmul.f32 %v1049_v11, %v1038_v1  ;;  %v1207_v45 = vmul.f32 %v1205_v44, %v1185_v32  ;;  %v3476_v1 = vld [vmem:[%s5667_s13] sm:$0xf]  ;;  %v3478_v10 = vld [vmem:[%s5667_s13 + $0x8] sm:$0xf0]  ;;  %1295 = vmatpush.bf16.msrb.mxu0 %v3489_v9 }
 0x120   : > { %v3477_v3 = vor.u32 %v4363_v2, %v3476_v1  ;;  %v1246_v11 = vld [vmem:[%s5666_s12] sm:$0xff]  ;;  %v3481_v18 = vor.u32 %v4362_v7, %v3478_v10 }
 0x121   : > { %v1044_v16 = vadd.f32 1.0, %v1043_v14  ;;  %v1051_v17 = vadd.f32 1.0, %v1050_v15  ;;  %v1212_v47 = vpack.c.bf16 %v1207_v45, %v1207_v45  ;;  %v1303_v14 = vunpack.c.l.b16 %v1246_v11  ;;  %v4366_v32 = vld [vmem:[#allocation12 + $0x4] sm:$0xf] }
 0x122   : > { %1283 = vmatpush.bf16.msrb.mxu2 %v3477_v3  ;;  %v1304_v15 = vunpack.c.h.b16 %v1246_v11  ;;  %v3501_v34 = vor.u32 %v4366_v32, %v3498_v33  ;;  %v3618_v3 = vld [vmem:[#allocation15 + $0xd0] sm:$0xf]  ;;  %v3562_v7 = vld [vmem:[#allocation15 + $0x60] sm:$0xf]  ;;  %v4382_v10 = vld [vmem:[#allocation15 + $0x64] sm:$0xf] }
 0x123   : > { %v1052_v19 = vmul.f32 %v1051_v17, %v1036_v63  ;;  %v1061_v20 = vxor.u32 2147483648, %v1044_v16  ;;  %3473 = vmatmul.msk.bf16.vlgmr.msra.gmra.mxu3 %vm1086_vm6, %v1212_v47  ;;  %1296 = vmatpush.bf16.msrb.mxu0 %v3481_v18  ;;  %v3564_v11 = vld [vmem:[#allocation15 + $0x68] sm:$0xf0]  ;;  %v3554_v18 = vld [vmem:[#allocation15 + $0x50] sm:$0xf] }
 0x124   : > { %v4379_v33 = vld [vmem:[#allocation15 + $0x44] sm:$0xf0] }
 0x125   : > { %v1058_v21 = vxor.u32 2147483648, %v1052_v19  ;;  %v1062_v26 = vsel %vm1060_vm3, %v1061_v20, %v1052_v19  ;;  %v1306_v20 = vpack.c.b16 %v1304_v15, %v1304_v15  ;;  %v3610_v15 = vld [vmem:[#allocation15 + $0xc0] sm:$0xf] }
 0x127   : > { %v1059_v23 = vsel %vm1057_vm2, %v1044_v16, %v1058_v21  ;;  %v1245_v16 = vld [vmem:[%s889_s30] sm:$0xff]  ;;  %v1305_v21 = vpack.c.b16 %v1303_v14, %v1303_v14  ;;  %v3567_v14 = vor.u32 %v4382_v10, %v3564_v11  ;;  %v3580_v11 = vld [vmem:[#allocation15 + $0x88] sm:$0xf0] }
 0x128   : > { %v1063_v27 = vsel %vm1056_vm4, %v1059_v23, %v1062_v26  ;;  %v1247_v23 = vpack.c.bf16 %v1245_v16, %v1245_v16  ;;  %v4395_v16 = vld [vmem:[#allocation15 + $0xc4] sm:$0xf0] }
 0x129   : > { %v1064_v28 = vsel %vm1053_vm5, nan, %v1063_v27  ;;  %v1314_v27 = vsel %vm1171_vm0, %v1306_v20, 0  ;;  %v4380_v20 = vld [vmem:[#allocation15 + $0x54] sm:$0xf]  ;;  %v3611_v32 = vor.u32 %v4395_v16, %v3610_v15  ;;  %v4373_v15 = vld [vmem:[#allocation15 + $0x14] sm:$0xf0] }
 0x12a   : > { %v1069_v29 = vpack.c.bf16 %v1064_v28, %v1064_v28  ;;  %v1311_v28 = vsel %vm1171_vm0, %v1305_v21, 0  ;;  %1336 = vmatpush.bf16.msrb.mxu3 %v1314_v27  ;;  %v3556_v27 = vld [vmem:[#allocation15 + $0x58] sm:$0xf0]  ;;  %v4372_v16 = vld [vmem:[#allocation15 + $0x14] sm:$0xf] }
 0x12b   : > { %1323 = vmatpush.bf16.msra.mxu2 %v1311_v28 }
 0x12c   : > { %3452 = vmatmul.msk.bf16.vlgmr.msra.gmra.mxu0 %vm1086_vm6, %v1069_v29  ;;  %v4368_v29 = vld [vmem:[#allocation12 + $0x14] sm:$0xf] }
 0x12d   : > { %v3509_v31 = vor.u32 %v4368_v29, %v3506_v30  ;;  %v3559_v30 = vor.u32 %v4380_v20, %v3556_v27  ;;  %v3514_v20 = vld [vmem:[#allocation15] sm:$0xf]  ;;  %v3516_v27 = vld [vmem:[#allocation15 + $0x8] sm:$0xf0] }
 0x12f   : > { %1389 = vmatpush.bf16.msra.mxu0 %v3509_v31  ;;  %v3546_v31 = vld [vmem:[#allocation15 + $0x40] sm:$0xf] }
 0x133   : > { %3493 = vmatmul.msk.bf16.vlgmr.msrb.gmra.mxu3 %vm1167_vm1, %v1247_v23  ;;  %1390 = vmatpush.bf16.msra.mxu0 %v3501_v34  ;;  %v4378_v34 = vld [vmem:[#allocation15 + $0x44] sm:$0xf] }
 0x1a6   : > { %v1241_v0 = vpop.f32.mrf.mxu3 }
 0x1a7   : > { %v1242_v12 = vadd.f32 %v4721_v22, %v1241_v0  ;;  %v3548_v22 = vld [vmem:[#allocation15 + $0x48] sm:$0xf0]  ;;  %v4393_v0 = vld [vmem:[#allocation15 + $0xb4] sm:$0xf0] }
 0x1a8   : > { %v3551_v38 = vor.u32 %v4378_v34, %v3548_v22 }
 0x1a9   : > { %v1099_v49 = vpop.f32.mrf.mxu0  ;;  %v1252_v37 = vpack.c.bf16 %v1242_v12, %v1242_v12  ;;  %v4392_v12 = vld [vmem:[#allocation15 + $0xb4] sm:$0xf] }
 0x1aa   : > { %v1100_v51 = vadd.f32 %v4720_v24, %v1099_v49  ;;  %v3634_v24 = vld [vmem:[#allocation15 + $0xf0] sm:$0xf]  ;;  %v4401_v49 = vld [vmem:[#allocation15 + $0xf4] sm:$0xf0] }
 0x1ab   : > { %3490 = vmatmul.msk.bf16.vlgmr.msrb.gmra.mxu2 %vm1086_vm6, %v1252_v37  ;;  %3491 = vmatmul.msk.bf16.vlgmr.msrb.gmra.mxu0 %vm1086_vm6, %v1252_v37  ;;  %v3547_v37 = vor.u32 %v4379_v33, %v3546_v31 }
 0x1ac   : > { %v3453_v52 = vmul.f32 -1.442695, %v1100_v51  ;;  %1376 = vmatpush.bf16.msrb.mxu2 %v3505_v36  ;;  %v3604_v36 = vld [vmem:[#allocation15 + $0xb8] sm:$0xf0] }
 0x1ae   : > { %4728 = vpow2.f32 %v3453_v52  ;;  %v1243_v41 = vpop.f32.mrf.mxu3  ;;  %v3636_v52 = vld [vmem:[#allocation15 + $0xf8] sm:$0xf0] }
 0x1af   : > { %v3603_v41 = vor.u32 %v4393_v0, %v3602_v35 }
 0x1b0   : > { %1377 = vmatpush.bf16.msrb.mxu2 %v3497_v40 }
 0x1b1   : > { %v1101_v55 = vpop.f32.mrf.mxu0 }
 0x1b2   : > { %v3639_v55 = vor.u32 %v4400_v50, %v3636_v52  ;;  %v3596_v50 = vld [vmem:[#allocation15 + $0xa8] sm:$0xf0] }
 0x1b4   : > { %v4729_v56 = vpop.eup %4728  ;;  %1645 = vmatpush.bf16.msrb.mxu0 %v3639_v55 }
 0x1b5   : > { %v1106_v57 = vadd.f32 1.0, %v4729_v56  ;;  %v4398_v56 = vld [vmem:[#allocation15 + $0xe4] sm:$0xf] }
 0x1b6   : > { %v1338_v48 = vpop.f32.mrf.mxu3 }
 0x1b7   : > { %4730 = vrcp.f32 %v1106_v57  ;;  %v1118_v61 = vand.u32 2147483648, %v1106_v57  ;;  %v1116_v63 = vand.u32 2147483647, %v1106_v57  ;;  %vm1112_vm12 = vweird.f32 %v1106_v57 }
 0x1b9   : > { %v1119_v8 = vor.u32 1.1754944e-38, %v1118_v61  ;;  %vm1117_vm14 = vcmp.eq.f32.partialorder %v1116_v63, 8.507059e+37  ;;  %v4384_v61 = vld [vmem:[#allocation15 + $0x74] sm:$0xf] }
 0x1bb   : > { %3492 = vmatmul.msk.bf16.vlgmr.msra.gmra.mxu2 %vm1167_vm1, %v1247_v23  ;;  %v4394_v23 = vld [vmem:[#allocation15 + $0xc4] sm:$0xf] }
 0x1bd   : > { %v4731_v58 = vpop.eup %4730 }
 0x1be   : > { %v1108_v59 = vmul.f32 %v4731_v58, %v1106_v57  ;;  %vm1113_vm11 = vweird.f32 %v4731_v58  ;;  %v1340_v46 = vpop.f32.mrf.mxu3  ;;  %v3628_v57 = vld [vmem:[#allocation15 + $0xe8] sm:$0xf0] }
 0x1bf   : > { %vm1114_vm13 = vmor %vm1112_vm12, %vm1113_vm11  ;;  %v3631_v63 = vor.u32 %v4398_v56, %v3628_v57 }
 0x1c0   : > { %v1109_v60 = vsub.f32 1.0, %v1108_v59  ;;  %v3627_v59 = vor.u32 %v4399_v54, %v3626_v53 }
 0x1c1   : > { %1646 = vmatpush.bf16.msrb.mxu0 %v3631_v63 }
 0x1c2   : > { %v1110_v62 = vmul.f32 %v4731_v58, %v1109_v60  ;;  %v4385_v60 = vld [vmem:[#allocation15 + $0x74] sm:$0xf0] }
 0x1c4   : > { %v1111_v4 = vadd.f32 %v4731_v58, %v1110_v62  ;;  %v3572_v62 = vld [vmem:[#allocation15 + $0x78] sm:$0xf0] }
 0x1c5   : > { %v3575_v2 = vor.u32 %v4384_v61, %v3572_v62  ;;  %v3588_v62 = vld [vmem:[#allocation15 + $0x98] sm:$0xf0] }
 0x1c6   : > { %v1115_v13 = vsel %vm1114_vm13, %v4731_v58, %v1111_v4  ;;  %v3570_v58 = vld [vmem:[#allocation15 + $0x70] sm:$0xf]  ;;  %v4397_v4 = vld [vmem:[#allocation15 + $0xd4] sm:$0xf0] }
 0x1c7   : > { %v1120_v17 = vsel %vm1117_vm14, %v1119_v8, %v1115_v13  ;;  %v3571_v1 = vor.u32 %v4385_v60, %v3570_v58  ;;  %v4383_v8 = vld [vmem:[#allocation15 + $0x64] sm:$0xf0]  ;;  %1632 = vmatpush.bf16.msra.mxu2 %v3575_v2  ;;  %v3619_v13 = vor.u32 %v4397_v4, %v3618_v3  ;;  %v3586_v58 = vld [vmem:[#allocation15 + $0x90] sm:$0xf]  ;;  %v4388_v60 = vld [vmem:[#allocation15 + $0x94] sm:$0xf] }
 0x1c8   : > { %v1122_v19 = vmul.f32 %v1120_v17, %v1100_v51  ;;  %v3635_v51 = vor.u32 %v4401_v49, %v3634_v24  ;;  %v3563_v9 = vor.u32 %v4383_v8, %v3562_v7  ;;  %v3623_v17 = vor.u32 %v4396_v5, %v3620_v6  ;;  %v4390_v49 = vld [vmem:[#allocation15 + $0xa4] sm:$0xf]  ;;  %v4375_v2 = vld [vmem:[#allocation15 + $0x24] sm:$0xf0]  ;;  %v3532_v5 = vld [vmem:[#allocation15 + $0x28] sm:$0xf0] }
 0x1c9   : > { %1606 = vmatpush.bf16.msrb.mxu1 %v3571_v1  ;;  %v3599_v54 = vor.u32 %v4390_v49, %v3596_v50  ;;  %v3591_v63 = vor.u32 %v4388_v60, %v3588_v62  ;;  %v3530_v1 = vld [vmem:[#allocation15 + $0x20] sm:$0xf]  ;;  %v4374_v4 = vld [vmem:[#allocation15 + $0x24] sm:$0xf]  ;;  %v4387_v8 = vld [vmem:[#allocation15 + $0x84] sm:$0xf0] }
 0x1ca   : > { %v1127_v26 = vpack.c.bf16 %v1122_v19, %v1122_v19  ;;  %1619 = vmatpush.bf16.msra.mxu3 %v3635_v51  ;;  %v4381_v19 = vld [vmem:[#allocation15 + $0x54] sm:$0xf0]  ;;  %1647 = vmatpush.bf16.msrb.mxu0 %v3623_v17  ;;  %v3531_v3 = vor.u32 %v4375_v2, %v3530_v1  ;;  %v3535_v6 = vor.u32 %v4374_v4, %v3532_v5  ;;  %v3578_v7 = vld [vmem:[#allocation15 + $0x80] sm:$0xf]  ;;  %v3764_v50 = vld [vmem:[#allocation16 + $0xf0] sm:$0xf] }
 0x1cb   : > { %1633 = vmatpush.bf16.msra.mxu2 %v3567_v14  ;;  %v3555_v29 = vor.u32 %v4381_v19, %v3554_v18  ;;  %v3579_v10 = vor.u32 %v4387_v8, %v3578_v7  ;;  %v3522_v14 = vld [vmem:[#allocation15 + $0x10] sm:$0xf]  ;;  %v3524_v18 = vld [vmem:[#allocation15 + $0x18] sm:$0xf0]  ;;  %v4431_v62 = vld [vmem:[#allocation16 + $0xe4] sm:$0xf0] }
 0x1cc   : > { %3462 = vmatmul.msk.bf16.vlgmr.msra.gmra.mxu1 %vm1086_vm6, %v1127_v26  ;;  %v3612_v26 = vld [vmem:[#allocation15 + $0xc8] sm:$0xf0]  ;;  %v3523_v17 = vor.u32 %v4373_v15, %v3522_v14  ;;  %v3527_v19 = vor.u32 %v4372_v16, %v3524_v18  ;;  %v3676_v4 = vld [vmem:[#allocation16 + $0x40] sm:$0xf]  ;;  %v4411_v5 = vld [vmem:[#allocation16 + $0x44] sm:$0xf0] }
 0x1cd   : > { %1607 = vmatpush.bf16.msrb.mxu1 %v3563_v9  ;;  %v3615_v25 = vor.u32 %v4394_v23, %v3612_v26  ;;  %v4386_v9 = vld [vmem:[#allocation15 + $0x84] sm:$0xf]  ;;  %v3758_v2 = vld [vmem:[#allocation16 + $0xe8] sm:$0xf0]  ;;  %v3677_v7 = vor.u32 %v4411_v5, %v3676_v4  ;;  %v3750_v15 = vld [vmem:[#allocation16 + $0xd8] sm:$0xf0] }
 0x1ce   : > { %1620 = vmatpush.bf16.msra.mxu3 %v3627_v59  ;;  %v4389_v59 = vld [vmem:[#allocation15 + $0x94] sm:$0xf0]  ;;  %v4370_v23 = vld [vmem:[#allocation15 + $0x4] sm:$0xf]  ;;  %v3678_v8 = vld [vmem:[#allocation16 + $0x48] sm:$0xf0] }
 0x1cf   : > { %1634 = vmatpush.bf16.msra.mxu2 %v3559_v30  ;;  %1648 = vmatpush.bf16.msrb.mxu0 %v3615_v25  ;;  %v3587_v61 = vor.u32 %v4389_v59, %v3586_v58  ;;  %v1398_v30 = vld [vmem:[#allocation13] sm:$0x3]  ;;  %v4409_v18 = vld [vmem:[#allocation16 + $0x34] sm:$0xf0]  ;;  %v3716_v5 = vld [vmem:[#allocation16 + $0x90] sm:$0xf] }
 0x1d0   : > { %v1401_v31 = vperm.slane %v1398_v30, 1  ;;  %v1400_v25 = vperm.slane %v1398_v30, 0  ;;  %v3686_v59 = vld [vmem:[#allocation16 + $0x58] sm:$0xf0]  ;;  %v5561_v30 = vld [vmem:[%s5671_s17] sm:$0x3] }
 0x1d1   : > { %1608 = vmatpush.bf16.msrb.mxu1 %v3555_v29  ;;  %v3519_v29 = vor.u32 %v4370_v23, %v3516_v27  ;;  %v4427_v27 = vld [vmem:[#allocation16 + $0xc4] sm:$0xf0] }
 0x1d2   : > { %1621 = vmatpush.bf16.msra.mxu3 %v3619_v13  ;;  %v3583_v13 = vor.u32 %v4386_v9, %v3580_v11  ;;  %v4429_v11 = vld [vmem:[#allocation16 + $0xd4] sm:$0xf0] }
 0x1d3   : > { %1635 = vmatpush.bf16.msra.mxu2 %v3551_v38 }
 0x1d5   : > { %1609 = vmatpush.bf16.msrb.mxu1 %v3547_v37 }
 0x1d6   : > { %1622 = vmatpush.bf16.msra.mxu3 %v3611_v32 }
 0x1da   : > { %1623 = vmatpush.bf16.msra.mxu3 %v3603_v41 }
 0x228   : > { %v1298_v21 = vpop.f32.mrf.mxu0 }
 0x229   : > { %v5547_v28 = vadd.f32 %v1338_v48, %v1298_v21  ;;  %v4391_v48 = vld [vmem:[#allocation15 + $0xa4] sm:$0xf0] }
 0x22a   : > { %v4371_v21 = vld [vmem:[#allocation15 + $0x4] sm:$0xf0] }
 0x22b   : > { %v3515_v26 = vor.u32 %v4371_v21, %v3514_v20  ;;  %v3670_v21 = vld [vmem:[#allocation16 + $0x38] sm:$0xf0] }
 0x22e   : > { %v1285_v40 = vpop.f32.mrf.mxu2 }
 0x230   : > { %v1300_v24 = vpop.f32.mrf.mxu0 }
 0x231   : > { %v3694_v24 = vld [vmem:[#allocation16 + $0x68] sm:$0xf0] }
 0x236   : > { %v1287_v46 = vpop.f32.mrf.mxu2 }
 0x23e   : > { %v1325_v55 = vpop.f32.mrf.mxu2 }
 0x23f   : > { %v1326_v56 = vadd.f32 %v1325_v55, %v1285_v40  ;;  %v4416_v40 = vld [vmem:[#allocation16 + $0x74] sm:$0xf]  ;;  %v3684_v55 = vld [vmem:[#allocation16 + $0x50] sm:$0xf] }
 0x246   : > { %v1327_v57 = vpop.f32.mrf.mxu2 }
 0x247   : > { %v4412_v57 = vld [vmem:[#allocation16 + $0x54] sm:$0xf] }
 0x248   : > { %v3689_v60 = vor.u32 %v4412_v57, %v3686_v59  ;;  %v3644_v59 = vld [vmem:[#allocation16] sm:$0xf] }
 0x249   : > { %v1156_v42 = vpop.f32.mrf.mxu1 }
 0x24a   : > { %v1157_v44 = vadd.f32 %v4722_v43, %v1156_v42  ;;  %v4377_v43 = vld [vmem:[#allocation15 + $0x34] sm:$0xf0]  ;;  %v4376_v42 = vld [vmem:[#allocation15 + $0x34] sm:$0xf] }
 0x24b   : > { %v3539_v51 = vor.u32 %v4377_v43, %v3538_v39  ;;  %v4417_v39 = vld [vmem:[#allocation16 + $0x74] sm:$0xf0]  ;;  %v3702_v43 = vld [vmem:[#allocation16 + $0x78] sm:$0xf0] }
 0x24c   : > { %v1346_v45 = vpack.c.bf16 %v1157_v44, %v1157_v44  ;;  %v3540_v44 = vld [vmem:[#allocation15 + $0x38] sm:$0xf0] }
 0x24d   : > { %v3543_v52 = vor.u32 %v4376_v42, %v3540_v44  ;;  %1610 = vmatpush.bf16.msrb.mxu1 %v3539_v51  ;;  %v3705_v42 = vor.u32 %v4416_v40, %v3702_v43  ;;  %v3692_v44 = vld [vmem:[#allocation16 + $0x60] sm:$0xf]  ;;  %v4433_v51 = vld [vmem:[#allocation16 + $0xf4] sm:$0xf0]  ;;  %v4424_v40 = vld [vmem:[#allocation16 + $0xb4] sm:$0xf] }
 0x24e   : > { %3510 = vmatmul.msk.bf16.vlgmr.msrb.gmra.mxu2 %vm1086_vm6, %v1346_v45  ;;  %3511 = vmatmul.msk.bf16.vlgmr.msra.gmra.mxu0 %vm1086_vm6, %v1346_v45  ;;  %v3607_v45 = vor.u32 %v4392_v12, %v3604_v36 }
 0x24f   : > { %1636 = vmatpush.bf16.msra.mxu2 %v3543_v52  ;;  %v4432_v52 = vld [vmem:[#allocation16 + $0xf4] sm:$0xf] }
 0x250   : > { %1649 = vmatpush.bf16.msrb.mxu0 %v3607_v45  ;;  %v4415_v45 = vld [vmem:[#allocation16 + $0x64] sm:$0xf0] }
 0x251   : > { %v1158_v47 = vpop.f32.mrf.mxu1  ;;  %1611 = vmatpush.bf16.msrb.mxu1 %v3531_v3 }
 0x252   : > { %v3594_v47 = vld [vmem:[#allocation15 + $0xa0] sm:$0xf] }
 0x253   : > { %v3595_v53 = vor.u32 %v4391_v48, %v3594_v47  ;;  %1637 = vmatpush.bf16.msra.mxu2 %v3535_v6  ;;  %v4414_v47 = vld [vmem:[#allocation16 + $0x64] sm:$0xf]  ;;  %v3693_v48 = vor.u32 %v4415_v45, %v3692_v44  ;;  %v3652_v45 = vld [vmem:[#allocation16 + $0x10] sm:$0xf] }
 0x254   : > { %1650 = vmatpush.bf16.msrb.mxu0 %v3599_v54  ;;  %v3697_v49 = vor.u32 %v4414_v47, %v3694_v24  ;;  %v3766_v54 = vld [vmem:[#allocation16 + $0xf8] sm:$0xf0]  ;;  %v4410_v6 = vld [vmem:[#allocation16 + $0x44] sm:$0xf]  ;;  %v4405_v47 = vld [vmem:[#allocation16 + $0x14] sm:$0xf0] }
 0x255   : > { %1624 = vmatpush.bf16.msra.mxu3 %v3595_v53  ;;  %1612 = vmatpush.bf16.msrb.mxu1 %v3523_v17  ;;  %v3765_v53 = vor.u32 %v4433_v51, %v3764_v50  ;;  %v3769_v46 = vor.u32 %v4432_v52, %v3766_v54  ;;  %v3681_v9 = vor.u32 %v4410_v6, %v3678_v8  ;;  %v3668_v17 = vld [vmem:[#allocation16 + $0x30] sm:$0xf]  ;;  %v3724_v51 = vld [vmem:[#allocation16 + $0xa0] sm:$0xf]  ;;  %v4423_v52 = vld [vmem:[#allocation16 + $0xa4] sm:$0xf0] }
 0x256   : > { %v3669_v20 = vor.u32 %v4409_v18, %v3668_v17  ;;  %v3653_v24 = vor.u32 %v4405_v47, %v3652_v45  ;;  %v4421_v6 = vld [vmem:[#allocation16 + $0x94] sm:$0xf0]  ;;  %v4418_v17 = vld [vmem:[#allocation16 + $0x84] sm:$0xf]  ;;  %v3887_v45 = vld [vmem:[#allocation15 + $0x1e8] sm:$0xf0] }
 0x257   : > { %1638 = vmatpush.bf16.msra.mxu2 %v3527_v19  ;;  %v4408_v19 = vld [vmem:[#allocation16 + $0x34] sm:$0xf]  ;;  %v3717_v8 = vor.u32 %v4421_v6, %v3716_v5  ;;  %v3821_v47 = vld [vmem:[#allocation15 + $0x160] sm:$0xf]  ;;  %v4458_v5 = vld [vmem:[#allocation15 + $0x1c4] sm:$0xf] }
 0x258   : > { %1651 = vmatpush.bf16.msrb.mxu0 %v3591_v63  ;;  %v4430_v63 = vld [vmem:[#allocation16 + $0xe4] sm:$0xf]  ;;  %v3673_v23 = vor.u32 %v4408_v19, %v3670_v21  ;;  %v3710_v21 = vld [vmem:[#allocation16 + $0x88] sm:$0xf0] }
 0x259   : > { %1625 = vmatpush.bf16.msra.mxu3 %v3587_v61  ;;  %1613 = vmatpush.bf16.msrb.mxu1 %v3515_v26  ;;  %v3756_v61 = vld [vmem:[#allocation16 + $0xe0] sm:$0xf]  ;;  %v3761_v3 = vor.u32 %v4430_v63, %v3758_v2  ;;  %v1443_v63 = vperm.slane %v5561_v30, 1  ;;  %v3646_v2 = vld [vmem:[#allocation16 + $0x8] sm:$0xf0] }
 0x25a   : > { %v3757_v1 = vor.u32 %v4431_v62, %v3756_v61  ;;  %v3740_v26 = vld [vmem:[#allocation16 + $0xc0] sm:$0xf]  ;;  %v4402_v61 = vld [vmem:[#allocation16 + $0x4] sm:$0xf] }
 0x25b   : > { %1639 = vmatpush.bf16.msra.mxu2 %v3519_v29  ;;  %v4426_v29 = vld [vmem:[#allocation16 + $0xc4] sm:$0xf]  ;;  %v3649_v4 = vor.u32 %v4402_v61, %v3646_v2  ;;  %v4444_v2 = vld [vmem:[#allocation15 + $0x154] sm:$0xf] }
 0x25c   : > { %1652 = vmatpush.bf16.msrb.mxu0 %v3583_v13  ;;  %v4428_v13 = vld [vmem:[#allocation16 + $0xd4] sm:$0xf] }
 0x25d   : > { %1626 = vmatpush.bf16.msra.mxu3 %v3579_v10  ;;  %v3748_v10 = vld [vmem:[#allocation16 + $0xd0] sm:$0xf]  ;;  %v3753_v16 = vor.u32 %v4428_v13, %v3750_v15  ;;  %v3708_v15 = vld [vmem:[#allocation16 + $0x80] sm:$0xf] }
 0x25e   : > { %v3749_v14 = vor.u32 %v4429_v11, %v3748_v10 }
 0x25f   : > { %1924 = vmatpush.bf16.msrb.mxu2 %v3705_v42  ;;  %v3734_v42 = vld [vmem:[#allocation16 + $0xb8] sm:$0xf0] }
 0x260   : > { %1937 = vmatpush.bf16.msra.mxu0 %v3769_v46  ;;  %v3737_v44 = vor.u32 %v4424_v40, %v3734_v42 }
 0x261   : > { %1911 = vmatpush.bf16.msrb.mxu3 %v3765_v53  ;;  %v4422_v53 = vld [vmem:[#allocation16 + $0xa4] sm:$0xf] }
 0x263   : > { %1925 = vmatpush.bf16.msrb.mxu2 %v3697_v49  ;;  %v3654_v49 = vld [vmem:[#allocation16 + $0x18] sm:$0xf0] }
 0x264   : > { %1938 = vmatpush.bf16.msra.mxu0 %v3761_v3 }
 0x265   : > { %1912 = vmatpush.bf16.msrb.mxu3 %v3757_v1 }
 0x267   : > { %1926 = vmatpush.bf16.msrb.mxu2 %v3689_v60  ;;  %v4403_v60 = vld [vmem:[#allocation16 + $0x4] sm:$0xf0] }
 0x268   : > { %1939 = vmatpush.bf16.msra.mxu0 %v3753_v16  ;;  %v3645_v1 = vor.u32 %v4403_v60, %v3644_v59  ;;  %v4419_v16 = vld [vmem:[#allocation16 + $0x84] sm:$0xf0]  ;;  %v4445_v59 = vld [vmem:[#allocation15 + $0x154] sm:$0xf0] }
 0x269   : > { %1913 = vmatpush.bf16.msrb.mxu3 %v3749_v14 }
 0x26b   : > { %1927 = vmatpush.bf16.msrb.mxu2 %v3681_v9  ;;  %v3718_v9 = vld [vmem:[#allocation16 + $0x98] sm:$0xf0] }
 0x26f   : > { %1928 = vmatpush.bf16.msrb.mxu2 %v3673_v23 }
 0x2cb   : > { %v1392_v32 = vpop.f32.mrf.mxu0 }
 0x2cc   : > { %v1397_v33 = vadd.f32 %v1392_v32, %v5547_v28  ;;  %v3700_v28 = vld [vmem:[#allocation16 + $0x70] sm:$0xf]  ;;  %v3742_v32 = vld [vmem:[#allocation16 + $0xc8] sm:$0xf0] }
 0x2cd   : > { %v3701_v41 = vor.u32 %v4417_v39, %v3700_v28  ;;  %v3732_v28 = vld [vmem:[#allocation16 + $0xb0] sm:$0xf]  ;;  %v4425_v39 = vld [vmem:[#allocation16 + $0xb4] sm:$0xf0] }
 0x2ce   : > { %v5550_v34 = vadd.f32 %v1401_v31, %v1397_v33  ;;  %v3741_v31 = vor.u32 %v4427_v27, %v3740_v26  ;;  %v3745_v33 = vor.u32 %v4426_v29, %v3742_v32  ;;  %v3733_v43 = vor.u32 %v4425_v39, %v3732_v28  ;;  %v3893_v29 = vld [vmem:[#allocation15 + $0x1f0] sm:$0xf]  ;;  %v4464_v32 = vld [vmem:[#allocation15 + $0x1f4] sm:$0xf] }
 0x2cf   : > { %1898 = vmatpush.bf16.msra.mxu1 %v3701_v41  ;;  %v1442_v41 = vperm.slane %v5561_v30, 0  ;;  %v3713_v26 = vor.u32 %v4418_v17, %v3710_v21  ;;  %v4465_v30 = vld [vmem:[#allocation15 + $0x1f4] sm:$0xf0] }
 0x2d0   : > { %v1439_v22 = vpack.c.bf16 %v5550_v34, %v5550_v34  ;;  %1914 = vmatpush.bf16.msrb.mxu3 %v3741_v31  ;;  %1940 = vmatpush.bf16.msra.mxu0 %v3745_v33  ;;  %v3894_v31 = vor.u32 %v4465_v30, %v3893_v29  ;;  %v3895_v33 = vld [vmem:[#allocation15 + $0x1f8] sm:$0xf0] }
 0x2d1   : > { %v1379_v35 = vpop.f32.mrf.mxu2 }
 0x2d2   : > { %v1396_v0 = vadd.f32 %v1379_v35, %v1326_v56  ;;  %1627 = vmatmul.bf16.vlgmr.msra.gmra.mxu3 %v1439_v22  ;;  %1653 = vmatmul.bf16.vlgmr.msrb.gmra.mxu0 %v1439_v22  ;;  %v4413_v56 = vld [vmem:[#allocation16 + $0x54] sm:$0xf0]  ;;  %v3660_v22 = vld [vmem:[#allocation16 + $0x20] sm:$0xf]  ;;  %v4406_v35 = vld [vmem:[#allocation16 + $0x24] sm:$0xf] }
 0x2d3   : > { %v1394_v12 = vpop.f32.mrf.mxu0  ;;  %1899 = vmatpush.bf16.msra.mxu1 %v3693_v48  ;;  %v3685_v58 = vor.u32 %v4413_v56, %v3684_v55  ;;  %v4404_v48 = vld [vmem:[#allocation16 + $0x14] sm:$0xf]  ;;  %v3725_v55 = vor.u32 %v4423_v52, %v3724_v51  ;;  %v3726_v56 = vld [vmem:[#allocation16 + $0xa8] sm:$0xf0]  ;;  %v4461_v51 = vld [vmem:[#allocation15 + $0x1d4] sm:$0xf0] }
 0x2d4   : > { %v5554_v36 = vadd.f32 %v1400_v25, %v1396_v0  ;;  %v4407_v25 = vld [vmem:[#allocation16 + $0x24] sm:$0xf0]  ;;  %1915 = vmatpush.bf16.msrb.mxu3 %v3733_v43  ;;  %1941 = vmatpush.bf16.msra.mxu0 %v3737_v44  ;;  %v3657_v50 = vor.u32 %v4404_v48, %v3654_v49  ;;  %v3831_v43 = vld [vmem:[#allocation15 + $0x178] sm:$0xf0]  ;;  %v4462_v44 = vld [vmem:[#allocation15 + $0x1e4] sm:$0xf] }
 0x2d5   : > { %v3661_v12 = vor.u32 %v4407_v25, %v3660_v22  ;;  %v3829_v22 = vld [vmem:[#allocation15 + $0x170] sm:$0xf]  ;;  %v4447_v48 = vld [vmem:[#allocation15 + $0x164] sm:$0xf0]  ;;  %v4446_v52 = vld [vmem:[#allocation15 + $0x164] sm:$0xf] }
 0x2d6   : > { %v1438_v37 = vpack.c.bf16 %v5554_v36, %v5554_v36  ;;  %v3822_v49 = vor.u32 %v4447_v48, %v3821_v47  ;;  %v3863_v47 = vld [vmem:[#allocation15 + $0x1b8] sm:$0xf0]  ;;  %v3797_v48 = vld [vmem:[#allocation15 + $0x130] sm:$0xf] }
 0x2d7   : > { %1900 = vmatpush.bf16.msra.mxu1 %v3685_v58  ;;  %v3729_v58 = vor.u32 %v4422_v53, %v3726_v56 }
 0x2d8   : > { %1614 = vmatmul.bf16.vlgmr.msrb.gmra.mxu1 %v1438_v37  ;;  %1640 = vmatmul.bf16.vlgmr.msra.gmra.mxu2 %v1438_v37  ;;  %v3662_v37 = vld [vmem:[#allocation16 + $0x28] sm:$0xf0] }
 0x2d9   : > { %v1381_v38 = vpop.f32.mrf.mxu2  ;;  %1916 = vmatpush.bf16.msrb.mxu3 %v3725_v55  ;;  %1942 = vmatpush.bf16.msra.mxu0 %v3729_v58  ;;  %v3813_v58 = vld [vmem:[#allocation15 + $0x150] sm:$0xf] }
 0x2da   : > { %v3665_v38 = vor.u32 %v4406_v35, %v3662_v37  ;;  %v3898_v35 = vor.u32 %v4464_v32, %v3895_v33  ;;  %v3885_v37 = vld [vmem:[#allocation15 + $0x1e0] sm:$0xf] }
 0x2db   : > { %1901 = vmatpush.bf16.msra.mxu1 %v3677_v7  ;;  %v4420_v7 = vld [vmem:[#allocation16 + $0x94] sm:$0xf] }
 0x2dc   : > { %1929 = vmatpush.bf16.msrb.mxu2 %v3665_v38  ;;  %v3721_v11 = vor.u32 %v4420_v7, %v3718_v9  ;;  %v4463_v38 = vld [vmem:[#allocation15 + $0x1e4] sm:$0xf0] }
 0x2dd   : > { %1917 = vmatpush.bf16.msrb.mxu3 %v3717_v8  ;;  %v3886_v40 = vor.u32 %v4463_v38, %v3885_v37  ;;  %v3871_v8 = vld [vmem:[#allocation15 + $0x1c8] sm:$0xf0] }
 0x2de   : > { %1943 = vmatpush.bf16.msra.mxu0 %v3721_v11  ;;  %v3874_v11 = vor.u32 %v4458_v5, %v3871_v8  ;;  %v4452_v5 = vld [vmem:[#allocation15 + $0x194] sm:$0xf]  ;;  %v3781_v8 = vld [vmem:[#allocation15 + $0x110] sm:$0xf] }
 0x2df   : > { %1902 = vmatpush.bf16.msra.mxu1 %v3669_v20  ;;  %v3709_v20 = vor.u32 %v4419_v16, %v3708_v15 }
 0x2e0   : > { %1930 = vmatpush.bf16.msrb.mxu2 %v3657_v50  ;;  %v3877_v50 = vld [vmem:[#allocation15 + $0x1d0] sm:$0xf] }
 0x2e1   : > { %1918 = vmatpush.bf16.msrb.mxu3 %v3709_v20  ;;  %v3878_v53 = vor.u32 %v4461_v51, %v3877_v50  ;;  %v3853_v50 = vld [vmem:[#allocation15 + $0x1a0] sm:$0xf] }
 0x2e2   : > { %1944 = vmatpush.bf16.msra.mxu0 %v3713_v26 }
 0x2e3   : > { %1903 = vmatpush.bf16.msra.mxu1 %v3661_v12  ;;  %v4449_v12 = vld [vmem:[#allocation15 + $0x174] sm:$0xf0] }
 0x2e4   : > { %1931 = vmatpush.bf16.msrb.mxu2 %v3649_v4  ;;  %v3830_v39 = vor.u32 %v4449_v12, %v3829_v22  ;;  %v3815_v4 = vld [vmem:[#allocation15 + $0x158] sm:$0xf0] }
 0x2e5   : > { %2167 = vmatpush.bf16.msra.mxu3 %v3894_v31 }
 0x2e6   : > { %2193 = vmatpush.bf16.msrb.mxu0 %v3898_v35 }
 0x2e7   : > { %1904 = vmatpush.bf16.msra.mxu1 %v3653_v24  ;;  %v3890_v24 = vor.u32 %v4462_v44, %v3887_v45  ;;  %v4456_v45 = vld [vmem:[#allocation15 + $0x1b4] sm:$0xf] }
 0x2e9   : > { %2168 = vmatpush.bf16.msra.mxu3 %v3886_v40  ;;  %v4457_v40 = vld [vmem:[#allocation15 + $0x1b4] sm:$0xf0] }
 0x2ea   : > { %2194 = vmatpush.bf16.msrb.mxu0 %v3890_v24  ;;  %v3866_v24 = vor.u32 %v4456_v45, %v3863_v47 }
 0x2eb   : > { %1905 = vmatpush.bf16.msra.mxu1 %v3645_v1  ;;  %v4459_v1 = vld [vmem:[#allocation15 + $0x1c4] sm:$0xf0] }
 0x2ed   : > { %2169 = vmatpush.bf16.msra.mxu3 %v3878_v53  ;;  %v4440_v53 = vld [vmem:[#allocation15 + $0x134] sm:$0xf] }
 0x2ef   : > { %2154 = vmatpush.bf16.msrb.mxu1 %v3830_v39 }
 0x2f3   : > { %2155 = vmatpush.bf16.msrb.mxu1 %v3822_v49  ;;  %v4441_v49 = vld [vmem:[#allocation15 + $0x134] sm:$0xf0] }
 0x2f4   : > { %v3798_v51 = vor.u32 %v4441_v49, %v3797_v48  ;;  %v4481_v48 = vld [vmem:[#allocation16 + $0x174] sm:$0xf0] }
 0x34f   : > { %v5563_v0 = vpop.f32.mrf.mxu0 }
 0x355   : > { %v1615_v54 = vpop.f32.mrf.mxu1  ;;  %v1628_v46 = vpop.f32.mrf.mxu3 }
 0x356   : > { %v1616_v57 = vadd.f32 %v1615_v54, %v1442_v41  ;;  %v4448_v41 = vld [vmem:[#allocation15 + $0x174] sm:$0xf]  ;;  %v3823_v54 = vld [vmem:[#allocation15 + $0x168] sm:$0xf0] }
 0x357   : > { %v1656_v62 = vpop.f32.mrf.mxu0  ;;  %v3834_v42 = vor.u32 %v4448_v41, %v3831_v43  ;;  %v3826_v56 = vor.u32 %v4446_v52, %v3823_v54  ;;  %v4442_v41 = vld [vmem:[#allocation15 + $0x144] sm:$0xf]  ;;  %v3807_v43 = vld [vmem:[#allocation15 + $0x148] sm:$0xf0]  ;;  %v3799_v54 = vld [vmem:[#allocation15 + $0x138] sm:$0xf0] }
 0x358   : > { %v5567_v3 = vadd.f32 %v1628_v46, %v1616_v57  ;;  %v4460_v46 = vld [vmem:[#allocation15 + $0x1d4] sm:$0xf]  ;;  %v3879_v57 = vld [vmem:[#allocation15 + $0x1d8] sm:$0xf0]  ;;  %v3814_v62 = vor.u32 %v4445_v59, %v3813_v58  ;;  %v3810_v44 = vor.u32 %v4442_v41, %v3807_v43  ;;  %v3789_v58 = vld [vmem:[#allocation15 + $0x120] sm:$0xf] }
 0x359   : > { %2180 = vmatpush.bf16.msra.mxu2 %v3834_v42  ;;  %v3882_v61 = vor.u32 %v4460_v46, %v3879_v57  ;;  %v4454_v46 = vld [vmem:[#allocation15 + $0x1a4] sm:$0xf]  ;;  %v4439_v59 = vld [vmem:[#allocation15 + $0x124] sm:$0xf0] }
 0x35a   : > { %v3640_v10 = vmul.f32 -1.442695, %v5567_v3  ;;  %2156 = vmatpush.bf16.msrb.mxu1 %v3814_v62  ;;  %v4453_v62 = vld [vmem:[#allocation15 + $0x194] sm:$0xf0] }
 0x35b   : > { %v1641_v13 = vpop.f32.mrf.mxu2  ;;  %2195 = vmatpush.bf16.msrb.mxu0 %v3882_v61  ;;  %v3790_v61 = vor.u32 %v4439_v59, %v3789_v58  ;;  %v4026_v59 = vld [vmem:[#allocation16 + $0x1f8] sm:$0xf0] }
 0x35c   : > { %4732 = vpow2.f32 %v3640_v10  ;;  %v1642_v14 = vadd.f32 %v1641_v13, %v1443_v63  ;;  %v3869_v63 = vld [vmem:[#allocation15 + $0x1c0] sm:$0xf]  ;;  %v3818_v10 = vor.u32 %v4444_v2, %v3815_v4 }
 0x35d   : > { %v1617_v18 = vpop.f32.mrf.mxu1  ;;  %v1630_v19 = vpop.f32.mrf.mxu3  ;;  %2181 = vmatpush.bf16.msra.mxu2 %v3826_v56  ;;  %v3870_v7 = vor.u32 %v4459_v1, %v3869_v63  ;;  %v3855_v56 = vld [vmem:[#allocation15 + $0x1a8] sm:$0xf0]  ;;  %v4438_v63 = vld [vmem:[#allocation15 + $0x124] sm:$0xf] }
 0x35e   : > { %v5571_v23 = vadd.f32 %v5563_v0, %v1642_v14  ;;  %v3858_v57 = vor.u32 %v4454_v46, %v3855_v56  ;;  %v3791_v1 = vld [vmem:[#allocation15 + $0x128] sm:$0xf0]  ;;  %v4497_v56 = vld [vmem:[#allocation16 + $0x1f4] sm:$0xf0] }
 0x35f   : > { %2170 = vmatpush.bf16.msra.mxu3 %v3870_v7  ;;  %2196 = vmatpush.bf16.msrb.mxu0 %v3874_v11  ;;  %v3794_v4 = vor.u32 %v4438_v63, %v3791_v1  ;;  %v4476_v63 = vld [vmem:[#allocation16 + $0x154] sm:$0xf] }
 0x360   : > { %v3641_v27 = vmul.f32 -1.442695, %v5571_v23 }
 0x361   : > { %2182 = vmatpush.bf16.msra.mxu2 %v3818_v10  ;;  %v3837_v10 = vld [vmem:[#allocation15 + $0x180] sm:$0xf] }
 0x362   : > { %v4733_v25 = vpop.eup %4732  ;;  %4734 = vpow2.f32 %v3641_v27 }
 0x363   : > { %v5574_v28 = vadd.f32 1.0, %v4733_v25  ;;  %v1643_v0 = vpop.f32.mrf.mxu2  ;;  %2197 = vmatpush.bf16.msrb.mxu0 %v3866_v24  ;;  %v4480_v24 = vld [vmem:[#allocation16 + $0x174] sm:$0xf] }
 0x364   : > { %v3861_v0 = vld [vmem:[#allocation15 + $0x1b0] sm:$0xf] }
 0x365   : > { %4736 = vrcp.f32 %v5574_v28  ;;  %v1677_v14 = vand.u32 2147483648, %v5574_v28  ;;  %v1675_v16 = vand.u32 2147483647, %v5574_v28  ;;  %vm1671_vm1 = vweird.f32 %v5574_v28  ;;  %2183 = vmatpush.bf16.msra.mxu2 %v3810_v44 }
 0x366   : > { %v3862_v42 = vor.u32 %v4457_v40, %v3861_v0 }
 0x367   : > { %v1678_v20 = vor.u32 1.1754944e-38, %v1677_v14  ;;  %vm1676_vm2 = vcmp.eq.f32.partialorder %v1675_v16, 8.507059e+37  ;;  %2198 = vmatpush.bf16.msrb.mxu0 %v3858_v57  ;;  %v4436_v14 = vld [vmem:[#allocation15 + $0x114] sm:$0xf] }
 0x368   : > { %v4735_v55 = vpop.eup %4734  ;;  %2171 = vmatpush.bf16.msra.mxu3 %v3862_v42  ;;  %v4496_v57 = vld [vmem:[#allocation16 + $0x1f4] sm:$0xf] }
 0x369   : > { %v1665_v60 = vadd.f32 1.0, %v4735_v55  ;;  %v3802_v55 = vor.u32 %v4440_v53, %v3799_v54  ;;  %v3954_v54 = vld [vmem:[#allocation16 + $0x168] sm:$0xf0] }
 0x36b   : > { %v4737_v6 = vpop.eup %4736  ;;  %4738 = vrcp.f32 %v1665_v60  ;;  %v1692_v29 = vand.u32 2147483648, %v1665_v60  ;;  %v1690_v32 = vand.u32 2147483647, %v1665_v60  ;;  %vm1686_vm4 = vweird.f32 %v1665_v60  ;;  %2184 = vmatpush.bf16.msra.mxu2 %v3802_v55  ;;  %v4024_v55 = vld [vmem:[#allocation16 + $0x1f0] sm:$0xf] }
 0x36c   : > { %v1667_v9 = vmul.f32 %v4737_v6, %v5574_v28  ;;  %vm1672_vm0 = vweird.f32 %v4737_v6  ;;  %v3805_v28 = vld [vmem:[#allocation15 + $0x140] sm:$0xf]  ;;  %v4025_v58 = vor.u32 %v4497_v56, %v4024_v55 }
 0x36d   : > { %vm1673_vm15 = vmor %vm1671_vm1, %vm1672_vm0  ;;  %v1693_v25 = vor.u32 1.1754944e-38, %v1692_v29  ;;  %vm1691_vm6 = vcmp.eq.f32.partialorder %v1690_v32, 8.507059e+37  ;;  %v3984_v56 = vld [vmem:[#allocation16 + $0x1a0] sm:$0xf] }
 0x36e   : > { %v1668_v13 = vsub.f32 1.0, %v1667_v9  ;;  %v4437_v9 = vld [vmem:[#allocation15 + $0x114] sm:$0xf0] }
 0x36f   : > { %2185 = vmatpush.bf16.msra.mxu2 %v3794_v4  ;;  %v3782_v11 = vor.u32 %v4437_v9, %v3781_v8  ;;  %v4018_v9 = vld [vmem:[#allocation16 + $0x1e8] sm:$0xf0] }
 0x370   : > { %v1669_v15 = vmul.f32 %v4737_v6, %v1668_v13  ;;  %v4451_v13 = vld [vmem:[#allocation15 + $0x184] sm:$0xf0] }
 0x371   : > { %v4739_v17 = vpop.eup %4738  ;;  %v3838_v16 = vor.u32 %v4451_v13, %v3837_v10  ;;  %v4475_v13 = vld [vmem:[#allocation16 + $0x144] sm:$0xf0] }
 0x372   : > { %v1670_v18 = vadd.f32 %v4737_v6, %v1669_v15  ;;  %v1682_v19 = vmul.f32 %v4739_v17, %v1665_v60  ;;  %vm1687_vm3 = vweird.f32 %v4739_v17  ;;  %v3845_v60 = vld [vmem:[#allocation15 + $0x190] sm:$0xf]  ;;  %v3783_v15 = vld [vmem:[#allocation15 + $0x118] sm:$0xf0] }
 0x373   : > { %vm1688_vm5 = vmor %vm1686_vm4, %vm1687_vm3  ;;  %v3846_v2 = vor.u32 %v4453_v62, %v3845_v60  ;;  %v4029_v60 = vor.u32 %v4496_v57, %v4026_v59  ;;  %v4477_v62 = vld [vmem:[#allocation16 + $0x154] sm:$0xf0]  ;;  %v4487_v57 = vld [vmem:[#allocation16 + $0x1a4] sm:$0xf0] }
 0x374   : > { %v1674_v21 = vsel %vm1673_vm15, %v4737_v6, %v1670_v18  ;;  %v1683_v26 = vsub.f32 1.0, %v1682_v19  ;;  %v3847_v6 = vld [vmem:[#allocation15 + $0x198] sm:$0xf0]  ;;  %v4450_v18 = vld [vmem:[#allocation15 + $0x184] sm:$0xf] }
 0x375   : > { %v1679_v27 = vsel %vm1676_vm2, %v1678_v20, %v1674_v21  ;;  %v3850_v7 = vor.u32 %v4452_v5, %v3847_v6  ;;  %v3839_v19 = vld [vmem:[#allocation15 + $0x188] sm:$0xf0]  ;;  %v3773_v21 = vld [vmem:[#allocation15 + $0x100] sm:$0xf]  ;;  %v4495_v6 = vld [vmem:[#allocation16 + $0x1e4] sm:$0xf0] }
 0x376   : > { %v1696_v30 = vmul.f32 %v1679_v27, %v5567_v3  ;;  %v1684_v31 = vmul.f32 %v4739_v17, %v1683_v26  ;;  %v4443_v3 = vld [vmem:[#allocation15 + $0x144] sm:$0xf0]  ;;  %v3842_v20 = vor.u32 %v4450_v18, %v3839_v19  ;;  %v4434_v27 = vld [vmem:[#allocation15 + $0x104] sm:$0xf]  ;;  %v4016_v5 = vld [vmem:[#allocation16 + $0x1e0] sm:$0xf] }
 0x377   : > { %v3806_v39 = vor.u32 %v4443_v3, %v3805_v28  ;;  %2199 = vmatpush.bf16.msrb.mxu0 %v3850_v7  ;;  %v4435_v26 = vld [vmem:[#allocation15 + $0x104] sm:$0xf0]  ;;  %v4494_v7 = vld [vmem:[#allocation16 + $0x1e4] sm:$0xf]  ;;  %v4017_v8 = vor.u32 %v4495_v6, %v4016_v5  ;;  %v4008_v18 = vld [vmem:[#allocation16 + $0x1d0] sm:$0xf] }
 0x378   : > { %v1730_v33 = vpack.c.bf16 %v1696_v30, %v1696_v30  ;;  %v1685_v22 = vadd.f32 %v4739_v17, %v1684_v31  ;;  %v3774_v29 = vor.u32 %v4435_v26, %v3773_v21  ;;  %v3775_v30 = vld [vmem:[#allocation15 + $0x108] sm:$0xf0]  ;;  %v4021_v10 = vor.u32 %v4494_v7, %v4018_v9  ;;  %v4493_v19 = vld [vmem:[#allocation16 + $0x1d4] sm:$0xf0]  ;;  %v4010_v26 = vld [vmem:[#allocation16 + $0x1d8] sm:$0xf0] }
 0x379   : > { %2157 = vmatpush.bf16.msrb.mxu1 %v3806_v39  ;;  %v3778_v31 = vor.u32 %v4434_v27, %v3775_v30  ;;  %v4009_v21 = vor.u32 %v4493_v19, %v4008_v18  ;;  %v4473_v30 = vld [vmem:[#allocation16 + $0x134] sm:$0xf0] }
 0x37a   : > { %v1689_v35 = vsel %vm1688_vm5, %v4739_v17, %v1685_v22  ;;  %1906 = vmatmul.bf16.vlgmr.msra.gmra.mxu1 %v1730_v33  ;;  %1932 = vmatmul.bf16.vlgmr.msrb.gmra.mxu2 %v1730_v33  ;;  %v3786_v17 = vor.u32 %v4436_v14, %v3783_v15  ;;  %v1732_v33 = vld [vmem:[%s5673_s19] sm:$0x3]  ;;  %v4474_v14 = vld [vmem:[#allocation16 + $0x144] sm:$0xf] }
 0x37b   : > { %v1694_v12 = vsel %vm1691_vm6, %v1693_v25, %v1689_v35  ;;  %2200 = vmatpush.bf16.msrb.mxu0 %v3842_v20  ;;  %v1735_v22 = vperm.slane %v1732_v33, 1  ;;  %v4492_v20 = vld [vmem:[#allocation16 + $0x1d4] sm:$0xf] }
 0x37c   : > { %v1697_v37 = vmul.f32 %v1694_v12, %v5571_v23  ;;  %v4455_v23 = vld [vmem:[#allocation15 + $0x1a4] sm:$0xf0]  ;;  %2186 = vmatpush.bf16.msra.mxu2 %v3786_v17  ;;  %v1734_v12 = vperm.slane %v1732_v33, 0  ;;  %v4013_v27 = vor.u32 %v4492_v20, %v4010_v26  ;;  %v3930_v33 = vld [vmem:[#allocation16 + $0x138] sm:$0xf0] }
 0x37d   : > { %v3854_v52 = vor.u32 %v4455_v23, %v3853_v50  ;;  %2158 = vmatpush.bf16.msrb.mxu1 %v3798_v51  ;;  %v3962_v50 = vld [vmem:[#allocation16 + $0x178] sm:$0xf0]  ;;  %v3952_v51 = vld [vmem:[#allocation16 + $0x160] sm:$0xf] }
 0x37e   : > { %v1731_v38 = vpack.c.bf16 %v1697_v37, %v1697_v37  ;;  %v3965_v23 = vor.u32 %v4480_v24, %v3962_v50  ;;  %v3968_v26 = vld [vmem:[#allocation16 + $0x180] sm:$0xf] }
 0x37f   : > { %2172 = vmatpush.bf16.msra.mxu3 %v3854_v52  ;;  %v4479_v52 = vld [vmem:[#allocation16 + $0x164] sm:$0xf0] }
 0x380   : > { %1919 = vmatmul.bf16.vlgmr.msrb.gmra.mxu3 %v1731_v38  ;;  %1945 = vmatmul.bf16.vlgmr.msra.gmra.mxu0 %v1731_v38  ;;  %v3953_v53 = vor.u32 %v4479_v52, %v3952_v51  ;;  %v3912_v52 = vld [vmem:[#allocation16 + $0x110] sm:$0xf] }
 0x381   : > { %2159 = vmatpush.bf16.msrb.mxu1 %v3790_v61  ;;  %2187 = vmatpush.bf16.msra.mxu2 %v3778_v31  ;;  %v3944_v61 = vld [vmem:[#allocation16 + $0x150] sm:$0xf]  ;;  %v4472_v31 = vld [vmem:[#allocation16 + $0x134] sm:$0xf] }
 0x382   : > { %v3945_v1 = vor.u32 %v4477_v62, %v3944_v61  ;;  %2487 = vmatpush.bf16.msra.mxu0 %v4029_v60  ;;  %v3985_v60 = vor.u32 %v4487_v57, %v3984_v56  ;;  %v3986_v61 = vld [vmem:[#allocation16 + $0x1a8] sm:$0xf0]  ;;  %v4525_v56 = vld [vmem:[#allocation15 + $0x2d4] sm:$0xf0]  ;;  %v4510_v57 = vld [vmem:[#allocation15 + $0x264] sm:$0xf] }
 0x383   : > { %2173 = vmatpush.bf16.msra.mxu3 %v3846_v2  ;;  %v3946_v2 = vld [vmem:[#allocation16 + $0x158] sm:$0xf0] }
 0x384   : > { %v3949_v4 = vor.u32 %v4476_v63, %v3946_v2  ;;  %v4467_v2 = vld [vmem:[#allocation16 + $0x104] sm:$0xf0] }
 0x385   : > { %2160 = vmatpush.bf16.msrb.mxu1 %v3782_v11  ;;  %2474 = vmatpush.bf16.msrb.mxu2 %v3965_v23  ;;  %v3936_v11 = vld [vmem:[#allocation16 + $0x140] sm:$0xf]  ;;  %v3994_v23 = vld [vmem:[#allocation16 + $0x1b8] sm:$0xf0] }
 0x386   : > { %v3937_v15 = vor.u32 %v4475_v13, %v3936_v11  ;;  %2488 = vmatpush.bf16.msra.mxu0 %v4021_v10  ;;  %v3976_v11 = vld [vmem:[#allocation16 + $0x190] sm:$0xf]  ;;  %v4485_v13 = vld [vmem:[#allocation16 + $0x194] sm:$0xf0] }
 0x387   : > { %2174 = vmatpush.bf16.msra.mxu3 %v3838_v16  ;;  %v3938_v16 = vld [vmem:[#allocation16 + $0x148] sm:$0xf0] }
 0x388   : > { %v3941_v17 = vor.u32 %v4474_v14, %v3938_v16  ;;  %v4484_v14 = vld [vmem:[#allocation16 + $0x194] sm:$0xf]  ;;  %v3977_v16 = vor.u32 %v4485_v13, %v3976_v11  ;;  %v4075_v11 = vld [vmem:[#allocation15 + $0x258] sm:$0xf0]  ;;  %v4522_v13 = vld [vmem:[#allocation15 + $0x2c4] sm:$0xf] }
 0x389   : > { %2161 = vmatpush.bf16.msrb.mxu1 %v3774_v29  ;;  %v3928_v29 = vld [vmem:[#allocation16 + $0x130] sm:$0xf] }
 0x38a   : > { %2489 = vmatpush.bf16.msra.mxu0 %v4013_v27  ;;  %v4483_v27 = vld [vmem:[#allocation16 + $0x184] sm:$0xf0] }
 0x38b   : > { %2461 = vmatpush.bf16.msrb.mxu3 %v4025_v58  ;;  %v4486_v58 = vld [vmem:[#allocation16 + $0x1a4] sm:$0xf] }
 0x38c   : > { %v3989_v63 = vor.u32 %v4486_v58, %v3986_v61 }
 0x38f   : > { %2462 = vmatpush.bf16.msrb.mxu3 %v4017_v8  ;;  %v3906_v8 = vld [vmem:[#allocation16 + $0x108] sm:$0xf0] }
 0x393   : > { %2463 = vmatpush.bf16.msrb.mxu3 %v4009_v21 }
 0x3f7   : > { %v1907_v32 = vpop.f32.mrf.mxu1 }
 0x3f8   : > { %v1908_v3 = vadd.f32 %v1907_v32, %v1734_v12  ;;  %v3929_v32 = vor.u32 %v4473_v30, %v3928_v29  ;;  %v4490_v12 = vld [vmem:[#allocation16 + $0x1c4] sm:$0xf] }
 0x3f9   : > { %v4482_v29 = vld [vmem:[#allocation16 + $0x184] sm:$0xf] }
 0x3fd   : > { %v1933_v25 = vpop.f32.mrf.mxu2  ;;  %v1946_v35 = vpop.f32.mrf.mxu0 }
 0x3fe   : > { %v1934_v37 = vadd.f32 %v1933_v25, %v1735_v22  ;;  %v3933_v22 = vor.u32 %v4472_v31, %v3930_v33  ;;  %v4000_v25 = vld [vmem:[#allocation16 + $0x1c0] sm:$0xf]  ;;  %v3969_v31 = vor.u32 %v4483_v27, %v3968_v26 }
 0x3ff   : > { %v1909_v38 = vpop.f32.mrf.mxu1 }
 0x400   : > { %v1947_v28 = vadd.f32 %v1946_v35, %v1934_v37  ;;  %v4491_v35 = vld [vmem:[#allocation16 + $0x1c4] sm:$0xf0]  ;;  %v5599_v37 = vld [vmem:[%s5671_s17 + $0x2] sm:$0x3] }
 0x401   : > { %v4001_v38 = vor.u32 %v4491_v35, %v4000_v25  ;;  %v1991_v6 = vperm.slane %v5599_v37, 1 }
 0x402   : > { %v5587_v0 = vadd.f32 %v1947_v28, %v5550_v34  ;;  %v3960_v34 = vld [vmem:[#allocation16 + $0x170] sm:$0xf]  ;;  %v4002_v28 = vld [vmem:[#allocation16 + $0x1c8] sm:$0xf0] }
 0x403   : > { %v1920_v39 = vpop.f32.mrf.mxu3  ;;  %v3961_v49 = vor.u32 %v4481_v48, %v3960_v34  ;;  %2464 = vmatpush.bf16.msrb.mxu3 %v4001_v38  ;;  %v4489_v34 = vld [vmem:[#allocation16 + $0x1b4] sm:$0xf0]  ;;  %v4488_v48 = vld [vmem:[#allocation16 + $0x1b4] sm:$0xf] }
 0x404   : > { %v1986_v40 = vpack.c.bf16 %v5587_v0, %v5587_v0  ;;  %v1921_v41 = vadd.f32 %v1920_v39, %v1908_v3  ;;  %v4005_v3 = vor.u32 %v4490_v12, %v4002_v28  ;;  %v3920_v39 = vld [vmem:[#allocation16 + $0x120] sm:$0xf]  ;;  %v3997_v51 = vor.u32 %v4488_v48, %v3994_v23  ;;  %v4153_v12 = vld [vmem:[#allocation15 + $0x2f0] sm:$0xf]  ;;  %v4528_v28 = vld [vmem:[#allocation15 + $0x2f4] sm:$0xf] }
 0x405   : > { %v1935_v43 = vpop.f32.mrf.mxu2  ;;  %v1948_v42 = vpop.f32.mrf.mxu0  ;;  %2448 = vmatpush.bf16.msra.mxu1 %v3961_v49  ;;  %v1990_v49 = vperm.slane %v5599_v37, 0  ;;  %v4529_v37 = vld [vmem:[#allocation15 + $0x2f4] sm:$0xf0] }
 0x406   : > { %v5592_v44 = vadd.f32 %v1921_v41, %v5554_v36  ;;  %2175 = vmatmul.bf16.vlgmr.msra.gmra.mxu3 %v1986_v40  ;;  %2201 = vmatmul.bf16.vlgmr.msrb.gmra.mxu0 %v1986_v40  ;;  %v4478_v36 = vld [vmem:[#allocation16 + $0x164] sm:$0xf]  ;;  %v4471_v40 = vld [vmem:[#allocation16 + $0x124] sm:$0xf0]  ;;  %v3922_v42 = vld [vmem:[#allocation16 + $0x128] sm:$0xf0]  ;;  %v4154_v38 = vor.u32 %v4529_v37, %v4153_v12 }
 0x407   : > { %v3957_v46 = vor.u32 %v4478_v36, %v3954_v54  ;;  %v4470_v41 = vld [vmem:[#allocation16 + $0x124] sm:$0xf]  ;;  %v3921_v43 = vor.u32 %v4471_v40, %v3920_v39  ;;  %2490 = vmatpush.bf16.msra.mxu0 %v4005_v3  ;;  %v4469_v36 = vld [vmem:[#allocation16 + $0x114] sm:$0xf0]  ;;  %v4155_v3 = vld [vmem:[#allocation15 + $0x2f8] sm:$0xf0] }
 0x408   : > { %v1985_v45 = vpack.c.bf16 %v5592_v44, %v5592_v44  ;;  %v3913_v54 = vor.u32 %v4469_v36, %v3912_v52  ;;  %v4089_v39 = vld [vmem:[#allocation15 + $0x270] sm:$0xf]  ;;  %v4147_v52 = vld [vmem:[#allocation15 + $0x2e8] sm:$0xf0]  ;;  %v4081_v36 = vld [vmem:[#allocation15 + $0x260] sm:$0xf] }
 0x409   : > { %2449 = vmatpush.bf16.msra.mxu1 %v3953_v53  ;;  %2475 = vmatpush.bf16.msrb.mxu2 %v3957_v46  ;;  %v4468_v53 = vld [vmem:[#allocation16 + $0x114] sm:$0xf]  ;;  %v3914_v46 = vld [vmem:[#allocation16 + $0x118] sm:$0xf0] }
 0x40a   : > { %2162 = vmatmul.bf16.vlgmr.msrb.gmra.mxu1 %v1985_v45  ;;  %2188 = vmatmul.bf16.vlgmr.msra.gmra.mxu2 %v1985_v45  ;;  %v3925_v45 = vor.u32 %v4470_v41, %v3922_v42  ;;  %v3917_v55 = vor.u32 %v4468_v53, %v3914_v46  ;;  %v4158_v41 = vor.u32 %v4528_v28, %v4155_v3  ;;  %v4145_v42 = vld [vmem:[#allocation15 + $0x2e0] sm:$0xf]  ;;  %v4511_v53 = vld [vmem:[#allocation15 + $0x264] sm:$0xf0] }
 0x40b   : > { %v1922_v47 = vpop.f32.mrf.mxu3  ;;  %2491 = vmatpush.bf16.msra.mxu0 %v3997_v51  ;;  %v4526_v51 = vld [vmem:[#allocation15 + $0x2e4] sm:$0xf]  ;;  %v4082_v46 = vor.u32 %v4511_v53, %v4081_v36  ;;  %v4123_v36 = vld [vmem:[#allocation15 + $0x2b8] sm:$0xf0]  ;;  %v4057_v53 = vld [vmem:[#allocation15 + $0x230] sm:$0xf] }
 0x40c   : > { %v3992_v47 = vld [vmem:[#allocation16 + $0x1b0] sm:$0xf] }
 0x40d   : > { %2450 = vmatpush.bf16.msra.mxu1 %v3945_v1  ;;  %2476 = vmatpush.bf16.msrb.mxu2 %v3949_v4  ;;  %v3993_v50 = vor.u32 %v4489_v34, %v3992_v47  ;;  %v3904_v1 = vld [vmem:[#allocation16 + $0x100] sm:$0xf]  ;;  %v4466_v4 = vld [vmem:[#allocation16 + $0x104] sm:$0xf] }
 0x40e   : > { %v3905_v7 = vor.u32 %v4467_v2, %v3904_v1  ;;  %v3909_v10 = vor.u32 %v4466_v4, %v3906_v8  ;;  %v4073_v1 = vld [vmem:[#allocation15 + $0x250] sm:$0xf]  ;;  %v4509_v2 = vld [vmem:[#allocation15 + $0x254] sm:$0xf0]  ;;  %v4523_v8 = vld [vmem:[#allocation15 + $0x2c4] sm:$0xf0] }
 0x40f   : > { %2465 = vmatpush.bf16.msrb.mxu3 %v3993_v50  ;;  %2492 = vmatpush.bf16.msra.mxu0 %v3989_v63  ;;  %v4091_v50 = vld [vmem:[#allocation15 + $0x278] sm:$0xf0] }
 0x410   : > { %v4139_v63 = vld [vmem:[#allocation15 + $0x2d8] sm:$0xf0] }
 0x411   : > { %2451 = vmatpush.bf16.msra.mxu1 %v3937_v15  ;;  %2477 = vmatpush.bf16.msrb.mxu2 %v3941_v17  ;;  %v3978_v17 = vld [vmem:[#allocation16 + $0x198] sm:$0xf0] }
 0x412   : > { %v3981_v19 = vor.u32 %v4484_v14, %v3978_v17 }
 0x413   : > { %2466 = vmatpush.bf16.msrb.mxu3 %v3985_v60  ;;  %v4524_v60 = vld [vmem:[#allocation15 + $0x2d4] sm:$0xf] }
 0x414   : > { %2493 = vmatpush.bf16.msra.mxu0 %v3981_v19 }
 0x415   : > { %2452 = vmatpush.bf16.msra.mxu1 %v3929_v32  ;;  %2478 = vmatpush.bf16.msrb.mxu2 %v3933_v22  ;;  %v3970_v32 = vld [vmem:[#allocation16 + $0x188] sm:$0xf0] }
 0x416   : > { %v3973_v22 = vor.u32 %v4482_v29, %v3970_v32 }
 0x417   : > { %2467 = vmatpush.bf16.msrb.mxu3 %v3977_v16  ;;  %v4131_v16 = vld [vmem:[#allocation15 + $0x2c8] sm:$0xf0] }
 0x418   : > { %2494 = vmatpush.bf16.msra.mxu0 %v3973_v22  ;;  %v4134_v19 = vor.u32 %v4522_v13, %v4131_v16  ;;  %v4516_v13 = vld [vmem:[#allocation15 + $0x294] sm:$0xf]  ;;  %v4041_v16 = vld [vmem:[#allocation15 + $0x210] sm:$0xf] }
 0x419   : > { %2453 = vmatpush.bf16.msra.mxu1 %v3921_v43  ;;  %2479 = vmatpush.bf16.msrb.mxu2 %v3925_v45  ;;  %v4513_v43 = vld [vmem:[#allocation15 + $0x274] sm:$0xf0]  ;;  %v4527_v45 = vld [vmem:[#allocation15 + $0x2e4] sm:$0xf0] }
 0x41a   : > { %v4090_v48 = vor.u32 %v4513_v43, %v4089_v39 }
 0x41b   : > { %2468 = vmatpush.bf16.msrb.mxu3 %v3969_v31 }
 0x41c   : > { %2743 = vmatpush.bf16.msrb.mxu0 %v4158_v41 }
 0x41d   : > { %2454 = vmatpush.bf16.msra.mxu1 %v3913_v54  ;;  %2480 = vmatpush.bf16.msrb.mxu2 %v3917_v55  ;;  %v4150_v54 = vor.u32 %v4526_v51, %v4147_v52  ;;  %v4137_v55 = vld [vmem:[#allocation15 + $0x2d0] sm:$0xf]  ;;  %v4520_v52 = vld [vmem:[#allocation15 + $0x2b4] sm:$0xf] }
 0x41e   : > { %v4138_v58 = vor.u32 %v4525_v56, %v4137_v55  ;;  %v4113_v55 = vld [vmem:[#allocation15 + $0x2a0] sm:$0xf] }
 0x41f   : > { %2717 = vmatpush.bf16.msra.mxu3 %v4154_v38 }
 0x420   : > { %2744 = vmatpush.bf16.msrb.mxu0 %v4150_v54  ;;  %v4126_v54 = vor.u32 %v4520_v52, %v4123_v36 }
 0x421   : > { %2455 = vmatpush.bf16.msra.mxu1 %v3905_v7  ;;  %2481 = vmatpush.bf16.msrb.mxu2 %v3909_v10  ;;  %v4129_v7 = vld [vmem:[#allocation15 + $0x2c0] sm:$0xf]  ;;  %v4508_v10 = vld [vmem:[#allocation15 + $0x254] sm:$0xf] }
 0x425   : > { %2704 = vmatpush.bf16.msrb.mxu1 %v4090_v48 }
 0x429   : > { %2705 = vmatpush.bf16.msrb.mxu1 %v4082_v46  ;;  %v4505_v46 = vld [vmem:[#allocation15 + $0x234] sm:$0xf0] }
 0x42a   : > { %v4058_v56 = vor.u32 %v4505_v46, %v4057_v53  ;;  %v4545_v53 = vld [vmem:[#allocation16 + $0x274] sm:$0xf0] }
 0x483   : > { %v2202_v24 = vpop.f32.mrf.mxu0 }
 0x487   : > { %v2163_v59 = vpop.f32.mrf.mxu1 }
 0x488   : > { %v2164_v62 = vadd.f32 %v2163_v59, %v1990_v49  ;;  %v4512_v49 = vld [vmem:[#allocation15 + $0x274] sm:$0xf]  ;;  %v4083_v59 = vld [vmem:[#allocation15 + $0x268] sm:$0xf0] }
 0x489   : > { %v2176_v5 = vpop.f32.mrf.mxu3  ;;  %v4094_v23 = vor.u32 %v4512_v49, %v4091_v50  ;;  %v4506_v49 = vld [vmem:[#allocation15 + $0x244] sm:$0xf]  ;;  %v4067_v50 = vld [vmem:[#allocation15 + $0x248] sm:$0xf0] }
 0x48a   : > { %v5603_v9 = vadd.f32 %v2176_v5, %v2164_v62  ;;  %v4086_v62 = vor.u32 %v4510_v57, %v4083_v59  ;;  %v4142_v5 = vor.u32 %v4524_v60, %v4139_v63  ;;  %v4070_v51 = vor.u32 %v4506_v49, %v4067_v50  ;;  %v4059_v59 = vld [vmem:[#allocation15 + $0x238] sm:$0xf0]  ;;  %v4518_v60 = vld [vmem:[#allocation15 + $0x2a4] sm:$0xf] }
 0x48b   : > { %v2204_v15 = vpop.f32.mrf.mxu0  ;;  %2730 = vmatpush.bf16.msra.mxu2 %v4094_v23 }
 0x48c   : > { %v3899_v18 = vmul.f32 -1.442695, %v5603_v9  ;;  %v4130_v15 = vor.u32 %v4523_v8, %v4129_v7  ;;  %2745 = vmatpush.bf16.msrb.mxu0 %v4142_v5  ;;  %v4502_v7 = vld [vmem:[#allocation15 + $0x224] sm:$0xf]  ;;  %v4051_v8 = vld [vmem:[#allocation15 + $0x228] sm:$0xf0] }
 0x48d   : > { %v2189_v20 = vpop.f32.mrf.mxu2 }
 0x48e   : > { %4740 = vpow2.f32 %v3899_v18  ;;  %v2190_v21 = vadd.f32 %v2189_v20, %v1991_v6  ;;  %v4074_v6 = vor.u32 %v4509_v2, %v4073_v1  ;;  %v4078_v18 = vor.u32 %v4508_v10, %v4075_v11  ;;  %v4049_v1 = vld [vmem:[#allocation15 + $0x220] sm:$0xf]  ;;  %v4503_v2 = vld [vmem:[#allocation15 + $0x224] sm:$0xf0] }
 0x48f   : > { %v2165_v30 = vpop.f32.mrf.mxu1  ;;  %2731 = vmatpush.bf16.msra.mxu2 %v4086_v62  ;;  %v4115_v62 = vld [vmem:[#allocation15 + $0x2a8] sm:$0xf0]  ;;  %v4050_v5 = vor.u32 %v4503_v2, %v4049_v1  ;;  %v4054_v11 = vor.u32 %v4502_v7, %v4051_v8  ;;  %v4286_v2 = vld [vmem:[#allocation16 + $0x2f8] sm:$0xf0]  ;;  %v4540_v7 = vld [vmem:[#allocation16 + $0x254] sm:$0xf] }
 0x490   : > { %v5606_v33 = vadd.f32 %v2202_v24, %v2190_v21  ;;  %v4146_v24 = vor.u32 %v4527_v45, %v4145_v42  ;;  %2706 = vmatpush.bf16.msrb.mxu1 %v4074_v6  ;;  %2746 = vmatpush.bf16.msrb.mxu0 %v4134_v19  ;;  %v4118_v63 = vor.u32 %v4518_v60, %v4115_v62  ;;  %v4517_v6 = vld [vmem:[#allocation15 + $0x294] sm:$0xf0] }
 0x491   : > { %v2178_v25 = vpop.f32.mrf.mxu3  ;;  %v4561_v62 = vld [vmem:[#allocation16 + $0x2f4] sm:$0xf0] }
 0x492   : > { %v3900_v35 = vmul.f32 -1.442695, %v5606_v33  ;;  %2718 = vmatpush.bf16.msra.mxu3 %v4146_v24  ;;  %v4521_v24 = vld [vmem:[#allocation15 + $0x2b4] sm:$0xf0] }
 0x493   : > { %2732 = vmatpush.bf16.msra.mxu2 %v4078_v18  ;;  %v4097_v18 = vld [vmem:[#allocation15 + $0x280] sm:$0xf] }
 0x494   : > { %v4741_v40 = vpop.eup %4740  ;;  %4742 = vpow2.f32 %v3900_v35  ;;  %2747 = vmatpush.bf16.msrb.mxu0 %v4126_v54  ;;  %v4544_v54 = vld [vmem:[#allocation16 + $0x274] sm:$0xf] }
 0x495   : > { %v5609_v47 = vadd.f32 1.0, %v4741_v40  ;;  %v2191_v34 = vpop.f32.mrf.mxu2 }
 0x496   : > { %2719 = vmatpush.bf16.msra.mxu3 %v4138_v58  ;;  %v4121_v34 = vld [vmem:[#allocation15 + $0x2b0] sm:$0xf]  ;;  %v4504_v58 = vld [vmem:[#allocation15 + $0x234] sm:$0xf] }
 0x497   : > { %4744 = vrcp.f32 %v5609_v47  ;;  %v2225_v21 = vand.u32 2147483648, %v5609_v47  ;;  %v2223_v27 = vand.u32 2147483647, %v5609_v47  ;;  %vm2219_vm8 = vweird.f32 %v5609_v47  ;;  %2733 = vmatpush.bf16.msra.mxu2 %v4070_v51 }
 0x498   : > { %v4122_v23 = vor.u32 %v4521_v24, %v4121_v34  ;;  %2748 = vmatpush.bf16.msrb.mxu0 %v4118_v63  ;;  %v4560_v63 = vld [vmem:[#allocation16 + $0x2f4] sm:$0xf] }
 0x499   : > { %v2226_v32 = vor.u32 1.1754944e-38, %v2225_v21  ;;  %vm2224_vm10 = vcmp.eq.f32.partialorder %v2223_v27, 8.507059e+37  ;;  %v4500_v21 = vld [vmem:[#allocation15 + $0x214] sm:$0xf] }
 0x49a   : > { %v4743_v61 = vpop.eup %4742  ;;  %2720 = vmatpush.bf16.msra.mxu3 %v4130_v15 }
 0x49b   : > { %v2213_v4 = vadd.f32 1.0, %v4743_v61  ;;  %v4062_v61 = vor.u32 %v4504_v58, %v4059_v59  ;;  %v4214_v59 = vld [vmem:[#allocation16 + $0x268] sm:$0xf0] }
 0x49d   : > { %v4745_v14 = vpop.eup %4744  ;;  %4746 = vrcp.f32 %v2213_v4  ;;  %v2240_v12 = vand.u32 2147483648, %v2213_v4  ;;  %v2238_v28 = vand.u32 2147483647, %v2213_v4  ;;  %vm2234_vm12 = vweird.f32 %v2213_v4  ;;  %2734 = vmatpush.bf16.msra.mxu2 %v4062_v61  ;;  %v4284_v61 = vld [vmem:[#allocation16 + $0x2f0] sm:$0xf] }
 0x49e   : > { %v2215_v17 = vmul.f32 %v4745_v14, %v5609_v47  ;;  %vm2220_vm7 = vweird.f32 %v4745_v14  ;;  %v4065_v47 = vld [vmem:[#allocation15 + $0x240] sm:$0xf]  ;;  %2721 = vmatpush.bf16.msra.mxu3 %v4122_v23  ;;  %v4285_v1 = vor.u32 %v4561_v62, %v4284_v61 }
 0x49f   : > { %vm2221_vm9 = vmor %vm2219_vm8, %vm2220_vm7  ;;  %v2241_v40 = vor.u32 1.1754944e-38, %v2240_v12  ;;  %vm2239_vm14 = vcmp.eq.f32.partialorder %v2238_v28, 8.507059e+37  ;;  %v4244_v62 = vld [vmem:[#allocation16 + $0x2a0] sm:$0xf] }
 0x4a0   : > { %v2216_v20 = vsub.f32 1.0, %v2215_v17  ;;  %v4501_v17 = vld [vmem:[#allocation15 + $0x214] sm:$0xf0] }
 0x4a1   : > { %2735 = vmatpush.bf16.msra.mxu2 %v4054_v11  ;;  %v4042_v19 = vor.u32 %v4501_v17, %v4041_v16  ;;  %v4278_v17 = vld [vmem:[#allocation16 + $0x2e8] sm:$0xf0] }
 0x4a2   : > { %v2217_v26 = vmul.f32 %v4745_v14, %v2216_v20  ;;  %v4515_v20 = vld [vmem:[#allocation15 + $0x284] sm:$0xf0] }
 0x4a3   : > { %v4747_v29 = vpop.eup %4746  ;;  %v4098_v27 = vor.u32 %v4515_v20, %v4097_v18  ;;  %v4539_v20 = vld [vmem:[#allocation16 + $0x244] sm:$0xf0] }
 0x4a4   : > { %v2218_v30 = vadd.f32 %v4745_v14, %v2217_v26  ;;  %v2230_v31 = vmul.f32 %v4747_v29, %v2213_v4  ;;  %vm2235_vm11 = vweird.f32 %v4747_v29  ;;  %v4105_v4 = vld [vmem:[#allocation15 + $0x290] sm:$0xf]  ;;  %v4043_v26 = vld [vmem:[#allocation15 + $0x218] sm:$0xf0] }
 0x4a5   : > { %vm2236_vm13 = vmor %vm2234_vm12, %vm2235_vm11  ;;  %v4106_v10 = vor.u32 %v4517_v6, %v4105_v4  ;;  %v4289_v4 = vor.u32 %v4560_v63, %v4286_v2  ;;  %v4541_v6 = vld [vmem:[#allocation16 + $0x254] sm:$0xf0]  ;;  %v4551_v63 = vld [vmem:[#allocation16 + $0x2a4] sm:$0xf0] }
 0x4a6   : > { %v2222_v22 = vsel %vm2221_vm9, %v4745_v14, %v2218_v30  ;;  %v2231_v25 = vsub.f32 1.0, %v2230_v31  ;;  %v4107_v14 = vld [vmem:[#allocation15 + $0x298] sm:$0xf0]  ;;  %v4514_v30 = vld [vmem:[#allocation15 + $0x284] sm:$0xf] }
 0x4a7   : > { %v2227_v35 = vsel %vm2224_vm10, %v2226_v32, %v2222_v22  ;;  %v4110_v15 = vor.u32 %v4516_v13, %v4107_v14  ;;  %v4099_v31 = vld [vmem:[#allocation15 + $0x288] sm:$0xf0]  ;;  %v4033_v22 = vld [vmem:[#allocation15 + $0x200] sm:$0xf]  ;;  %v4559_v14 = vld [vmem:[#allocation16 + $0x2e4] sm:$0xf0] }
 0x4a8   : > { %v2244_v37 = vmul.f32 %v2227_v35, %v5603_v9  ;;  %v2232_v38 = vmul.f32 %v4747_v29, %v2231_v25  ;;  %v4507_v9 = vld [vmem:[#allocation15 + $0x244] sm:$0xf0]  ;;  %v4102_v32 = vor.u32 %v4514_v30, %v4099_v31  ;;  %v4498_v35 = vld [vmem:[#allocation15 + $0x204] sm:$0xf]  ;;  %v4276_v13 = vld [vmem:[#allocation16 + $0x2e0] sm:$0xf] }
 0x4a9   : > { %v4066_v48 = vor.u32 %v4507_v9, %v4065_v47  ;;  %2749 = vmatpush.bf16.msrb.mxu0 %v4110_v15  ;;  %v4499_v25 = vld [vmem:[#allocation15 + $0x204] sm:$0xf0]  ;;  %v4558_v15 = vld [vmem:[#allocation16 + $0x2e4] sm:$0xf]  ;;  %v4277_v16 = vor.u32 %v4559_v14, %v4276_v13  ;;  %v4268_v30 = vld [vmem:[#allocation16 + $0x2d0] sm:$0xf] }
 0x4aa   : > { %v2279_v3 = vpack.c.bf16 %v2244_v37, %v2244_v37  ;;  %v2233_v39 = vadd.f32 %v4747_v29, %v2232_v38  ;;  %v4034_v12 = vor.u32 %v4499_v25, %v4033_v22  ;;  %v4035_v37 = vld [vmem:[#allocation15 + $0x208] sm:$0xf0]  ;;  %v4281_v18 = vor.u32 %v4558_v15, %v4278_v17  ;;  %v4557_v31 = vld [vmem:[#allocation16 + $0x2d4] sm:$0xf0]  ;;  %v4270_v25 = vld [vmem:[#allocation16 + $0x2d8] sm:$0xf0] }
 0x4ab   : > { %2707 = vmatpush.bf16.msrb.mxu1 %v4066_v48  ;;  %v4038_v38 = vor.u32 %v4498_v35, %v4035_v37  ;;  %v4269_v22 = vor.u32 %v4557_v31, %v4268_v30  ;;  %v4537_v37 = vld [vmem:[#allocation16 + $0x234] sm:$0xf0] }
 0x4ac   : > { %v2237_v41 = vsel %vm2236_vm13, %v4747_v29, %v2233_v39  ;;  %2456 = vmatmul.bf16.vlgmr.msra.gmra.mxu1 %v2279_v3  ;;  %2482 = vmatmul.bf16.vlgmr.msrb.gmra.mxu2 %v2279_v3  ;;  %v4046_v29 = vor.u32 %v4500_v21, %v4043_v26  ;;  %v3901_v3 = vld [vmem:[%s5673_s19 + $0x2] sm:$0x3] }
 0x4ad   : > { %v2242_v43 = vsel %vm2239_vm14, %v2241_v40, %v2237_v41  ;;  %2750 = vmatpush.bf16.msrb.mxu0 %v4102_v32  ;;  %v2285_v39 = vperm.slane %v3901_v3, 1  ;;  %v4538_v21 = vld [vmem:[#allocation16 + $0x244] sm:$0xf]  ;;  %v4556_v32 = vld [vmem:[#allocation16 + $0x2d4] sm:$0xf] }
 0x4ae   : > { %v2245_v42 = vmul.f32 %v2242_v43, %v5606_v33  ;;  %v4519_v33 = vld [vmem:[#allocation15 + $0x2a4] sm:$0xf0]  ;;  %2736 = vmatpush.bf16.msra.mxu2 %v4046_v29  ;;  %v2284_v43 = vperm.slane %v3901_v3, 0  ;;  %v4273_v35 = vor.u32 %v4556_v32, %v4270_v25  ;;  %v4190_v3 = vld [vmem:[#allocation16 + $0x238] sm:$0xf0] }
 0x4af   : > { %v4114_v57 = vor.u32 %v4519_v33, %v4113_v55  ;;  %2708 = vmatpush.bf16.msrb.mxu1 %v4058_v56  ;;  %v4222_v55 = vld [vmem:[#allocation16 + $0x278] sm:$0xf0]  ;;  %v4212_v56 = vld [vmem:[#allocation16 + $0x260] sm:$0xf] }
 0x4b0   : > { %v2280_v45 = vpack.c.bf16 %v2245_v42, %v2245_v42  ;;  %v4225_v33 = vor.u32 %v4544_v54, %v4222_v55  ;;  %v4228_v25 = vld [vmem:[#allocation16 + $0x280] sm:$0xf] }
 0x4b1   : > { %2722 = vmatpush.bf16.msra.mxu3 %v4114_v57  ;;  %v4543_v57 = vld [vmem:[#allocation16 + $0x264] sm:$0xf0] }
 0x4b2   : > { %2469 = vmatmul.bf16.vlgmr.msrb.gmra.mxu3 %v2280_v45  ;;  %2495 = vmatmul.bf16.vlgmr.msra.gmra.mxu0 %v2280_v45  ;;  %v4213_v58 = vor.u32 %v4543_v57, %v4212_v56  ;;  %v4172_v57 = vld [vmem:[#allocation16 + $0x210] sm:$0xf] }
 0x4b3   : > { %2709 = vmatpush.bf16.msrb.mxu1 %v4050_v5  ;;  %2737 = vmatpush.bf16.msra.mxu2 %v4038_v38  ;;  %v4204_v5 = vld [vmem:[#allocation16 + $0x250] sm:$0xf]  ;;  %v4536_v38 = vld [vmem:[#allocation16 + $0x234] sm:$0xf] }
 0x4b4   : > { %v4205_v8 = vor.u32 %v4541_v6, %v4204_v5  ;;  %3037 = vmatpush.bf16.msra.mxu0 %v4289_v4  ;;  %v4245_v4 = vor.u32 %v4551_v63, %v4244_v62  ;;  %v4246_v5 = vld [vmem:[#allocation16 + $0x2a8] sm:$0xf0] }
 0x4b5   : > { %2723 = vmatpush.bf16.msra.mxu3 %v4106_v10  ;;  %v4206_v10 = vld [vmem:[#allocation16 + $0x258] sm:$0xf0] }
 0x4b6   : > { %v4209_v11 = vor.u32 %v4540_v7, %v4206_v10  ;;  %v4531_v10 = vld [vmem:[#allocation16 + $0x204] sm:$0xf0] }
 0x4b7   : > { %2710 = vmatpush.bf16.msrb.mxu1 %v4042_v19  ;;  %3024 = vmatpush.bf16.msrb.mxu2 %v4225_v33  ;;  %v4196_v19 = vld [vmem:[#allocation16 + $0x240] sm:$0xf]  ;;  %v4254_v33 = vld [vmem:[#allocation16 + $0x2b8] sm:$0xf0] }
 0x4b8   : > { %v4197_v26 = vor.u32 %v4539_v20, %v4196_v19  ;;  %3038 = vmatpush.bf16.msra.mxu0 %v4281_v18  ;;  %v4236_v19 = vld [vmem:[#allocation16 + $0x290] sm:$0xf]  ;;  %v4549_v20 = vld [vmem:[#allocation16 + $0x294] sm:$0xf0] }
 0x4b9   : > { %2724 = vmatpush.bf16.msra.mxu3 %v4098_v27  ;;  %v4198_v27 = vld [vmem:[#allocation16 + $0x248] sm:$0xf0] }
 0x4ba   : > { %v4201_v29 = vor.u32 %v4538_v21, %v4198_v27  ;;  %v4548_v21 = vld [vmem:[#allocation16 + $0x294] sm:$0xf]  ;;  %v4237_v27 = vor.u32 %v4549_v20, %v4236_v19  ;;  %v4563_v19 = vld [vmem:[#allocation18 + $0x8] sm:$0xff]  ;;  %v4570_v20 = vld [vmem:[#allocation18 + $0x40] sm:$0xff] }
 0x4bb   : > { %2711 = vmatpush.bf16.msrb.mxu1 %v4034_v12  ;;  %v4188_v12 = vld [vmem:[#allocation16 + $0x230] sm:$0xf] }
 0x4bc   : > { %3039 = vmatpush.bf16.msra.mxu0 %v4273_v35  ;;  %v4547_v35 = vld [vmem:[#allocation16 + $0x284] sm:$0xf0] }
 0x4bd   : > { %3011 = vmatpush.bf16.msrb.mxu3 %v4285_v1  ;;  %v4550_v1 = vld [vmem:[#allocation16 + $0x2a4] sm:$0xf] }
 0x4be   : > { %v4249_v7 = vor.u32 %v4550_v1, %v4246_v5 }
 0x4c1   : > { %3012 = vmatpush.bf16.msrb.mxu3 %v4277_v16  ;;  %v4166_v16 = vld [vmem:[#allocation16 + $0x208] sm:$0xf0] }
 0x4c5   : > { %3013 = vmatpush.bf16.msrb.mxu3 %v4269_v22 }
 0x529   : > { %v2457_v28 = vpop.f32.mrf.mxu1 }
 0x52a   : > { %v2458_v9 = vadd.f32 %v2457_v28, %v2284_v43  ;;  %v4189_v28 = vor.u32 %v4537_v37, %v4188_v12  ;;  %v4554_v43 = vld [vmem:[#allocation16 + $0x2c4] sm:$0xf] }
 0x52b   : > { %v4546_v12 = vld [vmem:[#allocation16 + $0x284] sm:$0xf] }
 0x52f   : > { %v2483_v40 = vpop.f32.mrf.mxu2  ;;  %v2496_v41 = vpop.f32.mrf.mxu0 }
 0x530   : > { %v2484_v42 = vadd.f32 %v2483_v40, %v2285_v39  ;;  %v4193_v39 = vor.u32 %v4536_v38, %v4190_v3  ;;  %v4260_v40 = vld [vmem:[#allocation16 + $0x2c0] sm:$0xf]  ;;  %v4229_v38 = vor.u32 %v4547_v35, %v4228_v25 }
 0x531   : > { %v2459_v45 = vpop.f32.mrf.mxu1 }
 0x532   : > { %v2497_v47 = vadd.f32 %v2496_v41, %v2484_v42  ;;  %v4555_v41 = vld [vmem:[#allocation16 + $0x2c4] sm:$0xf0]  ;;  %v5634_v42 = vld [vmem:[%s5671_s17 + $0x4] sm:$0x3] }
 0x533   : > { %v4261_v45 = vor.u32 %v4555_v41, %v4260_v40  ;;  %v2541_v14 = vperm.slane %v5634_v42, 1 }
 0x534   : > { %v5622_v34 = vadd.f32 %v2497_v47, %v5587_v0  ;;  %v4220_v0 = vld [vmem:[#allocation16 + $0x270] sm:$0xf]  ;;  %v4262_v47 = vld [vmem:[#allocation16 + $0x2c8] sm:$0xf0] }
 0x535   : > { %v2470_v48 = vpop.f32.mrf.mxu3  ;;  %v4221_v46 = vor.u32 %v4545_v53, %v4220_v0  ;;  %3014 = vmatpush.bf16.msrb.mxu3 %v4261_v45  ;;  %v4553_v0 = vld [vmem:[#allocation16 + $0x2b4] sm:$0xf0]  ;;  %v4552_v53 = vld [vmem:[#allocation16 + $0x2b4] sm:$0xf] }
 0x536   : > { %v2536_v24 = vpack.c.bf16 %v5622_v34, %v5622_v34  ;;  %v2471_v49 = vadd.f32 %v2470_v48, %v2458_v9  ;;  %v4265_v9 = vor.u32 %v4554_v43, %v4262_v47  ;;  %v4180_v48 = vld [vmem:[#allocation16 + $0x220] sm:$0xf]  ;;  %v4257_v56 = vor.u32 %v4552_v53, %v4254_v33  ;;  %v4577_v43 = vld [vmem:[#allocation18 + $0x78] sm:$0xff]  ;;  %v4576_v47 = vld [vmem:[#allocation18 + $0x70] sm:$0xff] }
 0x537   : > { %v2485_v50 = vpop.f32.mrf.mxu2  ;;  %v2498_v23 = vpop.f32.mrf.mxu0  ;;  %2998 = vmatpush.bf16.msra.mxu1 %v4221_v46  ;;  %v2540_v46 = vperm.slane %v5634_v42, 0  ;;  %v4569_v42 = vld [vmem:[#allocation18 + $0x38] sm:$0xff] }
 0x538   : > { %v5627_v51 = vadd.f32 %v2471_v49, %v5592_v44  ;;  %2725 = vmatmul.bf16.vlgmr.msra.gmra.mxu3 %v2536_v24  ;;  %2751 = vmatmul.bf16.vlgmr.msrb.gmra.mxu0 %v2536_v24  ;;  %v4542_v44 = vld [vmem:[#allocation16 + $0x264] sm:$0xf]  ;;  %v4535_v24 = vld [vmem:[#allocation16 + $0x224] sm:$0xf0]  ;;  %v4182_v23 = vld [vmem:[#allocation16 + $0x228] sm:$0xf0] }
 0x539   : > { %v4217_v60 = vor.u32 %v4542_v44, %v4214_v59  ;;  %v4534_v49 = vld [vmem:[#allocation16 + $0x224] sm:$0xf]  ;;  %v4181_v50 = vor.u32 %v4535_v24, %v4180_v48  ;;  %3040 = vmatpush.bf16.msra.mxu0 %v4265_v9  ;;  %v4533_v44 = vld [vmem:[#allocation16 + $0x214] sm:$0xf0]  ;;  %v4568_v9 = vld [vmem:[#allocation18 + $0x30] sm:$0xff] }
 0x53a   : > { %v2535_v52 = vpack.c.bf16 %v5627_v51, %v5627_v51  ;;  %v4173_v59 = vor.u32 %v4533_v44, %v4172_v57 }
 0x53b   : > { %2999 = vmatpush.bf16.msra.mxu1 %v4213_v58  ;;  %3025 = vmatpush.bf16.msrb.mxu2 %v4217_v60  ;;  %v4532_v58 = vld [vmem:[#allocation16 + $0x214] sm:$0xf]  ;;  %v4174_v60 = vld [vmem:[#allocation16 + $0x218] sm:$0xf0] }
 0x53c   : > { %2712 = vmatmul.bf16.vlgmr.msrb.gmra.mxu1 %v2535_v52  ;;  %2738 = vmatmul.bf16.vlgmr.msra.gmra.mxu2 %v2535_v52  ;;  %v4185_v52 = vor.u32 %v4534_v49, %v4182_v23  ;;  %v4177_v61 = vor.u32 %v4532_v58, %v4174_v60  ;;  %v4575_v49 = vld [vmem:[#allocation18 + $0x68] sm:$0xff] }
 0x53d   : > { %v2472_v36 = vpop.f32.mrf.mxu3  ;;  %3041 = vmatpush.bf16.msra.mxu0 %v4257_v56 }
 0x53e   : > { %v4252_v36 = vld [vmem:[#allocation16 + $0x2b0] sm:$0xf] }
 0x53f   : > { %3000 = vmatpush.bf16.msra.mxu1 %v4205_v8  ;;  %3026 = vmatpush.bf16.msrb.mxu2 %v4209_v11  ;;  %v4253_v55 = vor.u32 %v4553_v0, %v4252_v36  ;;  %v4164_v8 = vld [vmem:[#allocation16 + $0x200] sm:$0xf]  ;;  %v4530_v11 = vld [vmem:[#allocation16 + $0x204] sm:$0xf] }
 0x540   : > { %v4165_v15 = vor.u32 %v4531_v10, %v4164_v8  ;;  %v4169_v18 = vor.u32 %v4530_v11, %v4166_v16  ;;  %v4574_v36 = vld [vmem:[#allocation18 + $0x60] sm:$0xff]  ;;  %v4572_v16 = vld [vmem:[#allocation18 + $0x50] sm:$0xff] }
 0x541   : > { %3015 = vmatpush.bf16.msrb.mxu3 %v4253_v55  ;;  %3042 = vmatpush.bf16.msra.mxu0 %v4249_v7 }
 0x543   : > { %3001 = vmatpush.bf16.msra.mxu1 %v4197_v26  ;;  %3027 = vmatpush.bf16.msrb.mxu2 %v4201_v29  ;;  %v4238_v29 = vld [vmem:[#allocation16 + $0x298] sm:$0xf0] }
 0x544   : > { %v4241_v31 = vor.u32 %v4548_v21, %v4238_v29  ;;  %v4562_v21 = vld [vmem:[#allocation18] sm:$0xff] }
 0x545   : > { %3016 = vmatpush.bf16.msrb.mxu3 %v4245_v4 }
 0x546   : > { %3043 = vmatpush.bf16.msra.mxu0 %v4241_v31 }
 0x547   : > { %3002 = vmatpush.bf16.msra.mxu1 %v4189_v28  ;;  %3028 = vmatpush.bf16.msrb.mxu2 %v4193_v39  ;;  %v4230_v28 = vld [vmem:[#allocation16 + $0x288] sm:$0xf0] }
 0x548   : > { %v4233_v39 = vor.u32 %v4546_v12, %v4230_v28 }
 0x549   : > { %3017 = vmatpush.bf16.msrb.mxu3 %v4237_v27  ;;  %v4161_v27 = vld [vmem:[%s5673_s19 + $0x4] sm:$0x3] }
 0x54a   : > { %3044 = vmatpush.bf16.msra.mxu0 %v4233_v39  ;;  %v2835_v29 = vperm.slane %v4161_v27, 1 }
 0x54b   : > { %3003 = vmatpush.bf16.msra.mxu1 %v4181_v50  ;;  %3029 = vmatpush.bf16.msrb.mxu2 %v4185_v52  ;;  %v4567_v50 = vld [vmem:[#allocation18 + $0x28] sm:$0xff] }
 0x54d   : > { %3018 = vmatpush.bf16.msrb.mxu3 %v4229_v38 }
 0x54f   : > { %3004 = vmatpush.bf16.msra.mxu1 %v4173_v59  ;;  %3030 = vmatpush.bf16.msrb.mxu2 %v4177_v61 }
 0x551   : > { %3199 = vmatpush.bf16.msra.mxu3 %v4577_v43 }
 0x553   : > { %3005 = vmatpush.bf16.msra.mxu1 %v4165_v15  ;;  %3031 = vmatpush.bf16.msrb.mxu2 %v4169_v18  ;;  %v4565_v15 = vld [vmem:[#allocation18 + $0x18] sm:$0xff]  ;;  %v4571_v18 = vld [vmem:[#allocation18 + $0x48] sm:$0xff] }
 0x555   : > { %3200 = vmatpush.bf16.msra.mxu3 %v4576_v47 }
 0x557   : > { %3186 = vmatpush.bf16.msrb.mxu1 %v4569_v42 }
 0x559   : > { %3201 = vmatpush.bf16.msra.mxu3 %v4575_v49 }
 0x55b   : > { %3187 = vmatpush.bf16.msrb.mxu1 %v4568_v9 }
 0x55d   : > { %3202 = vmatpush.bf16.msra.mxu3 %v4574_v36 }
 0x55f   : > { %3188 = vmatpush.bf16.msrb.mxu1 %v4567_v50 }
 0x5b5   : > { %v2752_v54 = vpop.f32.mrf.mxu0 }
 0x5b9   : > { %v2713_v2 = vpop.f32.mrf.mxu1 }
 0x5ba   : > { %v2714_v6 = vadd.f32 %v2713_v2, %v2540_v46 }
 0x5bb   : > { %v2726_v13 = vpop.f32.mrf.mxu3 }
 0x5bc   : > { %v5638_v17 = vadd.f32 %v2726_v13, %v2714_v6  ;;  %v4566_v13 = vld [vmem:[#allocation18 + $0x20] sm:$0xff] }
 0x5bd   : > { %v2754_v26 = vpop.f32.mrf.mxu0  ;;  %3189 = vmatpush.bf16.msrb.mxu1 %v4566_v13 }
 0x5be   : > { %v4159_v30 = vmul.f32 -1.442695, %v5638_v17 }
 0x5bf   : > { %v2739_v32 = vpop.f32.mrf.mxu2 }
 0x5c0   : > { %4748 = vpow2.f32 %v4159_v30  ;;  %v2740_v22 = vadd.f32 %v2739_v32, %v2541_v14  ;;  %v4573_v14 = vld [vmem:[#allocation18 + $0x58] sm:$0xff]  ;;  %v2834_v32 = vperm.slane %v4161_v27, 0 }
 0x5c1   : > { %v2715_v37 = vpop.f32.mrf.mxu1  ;;  %3203 = vmatpush.bf16.msra.mxu3 %v4573_v14  ;;  %3190 = vmatpush.bf16.msrb.mxu1 %v4565_v15 }
 0x5c2   : > { %v2753_v3 = vadd.f32 %v2752_v54, %v2740_v22 }
 0x5c3   : > { %v2728_v40 = vpop.f32.mrf.mxu3 }
 0x5c4   : > { %v4160_v41 = vmul.f32 -1.442695, %v2753_v3 }
 0x5c5   : > { %3204 = vmatpush.bf16.msra.mxu3 %v4572_v16 }
 0x5c6   : > { %v4749_v45 = vpop.eup %4748  ;;  %4750 = vpow2.f32 %v4160_v41 }
 0x5c7   : > { %v2762_v48 = vadd.f32 1.0, %v4749_v45  ;;  %v2741_v24 = vpop.f32.mrf.mxu2  ;;  %v4723_v45 = vld [vmem:[#allocation19] ss:$0 sm:$0xff] }
 0x5c9   : > { %4752 = vrcp.f32 %v2762_v48  ;;  %v2775_v46 = vand.u32 2147483648, %v2762_v48  ;;  %v2773_v33 = vand.u32 2147483647, %v2762_v48  ;;  %vm2769_vm1 = vweird.f32 %v2762_v48  ;;  %3205 = vmatpush.bf16.msra.mxu3 %v4571_v18 }
 0x5cb   : > { %v2776_v58 = vor.u32 1.1754944e-38, %v2775_v46  ;;  %vm2774_vm2 = vcmp.eq.f32.partialorder %v2773_v33, 8.507059e+37 }
 0x5cc   : > { %v4751_v23 = vpop.eup %4750 }
 0x5cd   : > { %v2763_v52 = vadd.f32 1.0, %v4751_v23  ;;  %3206 = vmatpush.bf16.msra.mxu3 %v4570_v20 }
 0x5cf   : > { %v4753_v0 = vpop.eup %4752  ;;  %4754 = vrcp.f32 %v2763_v52  ;;  %v2790_v62 = vand.u32 2147483648, %v2763_v52  ;;  %v2788_v2 = vand.u32 2147483647, %v2763_v52  ;;  %vm2784_vm4 = vweird.f32 %v2763_v52 }
 0x5d0   : > { %v2765_v53 = vmul.f32 %v4753_v0, %v2762_v48  ;;  %vm2770_vm0 = vweird.f32 %v4753_v0 }
 0x5d1   : > { %vm2771_vm15 = vmor %vm2769_vm1, %vm2770_vm0  ;;  %v2791_v6 = vor.u32 1.1754944e-38, %v2790_v62  ;;  %vm2789_vm6 = vcmp.eq.f32.partialorder %v2788_v2, 8.507059e+37 }
 0x5d2   : > { %v2766_v54 = vsub.f32 1.0, %v2765_v53 }
 0x5d4   : > { %v2767_v55 = vmul.f32 %v4753_v0, %v2766_v54 }
 0x5d5   : > { %v4755_v56 = vpop.eup %4754 }
 0x5d6   : > { %v2768_v57 = vadd.f32 %v4753_v0, %v2767_v55  ;;  %v2780_v44 = vmul.f32 %v4755_v56, %v2763_v52  ;;  %vm2785_vm3 = vweird.f32 %v4755_v56 }
 0x5d7   : > { %vm2786_vm5 = vmor %vm2784_vm4, %vm2785_vm3 }
 0x5d8   : > { %v2772_v59 = vsel %vm2771_vm15, %v4753_v0, %v2768_v57  ;;  %v2781_v60 = vsub.f32 1.0, %v2780_v44 }
 0x5d9   : > { %v2777_v61 = vsel %vm2774_vm2, %v2776_v58, %v2772_v59 }
 0x5da   : > { %v2794_v63 = vmul.f32 %v2777_v61, %v5638_v17  ;;  %v2782_v1 = vmul.f32 %v4755_v56, %v2781_v60  ;;  %v4564_v17 = vld [vmem:[#allocation18 + $0x10] sm:$0xff] }
 0x5db   : > { %3191 = vmatpush.bf16.msrb.mxu1 %v4564_v17 }
 0x5dc   : > { %v2829_v4 = vpack.c.bf16 %v2794_v63, %v2794_v63  ;;  %v2783_v5 = vadd.f32 %v4755_v56, %v2782_v1 }
 0x5de   : > { %v2787_v7 = vsel %vm2786_vm5, %v4755_v56, %v2783_v5  ;;  %3006 = vmatmul.bf16.vlgmr.msra.gmra.mxu1 %v2829_v4  ;;  %3032 = vmatmul.bf16.vlgmr.msrb.gmra.mxu2 %v2829_v4 }
 0x5df   : > { %v2792_v8 = vsel %vm2789_vm6, %v2791_v6, %v2787_v7  ;;  %3192 = vmatpush.bf16.msrb.mxu1 %v4563_v19 }
 0x5e0   : > { %v2795_v10 = vmul.f32 %v2792_v8, %v2753_v3 }
 0x5e2   : > { %v2830_v11 = vpack.c.bf16 %v2795_v10, %v2795_v10 }
 0x5e3   : > { %3193 = vmatpush.bf16.msrb.mxu1 %v4562_v21 }
 0x5e4   : > { %3019 = vmatmul.bf16.vlgmr.msrb.gmra.mxu3 %v2830_v11  ;;  %3045 = vmatmul.bf16.vlgmr.msra.gmra.mxu0 %v2830_v11 }
 0x65b   : > { %v3007_v26 = vpop.f32.mrf.mxu1 }
 0x65c   : > { %v3008_v12 = vadd.f32 %v3007_v26, %v2834_v32 }
 0x661   : > { %v3033_v30 = vpop.f32.mrf.mxu2  ;;  %v3046_v31 = vpop.f32.mrf.mxu0 }
 0x662   : > { %v3034_v22 = vadd.f32 %v3033_v30, %v2835_v29 }
 0x663   : > { %v3009_v25 = vpop.f32.mrf.mxu1 }
 0x664   : > { %v3047_v35 = vadd.f32 %v3046_v31, %v3034_v22 }
 0x666   : > { %v3051_v37 = vadd.f32 %v3047_v35, %v5622_v34 }
 0x667   : > { %v3020_v38 = vpop.f32.mrf.mxu3 }
 0x668   : > { %v3085_v28 = vpack.c.bf16 %v3051_v37, %v3051_v37  ;;  %v3021_v3 = vadd.f32 %v3020_v38, %v3008_v12 }
 0x669   : > { %v3035_v39 = vpop.f32.mrf.mxu2  ;;  %v3048_v40 = vpop.f32.mrf.mxu0 }
 0x66a   : > { %v3050_v41 = vadd.f32 %v3021_v3, %v5627_v51  ;;  %3207 = vmatmul.bf16.vlgmr.msra.gmra.mxu3 %v3085_v28 }
 0x66c   : > { %v3084_v43 = vpack.c.bf16 %v3050_v41, %v3050_v41 }
 0x66e   : > { %3194 = vmatmul.bf16.vlgmr.msrb.gmra.mxu1 %v3084_v43 }
 0x66f   : > { %v3022_v42 = vpop.f32.mrf.mxu3 }
 0x6eb   : > { %v3195_v47 = vpop.f32.mrf.mxu1 }
 0x6ec   : > { %v3196_v9 = vadd.f32 %v4723_v45, %v3195_v47 }
 0x6ed   : > { %v3208_v48 = vpop.f32.mrf.mxu3 }
 0x6ee   : > { %v3209_v24 = vadd.f32 %v3208_v48, %v3196_v9 }
 0x6f0   : > { %v3212_v34 = vpack.c.bf16 %v3209_v24, %v3209_v24 }
 0x6f2   : > { %3213 = vst [vmem:[%s897_s6] sm:$0xf] %v3212_v34 }
 0x6f3   : > { %v3197_v49 = vpop.f32.mrf.mxu1 }
 0x6f5   : > { %v3210_v50 = vpop.f32.mrf.mxu3 }
 0x6f6 PF: > { %s39_s3 = sadd.s32 1, %s5150_s3  }
 0x6f7   : > { %p36_p7 = scmp.ge.s32.totalorder %s39_s3, 4  }
 0x6f9   :  { %38 = sbr.rel (!%p36_p7) target bundleno = 20 (0x14), region = 201 }
 0x6fe   :  { %3233 = vsyncpa [#allocation3], 1 }
 0x6ff   :  { %3235 = vsyncpa [#allocation3 + $0x1], 1 }
 0x700   :  { %3236 = vsyncpa [#allocation5], 1 }
 0x701   :  { %3237 = vsyncpa [#allocation8], 1 }
 0x702   :  { %3238 = vsyncpa [#allocation11], 1 }
 0x703   :  { %3239 = vsyncpa [#allocation14], 1 }
 0x704   :  { %3240 = vsyncpa [#allocation17], 1 }
 0x705   :  { %3241 = vsyncpa [#allocation20], 1 }

// kernel: res_mlp_denoiser.1
= control target key start
LH: loop header
LB: loop body
LE: loop exit
PB: predicated region body
PF: predicated region fallthrough
CT: control target
= control target key end

     0   :  { %s5654_s0 = inlined_call_operand.vmem [shape: f32[16,1], index: 0, kind: input, shape index: {}]   ;;  %s5655_s1 = inlined_call_operand.vmem [shape: f32[16,8], index: 1, kind: input, shape index: {}]   ;;  %s5656_s2 = inlined_call_operand.vmem [shape: f32[16,8], index: 2, kind: input, shape index: {}]   ;;  %s5657_s3 = inlined_call_operand.vmem [shape: f32[2,32], index: 3, kind: input, shape index: {}]   ;;  %s5658_s4 = inlined_call_operand.vmem [shape: bf16[32,32], index: 4, kind: input, shape index: {}]   ;;  %s5659_s5 = inlined_call_operand.hbm [shape: f32[1,32], index: 5, kind: input, shape index: {}]   ;;  %s5660_s6 = inlined_call_operand.vmem [shape: bf16[32,32], index: 6, kind: input, shape index: {}]   ;;  %s5661_s7 = inlined_call_operand.hbm [shape: f32[1,32], index: 7, kind: input, shape index: {}]   ;;  %s5662_s8 = inlined_call_operand.hbm [shape: bf16[8,32], index: 8, kind: input, shape index: {}]   ;;  %s5663_s9 = inlined_call_operand.hbm [shape: f32[1,32], index: 9, kind: input, shape index: {}]   ;;  %s5664_s10 = inlined_call_operand.hbm [shape: bf16[32,32], index: 10, kind: input, shape index: {}]   ;;  %s5665_s11 = inlined_call_operand.hbm [shape: f32[1,32], index: 11, kind: input, shape index: {}]   ;;  %s5666_s12 = inlined_call_operand.vmem [shape: bf16[8,256], index: 12, kind: input, shape index: {}]   ;;  %s5667_s13 = inlined_call_operand.vmem [shape: bf16[32,256], index: 13, kind: input, shape index: {}]   ;;  %s5668_s14 = inlined_call_operand.hbm [shape: bf16[32,256], index: 14, kind: input, shape index: {}]   ;;  %s5669_s15 = inlined_call_operand.hbm [shape: f32[1,256], index: 15, kind: input, shape index: {}]   ;;  %s5670_s16 = inlined_call_operand.hbm [shape: bf16[3,256,256], index: 16, kind: input, shape index: {}]   ;;  %s5671_s17 = inlined_call_operand.vmem [shape: f32[3,1,256], index: 17, kind: input, shape index: {}]   ;;  %s5672_s18 = inlined_call_operand.hbm [shape: bf16[3,256,256], index: 18, kind: input, shape index: {}]   ;;  %s5673_s19 = inlined_call_operand.vmem [shape: f32[3,1,256], index: 19, kind: input, shape index: {}]   ;;  %s5674_s20 = inlined_call_operand.hbm [shape: bf16[256,128], index: 20, kind: input, shape index: {}]   ;;  %s5675_s21 = inlined_call_operand.hbm [shape: f32[1,128], index: 21, kind: input, shape index: {}]   ;;  %s5676_s22 = inlined_call_operand.vmem [shape: bf16[16,128], index: 22, kind: output, shape index: {}]  }
   0x1   :  { %5681 = sst [smem:[#allocation28_spill]] %s5654_s0 }
   0x2   :  { %5682 = sst [smem:[#allocation29_spill]] %s5655_s1 }
   0x3   :  { %5683 = sst [smem:[#allocation30_spill]] %s5656_s2 }
   0x4   :  { %5684 = sst [smem:[#allocation31_spill]] %s5657_s3 }
   0x5   :  { %5685 = sst [smem:[#allocation32_spill]] %s5658_s4 }
   0x6   :  { %5686 = sst [smem:[#allocation33_spill]] %s5659_s5 }
   0x7   :  { %5687 = sst [smem:[#allocation34_spill]] %s5660_s6 }
   0x8   :  { %5688 = sst [smem:[#allocation35_spill]] %s5661_s7 }
   0x9   :  { %5689 = sst [smem:[#allocation36_spill]] %s5662_s8 }
   0xa   :  { %5690 = sst [smem:[#allocation37_spill]] %s5663_s9 }
   0xb   :  { %5691 = sst [smem:[#allocation38_spill]] %s5665_s11 }
   0xc   :  { %5692 = sst [smem:[#allocation39_spill]] %s5669_s15 }
   0xd   :  { %27 = vsyncpa [#allocation3], 0 }
   0xe   :  { %28 = vsyncpa [#allocation5], 0 }
   0xf   :  { %29 = vsyncpa [#allocation8], 0 }
  0x10   :  { %30 = vsyncpa [#allocation11], 0 }
  0x11   :  { %31 = vsyncpa [#allocation14], 0 }
  0x12   :  { %32 = vsyncpa [#allocation17], 0 }
  0x13   :  { %33 = vsyncpa [#allocation20], 0  ;;  %s5290_s3 = smov 0  }
  0x14 LB: > { %s5693_s7 = sld [smem:[#allocation35_spill]]  ;;  %s5299_s4 = sadd.s32 4294967295, %s5150_s3   ;;  %s5150_s3 = sphi %s5290_s3, %s39_s3  }
  0x15   : > { %p3410_p0 = scmp.ge.s32.totalorder %s5150_s3, 1  ;;  %p547_p1 = scmp.lt.s32.totalorder %s5150_s3, 3 }
  0x16   : > { %p4663_p2 = scmp.eq.s32.totalorder %s5299_s4, 0  ;;  %s5152_s23 = smov [#allocation4]  }
  0x17   : > { %p5304_p3 = pnand %p3410_p0, %p547_p1  ;;  %s582_s1 = sshll.u32 %s5152_s23, 4  ;;  %s583_s1 = int_to_ptr.vmem [resolvable:$true] %s582_s1 }
  0x18   : > { %s5695_s9 = sld [smem:[#allocation37_spill]]  ;;  %s5153_s28 = smov [#allocation7]  }
  0x19   : > { %p4626_p4 = pneg %p5304_p3  ;;  %s5696_s11 = sld [smem:[#allocation38_spill]] }
  0x1a   : > { %s580_s30 = sshll.u32 %s5693_s7, 4  ;;  %s606_s29 = sshll.u32 %s5153_s28, 4  ;;  %s581_s30 = int_to_ptr.hbm [resolvable:$true] %s580_s30  ;;  %s607_s29 = int_to_ptr.vmem [resolvable:$true] %s606_s29 }
  0x1b   : > { %p5318_p5 = pnand %p4663_p2, %p4626_p4  ;;  %s5154_s23 = smov [#allocation10]  }
  0x1c   : > { %s632_s5 = sshll.u32 %s5154_s23, 4  ;;  %s5698_s15 = sld [smem:[#allocation39_spill]]  ;;  %s633_s5 = int_to_ptr.vmem [resolvable:$true] %s632_s5 }
  0x1d   : > { %4632 = dma.hbm_to_vmem [thread:$0]  (!%p5318_p5), %s581_s30, 16, %s583_s1, [#allocation5]  }
  0x1e   : > { %s604_s6 = sshll.u32 %s5695_s9, 4  ;;  %s5155_s7 = smov [#allocation13]   ;;  %s605_s6 = int_to_ptr.hbm [resolvable:$true] %s604_s6 }
  0x1f   : > { %s630_s2 = sshll.u32 %s5696_s11, 4  ;;  %s664_s9 = sshll.u32 %s5155_s7, 4  ;;  %s631_s2 = int_to_ptr.hbm [resolvable:$true] %s630_s2  ;;  %s665_s9 = int_to_ptr.vmem [resolvable:$true] %s664_s9 }
  0x20   : > { %4638 = dma.hbm_to_vmem [thread:$0]  (!%p5318_p5), %s605_s6, 16, %s607_s29, [#allocation8]  }
  0x21   : > { %4644 = dma.hbm_to_vmem [thread:$0]  (!%p5318_p5), %s631_s2, 16, %s633_s5, [#allocation11]  }
  0x22   : > { %s662_s26 = sshll.u32 %s5698_s15, 4  ;;  %s690_s30 = sshll.u32 %s5672_s18, 4  ;;  %s663_s26 = int_to_ptr.hbm [resolvable:$true] %s662_s26  ;;  %s691_s30 = int_to_ptr.hbm [resolvable:$true] %s690_s30 }
  0x23   : > { %4650 = dma.hbm_to_vmem [thread:$0]  (!%p5318_p5), %s663_s26, 32, %s665_s9, [#allocation14]  }
  0x24   : > { %s5156_s1 = smov [#allocation16]   ;;  %s5699_s24 = sld [smem:[#allocation33_spill]] }
  0x25   : > { %s692_s6 = sshll.u32 %s5156_s1, 4  ;;  %s5679_s2 = smov 128   ;;  %s693_s6 = int_to_ptr.vmem [resolvable:$true] %s692_s6 }
  0x26   : > { %s5158_s7 = smov 8   ;;  %s5700_s8 = sld [smem:[#allocation36_spill]] }
  0x27   : > { %4656 = dma.hbm_to_vmem [thread:$0]  (!%p5318_p5), %s691_s30, 12288, %s693_s6, [#allocation17], %s5679_s2, %s5679_s2, %s5158_s7  }
  0x28   : > { %s5159_s26 = smov [#allocation2]   ;;  %s5160_s1 = smov [#allocation6]  }
  0x29   : > { %s567_s28 = sshll.u32 %s5159_s26, 4  ;;  %s594_s29 = sshll.u32 %s5160_s1, 4  ;;  %s568_s28 = int_to_ptr.vmem [resolvable:$true] %s567_s28  ;;  %s595_s29 = int_to_ptr.vmem [resolvable:$true] %s594_s29 }
  0x2a   : > { %s565_s25 = sshll.u32 %s5699_s24, 4  ;;  %s615_s15 = sshll.u32 %s5664_s10, 4  ;;  %s566_s25 = int_to_ptr.hbm [resolvable:$true] %s565_s25  ;;  %s616_s15 = int_to_ptr.hbm [resolvable:$true] %s615_s15 }
  0x2b   : > { %4629 = dma.hbm_to_vmem [thread:$0]  (!%p5318_p5), %s566_s25, 16, %s568_s28, [#allocation3]  }
  0x2c   : > { %s592_s9 = sshll.u32 %s5700_s8, 4  ;;  %s5161_s30 = smov [#allocation9]   ;;  %s593_s9 = int_to_ptr.hbm [resolvable:$true] %s592_s9 }
  0x2d   : > { %4635 = dma.hbm_to_vmem [thread:$0]  (!%p5318_p5), %s593_s9, 64, %s595_s29, [#allocation5]  }
  0x2e   : > { %s617_s6 = sshll.u32 %s5161_s30, 4  ;;  %s647_s26 = sshll.u32 %s5668_s14, 4  ;;  %s618_s6 = int_to_ptr.vmem [resolvable:$true] %s617_s6  ;;  %s648_s26 = int_to_ptr.hbm [resolvable:$true] %s647_s26 }
  0x2f   : > { %s5162_s25 = smov 64   ;;  %s5163_s28 = smov 4  }
  0x30   : > { %4641 = dma.hbm_to_vmem [thread:$0]  (!%p5318_p5), %s616_s15, 256, %s618_s6, [#allocation8], %s5162_s25, %s5162_s25, %s5163_s28  }
  0x31   : > { %s5164_s1 = smov [#allocation12]   ;;  %s673_s9 = sshll.u32 %s5670_s16, 4  ;;  %s674_s9 = int_to_ptr.hbm [resolvable:$true] %s673_s9 }
  0x32   : > { %s649_s23 = sshll.u32 %s5164_s1, 4  ;;  %s5701_s29 = smov 128   ;;  %s650_s23 = int_to_ptr.vmem [resolvable:$true] %s649_s23 }
  0x33   : > { %4647 = dma.hbm_to_vmem [thread:$0]  (!%p5318_p5), %s648_s26, 512, %s650_s23, [#allocation11], %s5701_s29, %s5701_s29, %s5158_s7  }
  0x34   : > { %s707_s15 = sshll.u32 %s5674_s20, 4  ;;  %s5165_s6 = smov [#allocation15]   ;;  %s708_s15 = int_to_ptr.hbm [resolvable:$true] %s707_s15 }
  0x35   : > { %s675_s5 = sshll.u32 %s5165_s6, 4  ;;  %s5166_s2 = smov [#allocation18]   ;;  %s676_s5 = int_to_ptr.vmem [resolvable:$true] %s675_s5 }
  0x36   : > { %4653 = dma.hbm_to_vmem [thread:$0]  (!%p5318_p5), %s674_s9, 12288, %s676_s5, [#allocation14], %s5701_s29, %s5701_s29, %s5158_s7  }
  0x37   : > { %s709_s1 = sshll.u32 %s5166_s2, 4  ;;  %s722_s26 = sshll.u32 %s5675_s21, 4  ;;  %s710_s1 = int_to_ptr.vmem [resolvable:$true] %s709_s1  ;;  %s723_s26 = int_to_ptr.hbm [resolvable:$true] %s722_s26 }
  0x38   : > { %4659 = dma.hbm_to_vmem [thread:$0]  (!%p5318_p5), %s708_s15, 2048, %s710_s1, [#allocation17], %s5162_s25, %s5162_s25, %s5163_s28  }
  0x39   : > { %s5167_s23 = smov [#allocation19]   ;;  %758 = sbr.rel (%p5304_p3) target bundleno = 1782 (0x6f6), region = 108 }
  0x3a   : > { %s724_s30 = sshll.u32 %s5167_s23, 4  ;;  %s725_s30 = int_to_ptr.vmem [resolvable:$true] %s724_s30 }
  0x3b   : > { %4662 = dma.hbm_to_vmem [thread:$0]  (!%p5318_p5), %s723_s26, 16, %s725_s30, [#allocation20]  }
  0x3e   : > { %5121 = dma.done.wait (%p4663_p2), [#allocation3], 16  }
  0x3f   : > { %5123 = vsyncadd (%p4663_p2), [#allocation3], 4294967280 }
  0x40   : > { %5125 = dma.done.wait (%p4663_p2), [#allocation5], 80  }
  0x41   : > { %5127 = vsyncadd (%p4663_p2), [#allocation5], 4294967216 }
  0x42   : > { %5129 = dma.done.wait (%p4663_p2), [#allocation8], 272  }
  0x43   : > { %5131 = vsyncadd (%p4663_p2), [#allocation8], 4294967024 }
  0x44   : > { %5133 = dma.done.wait (%p4663_p2), [#allocation11], 528  }
  0x45   : > { %5135 = vsyncadd (%p4663_p2), [#allocation11], 4294966768 }
  0x46   : > { %5137 = dma.done.wait (%p4663_p2), [#allocation14], 12320  }
  0x47   : > { %5139 = vsyncadd (%p4663_p2), [#allocation14], 4294954976 }
  0x48   : > { %5141 = dma.done.wait (%p4663_p2), [#allocation17], 14336  }
  0x49   : > { %5143 = vsyncadd (%p4663_p2), [#allocation17], 4294952960 }
  0x4a   : > { %5145 = dma.done.wait (%p4663_p2), [#allocation20], 16  }
  0x4b   : > { %5147 = vsyncadd (%p4663_p2), [#allocation20], 4294967280  ;;  %p882_p6 = scmp.lt.s32.totalorder %s5299_s4, 1  ;;  %v5168_v0 = vmov 0   ;;  %s5702_s7 = sld [smem:[#allocation28_spill]]  ;;  %vm1171_vm0 = vcmask 1043456  }
  0x4c   : > { %4718 = vset.pattern.permute.xlu0 %v5168_v0  ;;  %s5703_s29 = sld [smem:[#allocation30_spill]]  ;;  %v1161_v2 = vld [vmem:[#allocation6] sm:$0xf]  ;;  %vm1167_vm1 = vcmask 64512   ;;  %v5169_v25 = vmov 683565275  }
  0x4d   : > { %s5709_s4 = smov (!%p882_p6, %s5299_s4), 1  ;;  %v1173_v3 = vsel %vm1171_vm0, %v1161_v2, 0  ;;  %s5704_s5 = sld [smem:[#allocation31_spill]]  ;;  %v5170_v27 = vmov 2475754826  }
  0x4e   : > { %s5418_s8 = sshll.u32 %s5709_s4, 3  ;;  %1182 = vmatpush.bf16.msra.mxu2 %v1173_v3  ;;  %s5705_s24 = sld [smem:[#allocation32_spill]]  ;;  %v5171_v30 = vmov 2131351028   ;;  %v5172_v33 = vmov 2102212464  }
  0x4f   : > { %v5173_v36 = vmov 920167782   ;;  %v5174_v39 = vmov 1326507024   ;;  %s5706_s27 = sld [smem:[#allocation34_spill]] }
  0x50   : > { %s5707_s23 = sld [smem:[#allocation29_spill]] }
  0x51   : > { %s885_s25 = scalar_lea.vmem %s5702_s7, %s5418_s8 }
  0x52   : > { %v900_v1 = vld [vmem:[%s885_s25] sm:$0xff]  ;;  %s893_s11 = scalar_lea.vmem %s5703_s29, %s5418_s8 }
  0x53   : > { %903 = vperm.xlu0 %4718, %v900_v1   ;;  %v1160_v4 = vld [vmem:[%s893_s11] sm:$0xff]  ;;  %s3440_s11 = sshll.u32 %s5709_s4, 2 }
  0x54   : > { %v1162_v5 = vpack.c.bf16 %v1160_v4, %v1160_v4  ;;  %v899_v6 = vld [vmem:[%s5704_s5] sm:$0x3]  ;;  %v4357_v11 = vld [vmem:[%s5705_s24 + $0x8] sm:$0xff]  ;;  %s897_s6 = scalar_lea.vmem %s5676_s22, %s3440_s11 }
  0x55   : > { %v906_v7 = vperm.slane %v899_v6, 0  ;;  %v908_v8 = vperm.slane %v899_v6, 1  ;;  %1096 = vmatpush.bf16.msra.mxu0 %v4357_v11  ;;  %v4356_v13 = vld [vmem:[%s5705_s24] sm:$0xff] }
  0x56   : > { %3463 = vmatmul.msk.bf16.vlgmr.msra.gmra.mxu2 %vm1167_vm1, %v1162_v5  ;;  %s889_s30 = scalar_lea.vmem %s5707_s23, %s5418_s8 }
  0x59   : > { %1097 = vmatpush.bf16.msra.mxu0 %v4356_v13 }
  0xc5   : > { %v904_v9 = vpop.permute.xlu0 %903 }
  0xc6   : > { %v907_v10 = vmul.f32 %v906_v7, %v904_v9 }
  0xc8   : > { %v5436_v12 = vadd.f32 %v908_v8, %v907_v10 }
  0xca   : > { %v913_v14 = vand.u32 2139095040, %v5436_v12  ;;  %v910_v17 = vand.u32 2147483647, %v5436_v12  ;;  %vm912_vm14 = vcmp.lt.s32.totalorder %v5436_v12, 0 }
  0xcc   : > { %v914_v15 = vshrl.u32 %v913_v14, 23  ;;  %v917_v19 = vand.u32 8388607, %v910_v17  ;;  %vm911_vm15 = vcmp.le.f32.partialorder %v910_v17, 0.7853982 }
  0xce   : > { %v3441_v16 = vadd.s32 4294967169, %v914_v15  ;;  %v918_v23 = vor.u32 8388608, %v917_v19 }
  0xd0   : > { %v920_v18 = vadd.s32 1, %v3441_v16  ;;  %v5456_v46 = vshll.u32 %v918_v23, 8 }
  0xd2   : > { %vm921_vm2 = vcmp.gt.s32.totalorder %v920_v18, 0  ;;  %v959_v55 = vand.u32 65535, %v5456_v46  ;;  %v960_v60 = vshrl.u32 %v5456_v46, 16 }
  0xd3   : > { %v922_v20 = vsel %vm921_vm2, %v920_v18, 0 }
  0xd4   : > { %v924_v21 = vand.u32 31, %v922_v20  ;;  %v5447_v24 = vshrl.u32 %v922_v20, 5 }
  0xd6   : > { %v5445_v22 = vsub.s32 32, %v924_v21  ;;  %v927_v26 = vshll.u32 %v5169_v25, %v924_v21  ;;  %v930_v28 = vshll.u32 %v5170_v27, %v924_v21  ;;  %v933_v32 = vshll.u32 %v5171_v30, %v924_v21 }
  0xd7   : > { %v936_v35 = vshll.u32 %v5172_v33, %v924_v21  ;;  %v939_v38 = vshll.u32 %v5173_v36, %v924_v21  ;;  %vm942_vm3 = vcmp.lt.s32.totalorder %v5447_v24, 1  ;;  %vm945_vm4 = vcmp.lt.s32.totalorder %v5447_v24, 4 }
  0xd8   : > { %v928_v29 = vshrl.u32 %v5170_v27, %v5445_v22  ;;  %v931_v31 = vshrl.u32 %v5171_v30, %v5445_v22  ;;  %v934_v34 = vshrl.u32 %v5172_v33, %v5445_v22  ;;  %v937_v37 = vshrl.u32 %v5173_v36, %v5445_v22 }
  0xd9   : > { %v940_v40 = vshrl.u32 %v5174_v39, %v5445_v22  ;;  %vm944_vm5 = vcmp.lt.s32.totalorder %v5447_v24, 3  ;;  %vm943_vm6 = vcmp.lt.s32.totalorder %v5447_v24, 2  ;;  %v926_v19 = vshrl.u32 %v5169_v25, %v5445_v22 }
  0xda   : > { %v929_v41 = vor.u32 %v928_v29, %v927_v26  ;;  %v932_v42 = vor.u32 %v931_v31, %v930_v28  ;;  %v935_v43 = vor.u32 %v934_v34, %v933_v32  ;;  %v938_v44 = vor.u32 %v937_v37, %v936_v35 }
  0xdb   : > { %v941_v45 = vor.u32 %v940_v40, %v939_v38 }
  0xdc   : > { %v950_v47 = vsel %vm942_vm3, %v929_v41, %v932_v42  ;;  %v954_v48 = vsel %vm942_vm3, %v932_v42, %v935_v43  ;;  %v951_v49 = vsel %vm945_vm4, %v938_v44, 920167782  ;;  %v947_v13 = vsel %vm945_vm4, %v935_v43, 2102212464 }
  0xdd   : > { %v955_v50 = vsel %vm945_vm4, %v941_v45, 1326507024  ;;  %v952_v51 = vsel %vm944_vm5, %v935_v43, %v951_v49  ;;  %v946_v29 = vsel %vm942_vm3, %v926_v19, %v929_v41  ;;  %v948_v30 = vsel %vm944_vm5, %v932_v42, %v947_v13 }
  0xde   : > { %v956_v52 = vsel %vm944_vm5, %v938_v44, %v955_v50  ;;  %v953_v53 = vsel %vm943_vm6, %v950_v47, %v952_v51  ;;  %v949_v22 = vsel %vm943_vm6, %v946_v29, %v948_v30  ;;  %vm1053_vm5 = vweird.f32 %v5436_v12  ;;  %v4719_v30 = vld [vmem:[#allocation7] ss:$0 sm:$0xff] }
  0xdf   : > { %v957_v54 = vsel %vm943_vm6, %v954_v48, %v956_v52  ;;  %v983_v58 = vand.u32 65535, %v953_v53  ;;  %v984_v59 = vshrl.u32 %v953_v53, 16  ;;  %v1003_v37 = vmul.u32 %v5456_v46, %v949_v22  ;;  %v4360_v22 = vld [vmem:[#allocation9] sm:$0xff] }
  0xe0   : > { %v961_v56 = vand.u32 65535, %v957_v54  ;;  %v962_v57 = vshrl.u32 %v957_v54, 16  ;;  %vm1086_vm6 = vcmask 261120  }
  0xe1   : > { %v986_v62 = vmul.u32 %v984_v59, %v959_v55  ;;  %v987_v1 = vmul.u32 %v983_v58, %v960_v60  ;;  %v985_v4 = vmul.u32 %v983_v58, %v959_v55  ;;  %v988_v7 = vmul.u32 %v984_v59, %v960_v60 }
  0xe2   : > { %v964_v61 = vmul.u32 %v962_v57, %v959_v55  ;;  %v965_v63 = vmul.u32 %v961_v56, %v960_v60  ;;  %v963_v2 = vmul.u32 %v961_v56, %v959_v55  ;;  %v966_v6 = vmul.u32 %v962_v57, %v960_v60 }
  0xe3   : > { %v989_v5 = vshll.u32 %v986_v62, 16  ;;  %v991_v9 = vshll.u32 %v987_v1, 16  ;;  %v990_v27 = vshrl.u32 %v986_v62, 16  ;;  %v992_v33 = vshrl.u32 %v987_v1, 16 }
  0xe4   : > { %v967_v3 = vshll.u32 %v964_v61, 16  ;;  %v969_v8 = vshll.u32 %v965_v63, 16  ;;  %v968_v23 = vshrl.u32 %v964_v61, 16  ;;  %v970_v31 = vshrl.u32 %v965_v63, 16 }
  0xe5   : > { %vm993_vm8 = vc.u32 %v985_v4, %v989_v5  ;;  %v995_v11 = vadd.s32 %v989_v5, %v985_v4 }
  0xe6   : > { %vm971_vm7 = vc.u32 %v963_v2, %v967_v3  ;;  %v973_v10 = vadd.s32 %v967_v3, %v963_v2  ;;  %v994_v15 = vsel %vm993_vm8, 1, %v5168_v0 }
  0xe7   : > { %v972_v14 = vsel %vm971_vm7, 1, %v5168_v0  ;;  %v996_v18 = vadd.s32 %v994_v15, %v988_v7  ;;  %vm997_vm10 = vc.u32 %v995_v11, %v991_v9  ;;  %v999_v35 = vadd.s32 %v995_v11, %v991_v9 }
  0xe8   : > { %v974_v16 = vadd.s32 %v972_v14, %v966_v6  ;;  %vm975_vm9 = vc.u32 %v973_v10, %v969_v8  ;;  %v998_v21 = vsel %vm997_vm10, 1, %v5168_v0 }
  0xe9   : > { %v976_v20 = vsel %vm975_vm9, 1, %v5168_v0  ;;  %v1000_v28 = vadd.s32 %v998_v21, %v996_v18 }
  0xea   : > { %v978_v26 = vadd.s32 %v976_v20, %v974_v16 }
  0xeb   : > { %v1001_v34 = vadd.s32 %v1000_v28, %v990_v27 }
  0xec   : > { %v979_v32 = vadd.s32 %v978_v26, %v968_v23 }
  0xed   : > { %v1002_v0 = vadd.s32 %v1001_v34, %v992_v33  ;;  %v4361_v33 = vld [vmem:[#allocation9 + $0x8] sm:$0xff] }
  0xee   : > { %v980_v25 = vadd.s32 %v979_v32, %v970_v31  ;;  %v1184_v31 = vpop.f32.mrf.mxu2  ;;  %1238 = vmatpush.bf16.msra.mxu3 %v4361_v33  ;;  %v3498_v33 = vld [vmem:[#allocation12 + $0x8] sm:$0xf0] }
  0xef   : > { %v1006_v36 = vadd.s32 1, %v1002_v0  ;;  %v1185_v32 = vadd.f32 %v4719_v30, %v1184_v31  ;;  %v3506_v30 = vld [vmem:[#allocation12 + $0x18] sm:$0xf0] }
  0xf0   : > { %vm1005_vm11 = vc.u32 %v980_v25, %v999_v35  ;;  %v1004_v49 = vadd.s32 %v999_v35, %v980_v25 }
  0xf1   : > { %v1007_v38 = vsel %vm1005_vm11, %v1006_v36, %v1002_v0  ;;  %v3464_v34 = vmul.f32 -1.442695, %v1185_v32 }
  0xf2   : > { %v1008_v39 = vadd.s32 %v1007_v38, %v1003_v37  ;;  %1239 = vmatpush.bf16.msra.mxu3 %v4360_v22  ;;  %v4721_v22 = vld [vmem:[#allocation10] ss:$0 sm:$0xff] }
  0xf3   : > { %4724 = vpow2.f32 %v3464_v34 }
  0xf4   : > { %v1009_v40 = vadd.s32 536870912, %v1008_v39 }
  0xf6   : > { %v1010_v41 = vshrl.u32 %v1009_v40, 30  ;;  %v1186_v25 = vpop.f32.mrf.mxu2 }
  0xf7   : > { %v3504_v25 = vld [vmem:[#allocation12 + $0x10] sm:$0xf] }
  0xf8   : > { %v1011_v43 = vshll.u32 %v1010_v41, 30  ;;  %v1034_v62 = vsub.s32 4, %v1010_v41 }
  0xf9   : > { %v4725_v35 = vpop.eup %4724 }
  0xfa   : > { %v1012_v42 = vsub.s32 %v1008_v39, %v1011_v43  ;;  %v1035_v4 = vsel %vm912_vm14, %v1034_v62, %v1010_v41  ;;  %v1191_v0 = vadd.f32 1.0, %v4725_v35  ;;  %v4369_v35 = vld [vmem:[#allocation12 + $0x14] sm:$0xf0] }
  0xfb   : > { %v1037_v7 = vsel %vm911_vm15, 0, %v1035_v4 }
  0xfc   : > { %vm1013_vm12 = vcmp.lt.s32.totalorder %v1012_v42, 0  ;;  %v1014_v44 = vsub.s32 0, %v1012_v42  ;;  %v1054_v13 = vadd.s32 3, %v1037_v7  ;;  %4726 = vrcp.f32 %v1191_v0  ;;  %v4362_v7 = vld [vmem:[%s5667_s13 + $0x4] sm:$0xf] }
  0xfd   : > { %v1203_v37 = vand.u32 2147483648, %v1191_v0  ;;  %vm1197_vm7 = vweird.f32 %v1191_v0  ;;  %v1201_v39 = vand.u32 2147483647, %v1191_v0 }
  0xfe   : > { %v1015_v45 = vsel %vm1013_vm12, %v1014_v44, %v1012_v42  ;;  %v1055_v18 = vand.u32 3, %v1054_v13 }
  0xff   : > { %v1016_v47 = vclz %v1015_v45  ;;  %v1204_v41 = vor.u32 1.1754944e-38, %v1203_v37  ;;  %vm1202_vm10 = vcmp.eq.f32.partialorder %v1201_v39, 8.507059e+37  ;;  %v4367_v39 = vld [vmem:[#allocation12 + $0x4] sm:$0xf0] }
 0x100   : > { %vm1057_vm2 = vcmp.eq.s32.totalorder %v1055_v18, 0  ;;  %vm1060_vm3 = vcmp.eq.s32.totalorder %v1055_v18, 2  ;;  %vm1056_vm4 = vcmp.lt.s32.totalorder %v1055_v18, 2 }
 0x101   : > { %v3442_v48 = vadd.s32 4294967294, %v1016_v47 }
 0x103   : > { %vm3443_vm13 = vcmp.lt.s32.totalorder %v3442_v48, 0 }
 0x104   : > { %v1019_v24 = vsel %vm3443_vm13, 0, %v3442_v48  ;;  %v4359_v48 = vld [vmem:[%s5706_s27 + $0x8] sm:$0xff] }
 0x105   : > { %v1020_v50 = vsub.s32 32, %v1019_v24  ;;  %v1024_v51 = vsub.s32 4294967266, %v1019_v24  ;;  %v1021_v52 = vshll.u32 %v1012_v42, %v1019_v24  ;;  %v4720_v24 = vld [vmem:[#allocation2] ss:$0 sm:$0xff]  ;;  %1153 = vmatpush.bf16.msra.mxu1 %v4359_v48 }
 0x107   : > { %v1022_v53 = vshrl.u32 %v1004_v49, %v1020_v50  ;;  %v1025_v54 = vadd.s32 127, %v1024_v51  ;;  %v4358_v50 = vld [vmem:[%s5706_s27] sm:$0xff] }
 0x109   : > { %v1023_v46 = vor.u32 %v1022_v53, %v1021_v52  ;;  %v1026_v55 = vshll.u32 %v1025_v54, 23  ;;  %1154 = vmatpush.bf16.msra.mxu1 %v4358_v50  ;;  %v3484_v53 = vld [vmem:[%s5667_s13 + $0x10] sm:$0xf]  ;;  %v4365_v54 = vld [vmem:[%s5667_s13 + $0x14] sm:$0xf0] }
 0x10a   : > { %v4400_v50 = vld [vmem:[#allocation15 + $0xf4] sm:$0xf] }
 0x10b   : > { %v1027_v56 = vor.u32 4788187, %v1026_v55  ;;  %v1030_v58 = vcvt.s32.f32 %v1023_v46  ;;  %v3485_v46 = vor.u32 %v4365_v54, %v3484_v53  ;;  %v3626_v53 = vld [vmem:[#allocation15 + $0xe0] sm:$0xf]  ;;  %v4399_v54 = vld [vmem:[#allocation15 + $0xe4] sm:$0xf0] }
 0x10d   : > { %v1028_v57 = vand.u32 2147483647, %v1027_v56  ;;  %1282 = vmatpush.bf16.msrb.mxu2 %v3485_v46 }
 0x10f   : > { %v1031_v59 = vmul.f32 %v1030_v58, %v1028_v57 }
 0x111   : > { %v1032_v60 = vxor.u32 2147483648, %v1031_v59 }
 0x113   : > { %v1033_v61 = vsel %vm912_vm14, %v1032_v60, %v1031_v59 }
 0x114   : > { %v1036_v63 = vsel %vm911_vm15, %v5436_v12, %v1033_v61  ;;  %v4727_v12 = vpop.eup %4726 }
 0x115   : > { %v1038_v1 = vmul.f32 %v1036_v63, %v1036_v63  ;;  %v1193_v36 = vmul.f32 %v4727_v12, %v1191_v0  ;;  %vm1198_vm8 = vweird.f32 %v4727_v12 }
 0x116   : > { %vm1199_vm9 = vmor %vm1197_vm7, %vm1198_vm8 }
 0x117   : > { %v1039_v2 = vmul.f32 -0.001358992, %v1038_v1  ;;  %v1046_v3 = vmul.f32 -0.00019511016, %v1038_v1  ;;  %v1194_v38 = vsub.f32 1.0, %v1193_v36  ;;  %v3505_v36 = vor.u32 %v4369_v35, %v3504_v25 }
 0x118   : > { %v3602_v35 = vld [vmem:[#allocation15 + $0xb0] sm:$0xf] }
 0x119   : > { %v1040_v5 = vadd.f32 0.041655596, %v1039_v2  ;;  %v1047_v6 = vadd.f32 0.008332121, %v1046_v3  ;;  %v1195_v40 = vmul.f32 %v4727_v12, %v1194_v38  ;;  %v4363_v2 = vld [vmem:[%s5667_s13 + $0x4] sm:$0xf0] }
 0x11a   : > { %v3496_v38 = vld [vmem:[#allocation12] sm:$0xf] }
 0x11b   : > { %v1041_v8 = vmul.f32 %v1040_v5, %v1038_v1  ;;  %v1048_v9 = vmul.f32 %v1047_v6, %v1038_v1  ;;  %v1196_v43 = vadd.f32 %v4727_v12, %v1195_v40  ;;  %v4364_v5 = vld [vmem:[%s5667_s13 + $0x14] sm:$0xf]  ;;  %v3486_v6 = vld [vmem:[%s5667_s13 + $0x18] sm:$0xf0]  ;;  %v3497_v40 = vor.u32 %v4367_v39, %v3496_v38  ;;  %v3538_v39 = vld [vmem:[#allocation15 + $0x30] sm:$0xf] }
 0x11d   : > { %v1042_v10 = vadd.f32 -0.4999988, %v1041_v8  ;;  %v1049_v11 = vadd.f32 -0.16666654, %v1048_v9  ;;  %v1200_v42 = vsel %vm1199_vm9, %v4727_v12, %v1196_v43  ;;  %v3489_v9 = vor.u32 %v4364_v5, %v3486_v6  ;;  %v4722_v43 = vld [vmem:[#allocation4] ss:$0 sm:$0xff] }
 0x11e   : > { %v1205_v44 = vsel %vm1202_vm10, %v1204_v41, %v1200_v42  ;;  %v4396_v5 = vld [vmem:[#allocation15 + $0xd4] sm:$0xf]  ;;  %v3620_v6 = vld [vmem:[#allocation15 + $0xd8] sm:$0xf0] }
 0x11f   : > { %v1043_v14 = vmul.f32 %v1042_v10, %v1038_v1  ;;  %v1050_v15 = vmul.f32 %v1049_v11, %v1038_v1  ;;  %v1207_v45 = vmul.f32 %v1205_v44, %v1185_v32  ;;  %v3476_v1 = vld [vmem:[%s5667_s13] sm:$0xf]  ;;  %v3478_v10 = vld [vmem:[%s5667_s13 + $0x8] sm:$0xf0]  ;;  %1295 = vmatpush.bf16.msrb.mxu0 %v3489_v9 }
 0x120   : > { %v3477_v3 = vor.u32 %v4363_v2, %v3476_v1  ;;  %v1246_v11 = vld [vmem:[%s5666_s12] sm:$0xff]  ;;  %v3481_v18 = vor.u32 %v4362_v7, %v3478_v10 }
 0x121   : > { %v1044_v16 = vadd.f32 1.0, %v1043_v14  ;;  %v1051_v17 = vadd.f32 1.0, %v1050_v15  ;;  %v1212_v47 = vpack.c.bf16 %v1207_v45, %v1207_v45  ;;  %v1303_v14 = vunpack.c.l.b16 %v1246_v11  ;;  %v4366_v32 = vld [vmem:[#allocation12 + $0x4] sm:$0xf] }
 0x122   : > { %1283 = vmatpush.bf16.msrb.mxu2 %v3477_v3  ;;  %v1304_v15 = vunpack.c.h.b16 %v1246_v11  ;;  %v3501_v34 = vor.u32 %v4366_v32, %v3498_v33  ;;  %v3618_v3 = vld [vmem:[#allocation15 + $0xd0] sm:$0xf]  ;;  %v3562_v7 = vld [vmem:[#allocation15 + $0x60] sm:$0xf]  ;;  %v4382_v10 = vld [vmem:[#allocation15 + $0x64] sm:$0xf] }
 0x123   : > { %v1052_v19 = vmul.f32 %v1051_v17, %v1036_v63  ;;  %v1061_v20 = vxor.u32 2147483648, %v1044_v16  ;;  %3473 = vmatmul.msk.bf16.vlgmr.msra.gmra.mxu3 %vm1086_vm6, %v1212_v47  ;;  %1296 = vmatpush.bf16.msrb.mxu0 %v3481_v18  ;;  %v3564_v11 = vld [vmem:[#allocation15 + $0x68] sm:$0xf0]  ;;  %v3554_v18 = vld [vmem:[#allocation15 + $0x50] sm:$0xf] }
 0x124   : > { %v4379_v33 = vld [vmem:[#allocation15 + $0x44] sm:$0xf0] }
 0x125   : > { %v1058_v21 = vxor.u32 2147483648, %v1052_v19  ;;  %v1062_v26 = vsel %vm1060_vm3, %v1061_v20, %v1052_v19  ;;  %v1306_v20 = vpack.c.b16 %v1304_v15, %v1304_v15  ;;  %v3610_v15 = vld [vmem:[#allocation15 + $0xc0] sm:$0xf] }
 0x127   : > { %v1059_v23 = vsel %vm1057_vm2, %v1044_v16, %v1058_v21  ;;  %v1245_v16 = vld [vmem:[%s889_s30] sm:$0xff]  ;;  %v1305_v21 = vpack.c.b16 %v1303_v14, %v1303_v14  ;;  %v3567_v14 = vor.u32 %v4382_v10, %v3564_v11  ;;  %v3580_v11 = vld [vmem:[#allocation15 + $0x88] sm:$0xf0] }
 0x128   : > { %v1063_v27 = vsel %vm1056_vm4, %v1059_v23, %v1062_v26  ;;  %v1247_v23 = vpack.c.bf16 %v1245_v16, %v1245_v16  ;;  %v4395_v16 = vld [vmem:[#allocation15 + $0xc4] sm:$0xf0] }
 0x129   : > { %v1064_v28 = vsel %vm1053_vm5, nan, %v1063_v27  ;;  %v1314_v27 = vsel %vm1171_vm0, %v1306_v20, 0  ;;  %v4380_v20 = vld [vmem:[#allocation15 + $0x54] sm:$0xf]  ;;  %v3611_v32 = vor.u32 %v4395_v16, %v3610_v15  ;;  %v4373_v15 = vld [vmem:[#allocation15 + $0x14] sm:$0xf0] }
 0x12a   : > { %v1069_v29 = vpack.c.bf16 %v1064_v28, %v1064_v28  ;;  %v1311_v28 = vsel %vm1171_vm0, %v1305_v21, 0  ;;  %1336 = vmatpush.bf16.msrb.mxu3 %v1314_v27  ;;  %v3556_v27 = vld [vmem:[#allocation15 + $0x58] sm:$0xf0]  ;;  %v4372_v16 = vld [vmem:[#allocation15 + $0x14] sm:$0xf] }
 0x12b   : > { %1323 = vmatpush.bf16.msra.mxu2 %v1311_v28 }
 0x12c   : > { %3452 = vmatmul.msk.bf16.vlgmr.msra.gmra.mxu0 %vm1086_vm6, %v1069_v29  ;;  %v4368_v29 = vld [vmem:[#allocation12 + $0x14] sm:$0xf] }
 0x12d   : > { %v3509_v31 = vor.u32 %v4368_v29, %v3506_v30  ;;  %v3559_v30 = vor.u32 %v4380_v20, %v3556_v27  ;;  %v3514_v20 = vld [vmem:[#allocation15] sm:$0xf]  ;;  %v3516_v27 = vld [vmem:[#allocation15 + $0x8] sm:$0xf0] }
 0x12f   : > { %1389 = vmatpush.bf16.msra.mxu0 %v3509_v31  ;;  %v3546_v31 = vld [vmem:[#allocation15 + $0x40] sm:$0xf] }
 0x133   : > { %3493 = vmatmul.msk.bf16.vlgmr.msrb.gmra.mxu3 %vm1167_vm1, %v1247_v23  ;;  %1390 = vmatpush.bf16.msra.mxu0 %v3501_v34  ;;  %v4378_v34 = vld [vmem:[#allocation15 + $0x44] sm:$0xf] }
 0x1a6   : > { %v1241_v0 = vpop.f32.mrf.mxu3 }
 0x1a7   : > { %v1242_v12 = vadd.f32 %v4721_v22, %v1241_v0  ;;  %v3548_v22 = vld [vmem:[#allocation15 + $0x48] sm:$0xf0]  ;;  %v4393_v0 = vld [vmem:[#allocation15 + $0xb4] sm:$0xf0] }
 0x1a8   : > { %v3551_v38 = vor.u32 %v4378_v34, %v3548_v22 }
 0x1a9   : > { %v1099_v49 = vpop.f32.mrf.mxu0  ;;  %v1252_v37 = vpack.c.bf16 %v1242_v12, %v1242_v12  ;;  %v4392_v12 = vld [vmem:[#allocation15 + $0xb4] sm:$0xf] }
 0x1aa   : > { %v1100_v51 = vadd.f32 %v4720_v24, %v1099_v49  ;;  %v3634_v24 = vld [vmem:[#allocation15 + $0xf0] sm:$0xf]  ;;  %v4401_v49 = vld [vmem:[#allocation15 + $0xf4] sm:$0xf0] }
 0x1ab   : > { %3490 = vmatmul.msk.bf16.vlgmr.msrb.gmra.mxu2 %vm1086_vm6, %v1252_v37  ;;  %3491 = vmatmul.msk.bf16.vlgmr.msrb.gmra.mxu0 %vm1086_vm6, %v1252_v37  ;;  %v3547_v37 = vor.u32 %v4379_v33, %v3546_v31 }
 0x1ac   : > { %v3453_v52 = vmul.f32 -1.442695, %v1100_v51  ;;  %1376 = vmatpush.bf16.msrb.mxu2 %v3505_v36  ;;  %v3604_v36 = vld [vmem:[#allocation15 + $0xb8] sm:$0xf0] }
 0x1ae   : > { %4728 = vpow2.f32 %v3453_v52  ;;  %v1243_v41 = vpop.f32.mrf.mxu3  ;;  %v3636_v52 = vld [vmem:[#allocation15 + $0xf8] sm:$0xf0] }
 0x1af   : > { %v3603_v41 = vor.u32 %v4393_v0, %v3602_v35 }
 0x1b0   : > { %1377 = vmatpush.bf16.msrb.mxu2 %v3497_v40 }
 0x1b1   : > { %v1101_v55 = vpop.f32.mrf.mxu0 }
 0x1b2   : > { %v3639_v55 = vor.u32 %v4400_v50, %v3636_v52  ;;  %v3596_v50 = vld [vmem:[#allocation15 + $0xa8] sm:$0xf0] }
 0x1b4   : > { %v4729_v56 = vpop.eup %4728  ;;  %1645 = vmatpush.bf16.msrb.mxu0 %v3639_v55 }
 0x1b5   : > { %v1106_v57 = vadd.f32 1.0, %v4729_v56  ;;  %v4398_v56 = vld [vmem:[#allocation15 + $0xe4] sm:$0xf] }
 0x1b6   : > { %v1338_v48 = vpop.f32.mrf.mxu3 }
 0x1b7   : > { %4730 = vrcp.f32 %v1106_v57  ;;  %v1118_v61 = vand.u32 2147483648, %v1106_v57  ;;  %v1116_v63 = vand.u32 2147483647, %v1106_v57  ;;  %vm1112_vm12 = vweird.f32 %v1106_v57 }
 0x1b9   : > { %v1119_v8 = vor.u32 1.1754944e-38, %v1118_v61  ;;  %vm1117_vm14 = vcmp.eq.f32.partialorder %v1116_v63, 8.507059e+37  ;;  %v4384_v61 = vld [vmem:[#allocation15 + $0x74] sm:$0xf] }
 0x1bb   : > { %3492 = vmatmul.msk.bf16.vlgmr.msra.gmra.mxu2 %vm1167_vm1, %v1247_v23  ;;  %v4394_v23 = vld [vmem:[#allocation15 + $0xc4] sm:$0xf] }
 0x1bd   : > { %v4731_v58 = vpop.eup %4730 }
 0x1be   : > { %v1108_v59 = vmul.f32 %v4731_v58, %v1106_v57  ;;  %vm1113_vm11 = vweird.f32 %v4731_v58  ;;  %v1340_v46 = vpop.f32.mrf.mxu3  ;;  %v3628_v57 = vld [vmem:[#allocation15 + $0xe8] sm:$0xf0] }
 0x1bf   : > { %vm1114_vm13 = vmor %vm1112_vm12, %vm1113_vm11  ;;  %v3631_v63 = vor.u32 %v4398_v56, %v3628_v57 }
 0x1c0   : > { %v1109_v60 = vsub.f32 1.0, %v1108_v59  ;;  %v3627_v59 = vor.u32 %v4399_v54, %v3626_v53 }
 0x1c1   : > { %1646 = vmatpush.bf16.msrb.mxu0 %v3631_v63 }
 0x1c2   : > { %v1110_v62 = vmul.f32 %v4731_v58, %v1109_v60  ;;  %v4385_v60 = vld [vmem:[#allocation15 + $0x74] sm:$0xf0] }
 0x1c4   : > { %v1111_v4 = vadd.f32 %v4731_v58, %v1110_v62  ;;  %v3572_v62 = vld [vmem:[#allocation15 + $0x78] sm:$0xf0] }
 0x1c5   : > { %v3575_v2 = vor.u32 %v4384_v61, %v3572_v62  ;;  %v3588_v62 = vld [vmem:[#allocation15 + $0x98] sm:$0xf0] }
 0x1c6   : > { %v1115_v13 = vsel %vm1114_vm13, %v4731_v58, %v1111_v4  ;;  %v3570_v58 = vld [vmem:[#allocation15 + $0x70] sm:$0xf]  ;;  %v4397_v4 = vld [vmem:[#allocation15 + $0xd4] sm:$0xf0] }
 0x1c7   : > { %v1120_v17 = vsel %vm1117_vm14, %v1119_v8, %v1115_v13  ;;  %v3571_v1 = vor.u32 %v4385_v60, %v3570_v58  ;;  %v4383_v8 = vld [vmem:[#allocation15 + $0x64] sm:$0xf0]  ;;  %1632 = vmatpush.bf16.msra.mxu2 %v3575_v2  ;;  %v3619_v13 = vor.u32 %v4397_v4, %v3618_v3  ;;  %v3586_v58 = vld [vmem:[#allocation15 + $0x90] sm:$0xf]  ;;  %v4388_v60 = vld [vmem:[#allocation15 + $0x94] sm:$0xf] }
 0x1c8   : > { %v1122_v19 = vmul.f32 %v1120_v17, %v1100_v51  ;;  %v3635_v51 = vor.u32 %v4401_v49, %v3634_v24  ;;  %v3563_v9 = vor.u32 %v4383_v8, %v3562_v7  ;;  %v3623_v17 = vor.u32 %v4396_v5, %v3620_v6  ;;  %v4390_v49 = vld [vmem:[#allocation15 + $0xa4] sm:$0xf]  ;;  %v4375_v2 = vld [vmem:[#allocation15 + $0x24] sm:$0xf0]  ;;  %v3532_v5 = vld [vmem:[#allocation15 + $0x28] sm:$0xf0] }
 0x1c9   : > { %1606 = vmatpush.bf16.msrb.mxu1 %v3571_v1  ;;  %v3599_v54 = vor.u32 %v4390_v49, %v3596_v50  ;;  %v3591_v63 = vor.u32 %v4388_v60, %v3588_v62  ;;  %v3530_v1 = vld [vmem:[#allocation15 + $0x20] sm:$0xf]  ;;  %v4374_v4 = vld [vmem:[#allocation15 + $0x24] sm:$0xf]  ;;  %v4387_v8 = vld [vmem:[#allocation15 + $0x84] sm:$0xf0] }
 0x1ca   : > { %v1127_v26 = vpack.c.bf16 %v1122_v19, %v1122_v19  ;;  %1619 = vmatpush.bf16.msra.mxu3 %v3635_v51  ;;  %v4381_v19 = vld [vmem:[#allocation15 + $0x54] sm:$0xf0]  ;;  %1647 = vmatpush.bf16.msrb.mxu0 %v3623_v17  ;;  %v3531_v3 = vor.u32 %v4375_v2, %v3530_v1  ;;  %v3535_v6 = vor.u32 %v4374_v4, %v3532_v5  ;;  %v3578_v7 = vld [vmem:[#allocation15 + $0x80] sm:$0xf]  ;;  %v3764_v50 = vld [vmem:[#allocation16 + $0xf0] sm:$0xf] }
 0x1cb   : > { %1633 = vmatpush.bf16.msra.mxu2 %v3567_v14  ;;  %v3555_v29 = vor.u32 %v4381_v19, %v3554_v18  ;;  %v3579_v10 = vor.u32 %v4387_v8, %v3578_v7  ;;  %v3522_v14 = vld [vmem:[#allocation15 + $0x10] sm:$0xf]  ;;  %v3524_v18 = vld [vmem:[#allocation15 + $0x18] sm:$0xf0]  ;;  %v4431_v62 = vld [vmem:[#allocation16 + $0xe4] sm:$0xf0] }
 0x1cc   : > { %3462 = vmatmul.msk.bf16.vlgmr.msra.gmra.mxu1 %vm1086_vm6, %v1127_v26  ;;  %v3612_v26 = vld [vmem:[#allocation15 + $0xc8] sm:$0xf0]  ;;  %v3523_v17 = vor.u32 %v4373_v15, %v3522_v14  ;;  %v3527_v19 = vor.u32 %v4372_v16, %v3524_v18  ;;  %v3676_v4 = vld [vmem:[#allocation16 + $0x40] sm:$0xf]  ;;  %v4411_v5 = vld [vmem:[#allocation16 + $0x44] sm:$0xf0] }
 0x1cd   : > { %1607 = vmatpush.bf16.msrb.mxu1 %v3563_v9  ;;  %v3615_v25 = vor.u32 %v4394_v23, %v3612_v26  ;;  %v4386_v9 = vld [vmem:[#allocation15 + $0x84] sm:$0xf]  ;;  %v3758_v2 = vld [vmem:[#allocation16 + $0xe8] sm:$0xf0]  ;;  %v3677_v7 = vor.u32 %v4411_v5, %v3676_v4  ;;  %v3750_v15 = vld [vmem:[#allocation16 + $0xd8] sm:$0xf0] }
 0x1ce   : > { %1620 = vmatpush.bf16.msra.mxu3 %v3627_v59  ;;  %v4389_v59 = vld [vmem:[#allocation15 + $0x94] sm:$0xf0]  ;;  %v4370_v23 = vld [vmem:[#allocation15 + $0x4] sm:$0xf]  ;;  %v3678_v8 = vld [vmem:[#allocation16 + $0x48] sm:$0xf0] }
 0x1cf   : > { %1634 = vmatpush.bf16.msra.mxu2 %v3559_v30  ;;  %1648 = vmatpush.bf16.msrb.mxu0 %v3615_v25  ;;  %v3587_v61 = vor.u32 %v4389_v59, %v3586_v58  ;;  %v1398_v30 = vld [vmem:[#allocation13] sm:$0x3]  ;;  %v4409_v18 = vld [vmem:[#allocation16 + $0x34] sm:$0xf0]  ;;  %v3716_v5 = vld [vmem:[#allocation16 + $0x90] sm:$0xf] }
 0x1d0   : > { %v1401_v31 = vperm.slane %v1398_v30, 1  ;;  %v1400_v25 = vperm.slane %v1398_v30, 0  ;;  %v3686_v59 = vld [vmem:[#allocation16 + $0x58] sm:$0xf0]  ;;  %v5561_v30 = vld [vmem:[%s5671_s17] sm:$0x3] }
 0x1d1   : > { %1608 = vmatpush.bf16.msrb.mxu1 %v3555_v29  ;;  %v3519_v29 = vor.u32 %v4370_v23, %v3516_v27  ;;  %v4427_v27 = vld [vmem:[#allocation16 + $0xc4] sm:$0xf0] }
 0x1d2   : > { %1621 = vmatpush.bf16.msra.mxu3 %v3619_v13  ;;  %v3583_v13 = vor.u32 %v4386_v9, %v3580_v11  ;;  %v4429_v11 = vld [vmem:[#allocation16 + $0xd4] sm:$0xf0] }
 0x1d3   : > { %1635 = vmatpush.bf16.msra.mxu2 %v3551_v38 }
 0x1d5   : > { %1609 = vmatpush.bf16.msrb.mxu1 %v3547_v37 }
 0x1d6   : > { %1622 = vmatpush.bf16.msra.mxu3 %v3611_v32 }
 0x1da   : > { %1623 = vmatpush.bf16.msra.mxu3 %v3603_v41 }
 0x228   : > { %v1298_v21 = vpop.f32.mrf.mxu0 }
 0x229   : > { %v5547_v28 = vadd.f32 %v1338_v48, %v1298_v21  ;;  %v4391_v48 = vld [vmem:[#allocation15 + $0xa4] sm:$0xf0] }
 0x22a   : > { %v4371_v21 = vld [vmem:[#allocation15 + $0x4] sm:$0xf0] }
 0x22b   : > { %v3515_v26 = vor.u32 %v4371_v21, %v3514_v20  ;;  %v3670_v21 = vld [vmem:[#allocation16 + $0x38] sm:$0xf0] }
 0x22e   : > { %v1285_v40 = vpop.f32.mrf.mxu2 }
 0x230   : > { %v1300_v24 = vpop.f32.mrf.mxu0 }
 0x231   : > { %v3694_v24 = vld [vmem:[#allocation16 + $0x68] sm:$0xf0] }
 0x236   : > { %v1287_v46 = vpop.f32.mrf.mxu2 }
 0x23e   : > { %v1325_v55 = vpop.f32.mrf.mxu2 }
 0x23f   : > { %v1326_v56 = vadd.f32 %v1325_v55, %v1285_v40  ;;  %v4416_v40 = vld [vmem:[#allocation16 + $0x74] sm:$0xf]  ;;  %v3684_v55 = vld [vmem:[#allocation16 + $0x50] sm:$0xf] }
 0x246   : > { %v1327_v57 = vpop.f32.mrf.mxu2 }
 0x247   : > { %v4412_v57 = vld [vmem:[#allocation16 + $0x54] sm:$0xf] }
 0x248   : > { %v3689_v60 = vor.u32 %v4412_v57, %v3686_v59  ;;  %v3644_v59 = vld [vmem:[#allocation16] sm:$0xf] }
 0x249   : > { %v1156_v42 = vpop.f32.mrf.mxu1 }
 0x24a   : > { %v1157_v44 = vadd.f32 %v4722_v43, %v1156_v42  ;;  %v4377_v43 = vld [vmem:[#allocation15 + $0x34] sm:$0xf0]  ;;  %v4376_v42 = vld [vmem:[#allocation15 + $0x34] sm:$0xf] }
 0x24b   : > { %v3539_v51 = vor.u32 %v4377_v43, %v3538_v39  ;;  %v4417_v39 = vld [vmem:[#allocation16 + $0x74] sm:$0xf0]  ;;  %v3702_v43 = vld [vmem:[#allocation16 + $0x78] sm:$0xf0] }
 0x24c   : > { %v1346_v45 = vpack.c.bf16 %v1157_v44, %v1157_v44  ;;  %v3540_v44 = vld [vmem:[#allocation15 + $0x38] sm:$0xf0] }
 0x24d   : > { %v3543_v52 = vor.u32 %v4376_v42, %v3540_v44  ;;  %1610 = vmatpush.bf16.msrb.mxu1 %v3539_v51  ;;  %v3705_v42 = vor.u32 %v4416_v40, %v3702_v43  ;;  %v3692_v44 = vld [vmem:[#allocation16 + $0x60] sm:$0xf]  ;;  %v4433_v51 = vld [vmem:[#allocation16 + $0xf4] sm:$0xf0]  ;;  %v4424_v40 = vld [vmem:[#allocation16 + $0xb4] sm:$0xf] }
 0x24e   : > { %3510 = vmatmul.msk.bf16.vlgmr.msrb.gmra.mxu2 %vm1086_vm6, %v1346_v45  ;;  %3511 = vmatmul.msk.bf16.vlgmr.msra.gmra.mxu0 %vm1086_vm6, %v1346_v45  ;;  %v3607_v45 = vor.u32 %v4392_v12, %v3604_v36 }
 0x24f   : > { %1636 = vmatpush.bf16.msra.mxu2 %v3543_v52  ;;  %v4432_v52 = vld [vmem:[#allocation16 + $0xf4] sm:$0xf] }
 0x250   : > { %1649 = vmatpush.bf16.msrb.mxu0 %v3607_v45  ;;  %v4415_v45 = vld [vmem:[#allocation16 + $0x64] sm:$0xf0] }
 0x251   : > { %v1158_v47 = vpop.f32.mrf.mxu1  ;;  %1611 = vmatpush.bf16.msrb.mxu1 %v3531_v3 }
 0x252   : > { %v3594_v47 = vld [vmem:[#allocation15 + $0xa0] sm:$0xf] }
 0x253   : > { %v3595_v53 = vor.u32 %v4391_v48, %v3594_v47  ;;  %1637 = vmatpush.bf16.msra.mxu2 %v3535_v6  ;;  %v4414_v47 = vld [vmem:[#allocation16 + $0x64] sm:$0xf]  ;;  %v3693_v48 = vor.u32 %v4415_v45, %v3692_v44  ;;  %v3652_v45 = vld [vmem:[#allocation16 + $0x10] sm:$0xf] }
 0x254   : > { %1650 = vmatpush.bf16.msrb.mxu0 %v3599_v54  ;;  %v3697_v49 = vor.u32 %v4414_v47, %v3694_v24  ;;  %v3766_v54 = vld [vmem:[#allocation16 + $0xf8] sm:$0xf0]  ;;  %v4410_v6 = vld [vmem:[#allocation16 + $0x44] sm:$0xf]  ;;  %v4405_v47 = vld [vmem:[#allocation16 + $0x14] sm:$0xf0] }
 0x255   : > { %1624 = vmatpush.bf16.msra.mxu3 %v3595_v53  ;;  %1612 = vmatpush.bf16.msrb.mxu1 %v3523_v17  ;;  %v3765_v53 = vor.u32 %v4433_v51, %v3764_v50  ;;  %v3769_v46 = vor.u32 %v4432_v52, %v3766_v54  ;;  %v3681_v9 = vor.u32 %v4410_v6, %v3678_v8  ;;  %v3668_v17 = vld [vmem:[#allocation16 + $0x30] sm:$0xf]  ;;  %v3724_v51 = vld [vmem:[#allocation16 + $0xa0] sm:$0xf]  ;;  %v4423_v52 = vld [vmem:[#allocation16 + $0xa4] sm:$0xf0] }
 0x256   : > { %v3669_v20 = vor.u32 %v4409_v18, %v3668_v17  ;;  %v3653_v24 = vor.u32 %v4405_v47, %v3652_v45  ;;  %v4421_v6 = vld [vmem:[#allocation16 + $0x94] sm:$0xf0]  ;;  %v4418_v17 = vld [vmem:[#allocation16 + $0x84] sm:$0xf]  ;;  %v3887_v45 = vld [vmem:[#allocation15 + $0x1e8] sm:$0xf0] }
 0x257   : > { %1638 = vmatpush.bf16.msra.mxu2 %v3527_v19  ;;  %v4408_v19 = vld [vmem:[#allocation16 + $0x34] sm:$0xf]  ;;  %v3717_v8 = vor.u32 %v4421_v6, %v3716_v5  ;;  %v3821_v47 = vld [vmem:[#allocation15 + $0x160] sm:$0xf]  ;;  %v4458_v5 = vld [vmem:[#allocation15 + $0x1c4] sm:$0xf] }
 0x258   : > { %1651 = vmatpush.bf16.msrb.mxu0 %v3591_v63  ;;  %v4430_v63 = vld [vmem:[#allocation16 + $0xe4] sm:$0xf]  ;;  %v3673_v23 = vor.u32 %v4408_v19, %v3670_v21  ;;  %v3710_v21 = vld [vmem:[#allocation16 + $0x88] sm:$0xf0] }
 0x259   : > { %1625 = vmatpush.bf16.msra.mxu3 %v3587_v61  ;;  %1613 = vmatpush.bf16.msrb.mxu1 %v3515_v26  ;;  %v3756_v61 = vld [vmem:[#allocation16 + $0xe0] sm:$0xf]  ;;  %v3761_v3 = vor.u32 %v4430_v63, %v3758_v2  ;;  %v1443_v63 = vperm.slane %v5561_v30, 1  ;;  %v3646_v2 = vld [vmem:[#allocation16 + $0x8] sm:$0xf0] }
 0x25a   : > { %v3757_v1 = vor.u32 %v4431_v62, %v3756_v61  ;;  %v3740_v26 = vld [vmem:[#allocation16 + $0xc0] sm:$0xf]  ;;  %v4402_v61 = vld [vmem:[#allocation16 + $0x4] sm:$0xf] }
 0x25b   : > { %1639 = vmatpush.bf16.msra.mxu2 %v3519_v29  ;;  %v4426_v29 = vld [vmem:[#allocation16 + $0xc4] sm:$0xf]  ;;  %v3649_v4 = vor.u32 %v4402_v61, %v3646_v2  ;;  %v4444_v2 = vld [vmem:[#allocation15 + $0x154] sm:$0xf] }
 0x25c   : > { %1652 = vmatpush.bf16.msrb.mxu0 %v3583_v13  ;;  %v4428_v13 = vld [vmem:[#allocation16 + $0xd4] sm:$0xf] }
 0x25d   : > { %1626 = vmatpush.bf16.msra.mxu3 %v3579_v10  ;;  %v3748_v10 = vld [vmem:[#allocation16 + $0xd0] sm:$0xf]  ;;  %v3753_v16 = vor.u32 %v4428_v13, %v3750_v15  ;;  %v3708_v15 = vld [vmem:[#allocation16 + $0x80] sm:$0xf] }
 0x25e   : > { %v3749_v14 = vor.u32 %v4429_v11, %v3748_v10 }
 0x25f   : > { %1924 = vmatpush.bf16.msrb.mxu2 %v3705_v42  ;;  %v3734_v42 = vld [vmem:[#allocation16 + $0xb8] sm:$0xf0] }
 0x260   : > { %1937 = vmatpush.bf16.msra.mxu0 %v3769_v46  ;;  %v3737_v44 = vor.u32 %v4424_v40, %v3734_v42 }
 0x261   : > { %1911 = vmatpush.bf16.msrb.mxu3 %v3765_v53  ;;  %v4422_v53 = vld [vmem:[#allocation16 + $0xa4] sm:$0xf] }
 0x263   : > { %1925 = vmatpush.bf16.msrb.mxu2 %v3697_v49  ;;  %v3654_v49 = vld [vmem:[#allocation16 + $0x18] sm:$0xf0] }
 0x264   : > { %1938 = vmatpush.bf16.msra.mxu0 %v3761_v3 }
 0x265   : > { %1912 = vmatpush.bf16.msrb.mxu3 %v3757_v1 }
 0x267   : > { %1926 = vmatpush.bf16.msrb.mxu2 %v3689_v60  ;;  %v4403_v60 = vld [vmem:[#allocation16 + $0x4] sm:$0xf0] }
 0x268   : > { %1939 = vmatpush.bf16.msra.mxu0 %v3753_v16  ;;  %v3645_v1 = vor.u32 %v4403_v60, %v3644_v59  ;;  %v4419_v16 = vld [vmem:[#allocation16 + $0x84] sm:$0xf0]  ;;  %v4445_v59 = vld [vmem:[#allocation15 + $0x154] sm:$0xf0] }
 0x269   : > { %1913 = vmatpush.bf16.msrb.mxu3 %v3749_v14 }
 0x26b   : > { %1927 = vmatpush.bf16.msrb.mxu2 %v3681_v9  ;;  %v3718_v9 = vld [vmem:[#allocation16 + $0x98] sm:$0xf0] }
 0x26f   : > { %1928 = vmatpush.bf16.msrb.mxu2 %v3673_v23 }
 0x2cb   : > { %v1392_v32 = vpop.f32.mrf.mxu0 }
 0x2cc   : > { %v1397_v33 = vadd.f32 %v1392_v32, %v5547_v28  ;;  %v3700_v28 = vld [vmem:[#allocation16 + $0x70] sm:$0xf]  ;;  %v3742_v32 = vld [vmem:[#allocation16 + $0xc8] sm:$0xf0] }
 0x2cd   : > { %v3701_v41 = vor.u32 %v4417_v39, %v3700_v28  ;;  %v3732_v28 = vld [vmem:[#allocation16 + $0xb0] sm:$0xf]  ;;  %v4425_v39 = vld [vmem:[#allocation16 + $0xb4] sm:$0xf0] }
 0x2ce   : > { %v5550_v34 = vadd.f32 %v1401_v31, %v1397_v33  ;;  %v3741_v31 = vor.u32 %v4427_v27, %v3740_v26  ;;  %v3745_v33 = vor.u32 %v4426_v29, %v3742_v32  ;;  %v3733_v43 = vor.u32 %v4425_v39, %v3732_v28  ;;  %v3893_v29 = vld [vmem:[#allocation15 + $0x1f0] sm:$0xf]  ;;  %v4464_v32 = vld [vmem:[#allocation15 + $0x1f4] sm:$0xf] }
 0x2cf   : > { %1898 = vmatpush.bf16.msra.mxu1 %v3701_v41  ;;  %v1442_v41 = vperm.slane %v5561_v30, 0  ;;  %v3713_v26 = vor.u32 %v4418_v17, %v3710_v21  ;;  %v4465_v30 = vld [vmem:[#allocation15 + $0x1f4] sm:$0xf0] }
 0x2d0   : > { %v1439_v22 = vpack.c.bf16 %v5550_v34, %v5550_v34  ;;  %1914 = vmatpush.bf16.msrb.mxu3 %v3741_v31  ;;  %1940 = vmatpush.bf16.msra.mxu0 %v3745_v33  ;;  %v3894_v31 = vor.u32 %v4465_v30, %v3893_v29  ;;  %v3895_v33 = vld [vmem:[#allocation15 + $0x1f8] sm:$0xf0] }
 0x2d1   : > { %v1379_v35 = vpop.f32.mrf.mxu2 }
 0x2d2   : > { %v1396_v0 = vadd.f32 %v1379_v35, %v1326_v56  ;;  %1627 = vmatmul.bf16.vlgmr.msra.gmra.mxu3 %v1439_v22  ;;  %1653 = vmatmul.bf16.vlgmr.msrb.gmra.mxu0 %v1439_v22  ;;  %v4413_v56 = vld [vmem:[#allocation16 + $0x54] sm:$0xf0]  ;;  %v3660_v22 = vld [vmem:[#allocation16 + $0x20] sm:$0xf]  ;;  %v4406_v35 = vld [vmem:[#allocation16 + $0x24] sm:$0xf] }
 0x2d3   : > { %v1394_v12 = vpop.f32.mrf.mxu0  ;;  %1899 = vmatpush.bf16.msra.mxu1 %v3693_v48  ;;  %v3685_v58 = vor.u32 %v4413_v56, %v3684_v55  ;;  %v4404_v48 = vld [vmem:[#allocation16 + $0x14] sm:$0xf]  ;;  %v3725_v55 = vor.u32 %v4423_v52, %v3724_v51  ;;  %v3726_v56 = vld [vmem:[#allocation16 + $0xa8] sm:$0xf0]  ;;  %v4461_v51 = vld [vmem:[#allocation15 + $0x1d4] sm:$0xf0] }
 0x2d4   : > { %v5554_v36 = vadd.f32 %v1400_v25, %v1396_v0  ;;  %v4407_v25 = vld [vmem:[#allocation16 + $0x24] sm:$0xf0]  ;;  %1915 = vmatpush.bf16.msrb.mxu3 %v3733_v43  ;;  %1941 = vmatpush.bf16.msra.mxu0 %v3737_v44  ;;  %v3657_v50 = vor.u32 %v4404_v48, %v3654_v49  ;;  %v3831_v43 = vld [vmem:[#allocation15 + $0x178] sm:$0xf0]  ;;  %v4462_v44 = vld [vmem:[#allocation15 + $0x1e4] sm:$0xf] }
 0x2d5   : > { %v3661_v12 = vor.u32 %v4407_v25, %v3660_v22  ;;  %v3829_v22 = vld [vmem:[#allocation15 + $0x170] sm:$0xf]  ;;  %v4447_v48 = vld [vmem:[#allocation15 + $0x164] sm:$0xf0]  ;;  %v4446_v52 = vld [vmem:[#allocation15 + $0x164] sm:$0xf] }
 0x2d6   : > { %v1438_v37 = vpack.c.bf16 %v5554_v36, %v5554_v36  ;;  %v3822_v49 = vor.u32 %v4447_v48, %v3821_v47  ;;  %v3863_v47 = vld [vmem:[#allocation15 + $0x1b8] sm:$0xf0]  ;;  %v3797_v48 = vld [vmem:[#allocation15 + $0x130] sm:$0xf] }
 0x2d7   : > { %1900 = vmatpush.bf16.msra.mxu1 %v3685_v58  ;;  %v3729_v58 = vor.u32 %v4422_v53, %v3726_v56 }
 0x2d8   : > { %1614 = vmatmul.bf16.vlgmr.msrb.gmra.mxu1 %v1438_v37  ;;  %1640 = vmatmul.bf16.vlgmr.msra.gmra.mxu2 %v1438_v37  ;;  %v3662_v37 = vld [vmem:[#allocation16 + $0x28] sm:$0xf0] }
 0x2d9   : > { %v1381_v38 = vpop.f32.mrf.mxu2  ;;  %1916 = vmatpush.bf16.msrb.mxu3 %v3725_v55  ;;  %1942 = vmatpush.bf16.msra.mxu0 %v3729_v58  ;;  %v3813_v58 = vld [vmem:[#allocation15 + $0x150] sm:$0xf] }
 0x2da   : > { %v3665_v38 = vor.u32 %v4406_v35, %v3662_v37  ;;  %v3898_v35 = vor.u32 %v4464_v32, %v3895_v33  ;;  %v3885_v37 = vld [vmem:[#allocation15 + $0x1e0] sm:$0xf] }
 0x2db   : > { %1901 = vmatpush.bf16.msra.mxu1 %v3677_v7  ;;  %v4420_v7 = vld [vmem:[#allocation16 + $0x94] sm:$0xf] }
 0x2dc   : > { %1929 = vmatpush.bf16.msrb.mxu2 %v3665_v38  ;;  %v3721_v11 = vor.u32 %v4420_v7, %v3718_v9  ;;  %v4463_v38 = vld [vmem:[#allocation15 + $0x1e4] sm:$0xf0] }
 0x2dd   : > { %1917 = vmatpush.bf16.msrb.mxu3 %v3717_v8  ;;  %v3886_v40 = vor.u32 %v4463_v38, %v3885_v37  ;;  %v3871_v8 = vld [vmem:[#allocation15 + $0x1c8] sm:$0xf0] }
 0x2de   : > { %1943 = vmatpush.bf16.msra.mxu0 %v3721_v11  ;;  %v3874_v11 = vor.u32 %v4458_v5, %v3871_v8  ;;  %v4452_v5 = vld [vmem:[#allocation15 + $0x194] sm:$0xf]  ;;  %v3781_v8 = vld [vmem:[#allocation15 + $0x110] sm:$0xf] }
 0x2df   : > { %1902 = vmatpush.bf16.msra.mxu1 %v3669_v20  ;;  %v3709_v20 = vor.u32 %v4419_v16, %v3708_v15 }
 0x2e0   : > { %1930 = vmatpush.bf16.msrb.mxu2 %v3657_v50  ;;  %v3877_v50 = vld [vmem:[#allocation15 + $0x1d0] sm:$0xf] }
 0x2e1   : > { %1918 = vmatpush.bf16.msrb.mxu3 %v3709_v20  ;;  %v3878_v53 = vor.u32 %v4461_v51, %v3877_v50  ;;  %v3853_v50 = vld [vmem:[#allocation15 + $0x1a0] sm:$0xf] }
 0x2e2   : > { %1944 = vmatpush.bf16.msra.mxu0 %v3713_v26 }
 0x2e3   : > { %1903 = vmatpush.bf16.msra.mxu1 %v3661_v12  ;;  %v4449_v12 = vld [vmem:[#allocation15 + $0x174] sm:$0xf0] }
 0x2e4   : > { %1931 = vmatpush.bf16.msrb.mxu2 %v3649_v4  ;;  %v3830_v39 = vor.u32 %v4449_v12, %v3829_v22  ;;  %v3815_v4 = vld [vmem:[#allocation15 + $0x158] sm:$0xf0] }
 0x2e5   : > { %2167 = vmatpush.bf16.msra.mxu3 %v3894_v31 }
 0x2e6   : > { %2193 = vmatpush.bf16.msrb.mxu0 %v3898_v35 }
 0x2e7   : > { %1904 = vmatpush.bf16.msra.mxu1 %v3653_v24  ;;  %v3890_v24 = vor.u32 %v4462_v44, %v3887_v45  ;;  %v4456_v45 = vld [vmem:[#allocation15 + $0x1b4] sm:$0xf] }
 0x2e9   : > { %2168 = vmatpush.bf16.msra.mxu3 %v3886_v40  ;;  %v4457_v40 = vld [vmem:[#allocation15 + $0x1b4] sm:$0xf0] }
 0x2ea   : > { %2194 = vmatpush.bf16.msrb.mxu0 %v3890_v24  ;;  %v3866_v24 = vor.u32 %v4456_v45, %v3863_v47 }
 0x2eb   : > { %1905 = vmatpush.bf16.msra.mxu1 %v3645_v1  ;;  %v4459_v1 = vld [vmem:[#allocation15 + $0x1c4] sm:$0xf0] }
 0x2ed   : > { %2169 = vmatpush.bf16.msra.mxu3 %v3878_v53  ;;  %v4440_v53 = vld [vmem:[#allocation15 + $0x134] sm:$0xf] }
 0x2ef   : > { %2154 = vmatpush.bf16.msrb.mxu1 %v3830_v39 }
 0x2f3   : > { %2155 = vmatpush.bf16.msrb.mxu1 %v3822_v49  ;;  %v4441_v49 = vld [vmem:[#allocation15 + $0x134] sm:$0xf0] }
 0x2f4   : > { %v3798_v51 = vor.u32 %v4441_v49, %v3797_v48  ;;  %v4481_v48 = vld [vmem:[#allocation16 + $0x174] sm:$0xf0] }
 0x34f   : > { %v5563_v0 = vpop.f32.mrf.mxu0 }
 0x355   : > { %v1615_v54 = vpop.f32.mrf.mxu1  ;;  %v1628_v46 = vpop.f32.mrf.mxu3 }
 0x356   : > { %v1616_v57 = vadd.f32 %v1615_v54, %v1442_v41  ;;  %v4448_v41 = vld [vmem:[#allocation15 + $0x174] sm:$0xf]  ;;  %v3823_v54 = vld [vmem:[#allocation15 + $0x168] sm:$0xf0] }
 0x357   : > { %v1656_v62 = vpop.f32.mrf.mxu0  ;;  %v3834_v42 = vor.u32 %v4448_v41, %v3831_v43  ;;  %v3826_v56 = vor.u32 %v4446_v52, %v3823_v54  ;;  %v4442_v41 = vld [vmem:[#allocation15 + $0x144] sm:$0xf]  ;;  %v3807_v43 = vld [vmem:[#allocation15 + $0x148] sm:$0xf0]  ;;  %v3799_v54 = vld [vmem:[#allocation15 + $0x138] sm:$0xf0] }
 0x358   : > { %v5567_v3 = vadd.f32 %v1628_v46, %v1616_v57  ;;  %v4460_v46 = vld [vmem:[#allocation15 + $0x1d4] sm:$0xf]  ;;  %v3879_v57 = vld [vmem:[#allocation15 + $0x1d8] sm:$0xf0]  ;;  %v3814_v62 = vor.u32 %v4445_v59, %v3813_v58  ;;  %v3810_v44 = vor.u32 %v4442_v41, %v3807_v43  ;;  %v3789_v58 = vld [vmem:[#allocation15 + $0x120] sm:$0xf] }
 0x359   : > { %2180 = vmatpush.bf16.msra.mxu2 %v3834_v42  ;;  %v3882_v61 = vor.u32 %v4460_v46, %v3879_v57  ;;  %v4454_v46 = vld [vmem:[#allocation15 + $0x1a4] sm:$0xf]  ;;  %v4439_v59 = vld [vmem:[#allocation15 + $0x124] sm:$0xf0] }
 0x35a   : > { %v3640_v10 = vmul.f32 -1.442695, %v5567_v3  ;;  %2156 = vmatpush.bf16.msrb.mxu1 %v3814_v62  ;;  %v4453_v62 = vld [vmem:[#allocation15 + $0x194] sm:$0xf0] }
 0x35b   : > { %v1641_v13 = vpop.f32.mrf.mxu2  ;;  %2195 = vmatpush.bf16.msrb.mxu0 %v3882_v61  ;;  %v3790_v61 = vor.u32 %v4439_v59, %v3789_v58  ;;  %v4026_v59 = vld [vmem:[#allocation16 + $0x1f8] sm:$0xf0] }
 0x35c   : > { %4732 = vpow2.f32 %v3640_v10  ;;  %v1642_v14 = vadd.f32 %v1641_v13, %v1443_v63  ;;  %v3869_v63 = vld [vmem:[#allocation15 + $0x1c0] sm:$0xf]  ;;  %v3818_v10 = vor.u32 %v4444_v2, %v3815_v4 }
 0x35d   : > { %v1617_v18 = vpop.f32.mrf.mxu1  ;;  %v1630_v19 = vpop.f32.mrf.mxu3  ;;  %2181 = vmatpush.bf16.msra.mxu2 %v3826_v56  ;;  %v3870_v7 = vor.u32 %v4459_v1, %v3869_v63  ;;  %v3855_v56 = vld [vmem:[#allocation15 + $0x1a8] sm:$0xf0]  ;;  %v4438_v63 = vld [vmem:[#allocation15 + $0x124] sm:$0xf] }
 0x35e   : > { %v5571_v23 = vadd.f32 %v5563_v0, %v1642_v14  ;;  %v3858_v57 = vor.u32 %v4454_v46, %v3855_v56  ;;  %v3791_v1 = vld [vmem:[#allocation15 + $0x128] sm:$0xf0]  ;;  %v4497_v56 = vld [vmem:[#allocation16 + $0x1f4] sm:$0xf0] }
 0x35f   : > { %2170 = vmatpush.bf16.msra.mxu3 %v3870_v7  ;;  %2196 = vmatpush.bf16.msrb.mxu0 %v3874_v11  ;;  %v3794_v4 = vor.u32 %v4438_v63, %v3791_v1  ;;  %v4476_v63 = vld [vmem:[#allocation16 + $0x154] sm:$0xf] }
 0x360   : > { %v3641_v27 = vmul.f32 -1.442695, %v5571_v23 }
 0x361   : > { %2182 = vmatpush.bf16.msra.mxu2 %v3818_v10  ;;  %v3837_v10 = vld [vmem:[#allocation15 + $0x180] sm:$0xf] }
 0x362   : > { %v4733_v25 = vpop.eup %4732  ;;  %4734 = vpow2.f32 %v3641_v27 }
 0x363   : > { %v5574_v28 = vadd.f32 1.0, %v4733_v25  ;;  %v1643_v0 = vpop.f32.mrf.mxu2  ;;  %2197 = vmatpush.bf16.msrb.mxu0 %v3866_v24  ;;  %v4480_v24 = vld [vmem:[#allocation16 + $0x174] sm:$0xf] }
 0x364   : > { %v3861_v0 = vld [vmem:[#allocation15 + $0x1b0] sm:$0xf] }
 0x365   : > { %4736 = vrcp.f32 %v5574_v28  ;;  %v1677_v14 = vand.u32 2147483648, %v5574_v28  ;;  %v1675_v16 = vand.u32 2147483647, %v5574_v28  ;;  %vm1671_vm1 = vweird.f32 %v5574_v28  ;;  %2183 = vmatpush.bf16.msra.mxu2 %v3810_v44 }
 0x366   : > { %v3862_v42 = vor.u32 %v4457_v40, %v3861_v0 }
 0x367   : > { %v1678_v20 = vor.u32 1.1754944e-38, %v1677_v14  ;;  %vm1676_vm2 = vcmp.eq.f32.partialorder %v1675_v16, 8.507059e+37  ;;  %2198 = vmatpush.bf16.msrb.mxu0 %v3858_v57  ;;  %v4436_v14 = vld [vmem:[#allocation15 + $0x114] sm:$0xf] }
 0x368   : > { %v4735_v55 = vpop.eup %4734  ;;  %2171 = vmatpush.bf16.msra.mxu3 %v3862_v42  ;;  %v4496_v57 = vld [vmem:[#allocation16 + $0x1f4] sm:$0xf] }
 0x369   : > { %v1665_v60 = vadd.f32 1.0, %v4735_v55  ;;  %v3802_v55 = vor.u32 %v4440_v53, %v3799_v54  ;;  %v3954_v54 = vld [vmem:[#allocation16 + $0x168] sm:$0xf0] }
 0x36b   : > { %v4737_v6 = vpop.eup %4736  ;;  %4738 = vrcp.f32 %v1665_v60  ;;  %v1692_v29 = vand.u32 2147483648, %v1665_v60  ;;  %v1690_v32 = vand.u32 2147483647, %v1665_v60  ;;  %vm1686_vm4 = vweird.f32 %v1665_v60  ;;  %2184 = vmatpush.bf16.msra.mxu2 %v3802_v55  ;;  %v4024_v55 = vld [vmem:[#allocation16 + $0x1f0] sm:$0xf] }
 0x36c   : > { %v1667_v9 = vmul.f32 %v4737_v6, %v5574_v28  ;;  %vm1672_vm0 = vweird.f32 %v4737_v6  ;;  %v3805_v28 = vld [vmem:[#allocation15 + $0x140] sm:$0xf]  ;;  %v4025_v58 = vor.u32 %v4497_v56, %v4024_v55 }
 0x36d   : > { %vm1673_vm15 = vmor %vm1671_vm1, %vm1672_vm0  ;;  %v1693_v25 = vor.u32 1.1754944e-38, %v1692_v29  ;;  %vm1691_vm6 = vcmp.eq.f32.partialorder %v1690_v32, 8.507059e+37  ;;  %v3984_v56 = vld [vmem:[#allocation16 + $0x1a0] sm:$0xf] }
 0x36e   : > { %v1668_v13 = vsub.f32 1.0, %v1667_v9  ;;  %v4437_v9 = vld [vmem:[#allocation15 + $0x114] sm:$0xf0] }
 0x36f   : > { %2185 = vmatpush.bf16.msra.mxu2 %v3794_v4  ;;  %v3782_v11 = vor.u32 %v4437_v9, %v3781_v8  ;;  %v4018_v9 = vld [vmem:[#allocation16 + $0x1e8] sm:$0xf0] }
 0x370   : > { %v1669_v15 = vmul.f32 %v4737_v6, %v1668_v13  ;;  %v4451_v13 = vld [vmem:[#allocation15 + $0x184] sm:$0xf0] }
 0x371   : > { %v4739_v17 = vpop.eup %4738  ;;  %v3838_v16 = vor.u32 %v4451_v13, %v3837_v10  ;;  %v4475_v13 = vld [vmem:[#allocation16 + $0x144] sm:$0xf0] }
 0x372   : > { %v1670_v18 = vadd.f32 %v4737_v6, %v1669_v15  ;;  %v1682_v19 = vmul.f32 %v4739_v17, %v1665_v60  ;;  %vm1687_vm3 = vweird.f32 %v4739_v17  ;;  %v3845_v60 = vld [vmem:[#allocation15 + $0x190] sm:$0xf]  ;;  %v3783_v15 = vld [vmem:[#allocation15 + $0x118] sm:$0xf0] }
 0x373   : > { %vm1688_vm5 = vmor %vm1686_vm4, %vm1687_vm3  ;;  %v3846_v2 = vor.u32 %v4453_v62, %v3845_v60  ;;  %v4029_v60 = vor.u32 %v4496_v57, %v4026_v59  ;;  %v4477_v62 = vld [vmem:[#allocation16 + $0x154] sm:$0xf0]  ;;  %v4487_v57 = vld [vmem:[#allocation16 + $0x1a4] sm:$0xf0] }
 0x374   : > { %v1674_v21 = vsel %vm1673_vm15, %v4737_v6, %v1670_v18  ;;  %v1683_v26 = vsub.f32 1.0, %v1682_v19  ;;  %v3847_v6 = vld [vmem:[#allocation15 + $0x198] sm:$0xf0]  ;;  %v4450_v18 = vld [vmem:[#allocation15 + $0x184] sm:$0xf] }
 0x375   : > { %v1679_v27 = vsel %vm1676_vm2, %v1678_v20, %v1674_v21  ;;  %v3850_v7 = vor.u32 %v4452_v5, %v3847_v6  ;;  %v3839_v19 = vld [vmem:[#allocation15 + $0x188] sm:$0xf0]  ;;  %v3773_v21 = vld [vmem:[#allocation15 + $0x100] sm:$0xf]  ;;  %v4495_v6 = vld [vmem:[#allocation16 + $0x1e4] sm:$0xf0] }
 0x376   : > { %v1696_v30 = vmul.f32 %v1679_v27, %v5567_v3  ;;  %v1684_v31 = vmul.f32 %v4739_v17, %v1683_v26  ;;  %v4443_v3 = vld [vmem:[#allocation15 + $0x144] sm:$0xf0]  ;;  %v3842_v20 = vor.u32 %v4450_v18, %v3839_v19  ;;  %v4434_v27 = vld [vmem:[#allocation15 + $0x104] sm:$0xf]  ;;  %v4016_v5 = vld [vmem:[#allocation16 + $0x1e0] sm:$0xf] }
 0x377   : > { %v3806_v39 = vor.u32 %v4443_v3, %v3805_v28  ;;  %2199 = vmatpush.bf16.msrb.mxu0 %v3850_v7  ;;  %v4435_v26 = vld [vmem:[#allocation15 + $0x104] sm:$0xf0]  ;;  %v4494_v7 = vld [vmem:[#allocation16 + $0x1e4] sm:$0xf]  ;;  %v4017_v8 = vor.u32 %v4495_v6, %v4016_v5  ;;  %v4008_v18 = vld [vmem:[#allocation16 + $0x1d0] sm:$0xf] }
 0x378   : > { %v1730_v33 = vpack.c.bf16 %v1696_v30, %v1696_v30  ;;  %v1685_v22 = vadd.f32 %v4739_v17, %v1684_v31  ;;  %v3774_v29 = vor.u32 %v4435_v26, %v3773_v21  ;;  %v3775_v30 = vld [vmem:[#allocation15 + $0x108] sm:$0xf0]  ;;  %v4021_v10 = vor.u32 %v4494_v7, %v4018_v9  ;;  %v4493_v19 = vld [vmem:[#allocation16 + $0x1d4] sm:$0xf0]  ;;  %v4010_v26 = vld [vmem:[#allocation16 + $0x1d8] sm:$0xf0] }
 0x379   : > { %2157 = vmatpush.bf16.msrb.mxu1 %v3806_v39  ;;  %v3778_v31 = vor.u32 %v4434_v27, %v3775_v30  ;;  %v4009_v21 = vor.u32 %v4493_v19, %v4008_v18  ;;  %v4473_v30 = vld [vmem:[#allocation16 + $0x134] sm:$0xf0] }
 0x37a   : > { %v1689_v35 = vsel %vm1688_vm5, %v4739_v17, %v1685_v22  ;;  %1906 = vmatmul.bf16.vlgmr.msra.gmra.mxu1 %v1730_v33  ;;  %1932 = vmatmul.bf16.vlgmr.msrb.gmra.mxu2 %v1730_v33  ;;  %v3786_v17 = vor.u32 %v4436_v14, %v3783_v15  ;;  %v1732_v33 = vld [vmem:[%s5673_s19] sm:$0x3]  ;;  %v4474_v14 = vld [vmem:[#allocation16 + $0x144] sm:$0xf] }
 0x37b   : > { %v1694_v12 = vsel %vm1691_vm6, %v1693_v25, %v1689_v35  ;;  %2200 = vmatpush.bf16.msrb.mxu0 %v3842_v20  ;;  %v1735_v22 = vperm.slane %v1732_v33, 1  ;;  %v4492_v20 = vld [vmem:[#allocation16 + $0x1d4] sm:$0xf] }
 0x37c   : > { %v1697_v37 = vmul.f32 %v1694_v12, %v5571_v23  ;;  %v4455_v23 = vld [vmem:[#allocation15 + $0x1a4] sm:$0xf0]  ;;  %2186 = vmatpush.bf16.msra.mxu2 %v3786_v17  ;;  %v1734_v12 = vperm.slane %v1732_v33, 0  ;;  %v4013_v27 = vor.u32 %v4492_v20, %v4010_v26  ;;  %v3930_v33 = vld [vmem:[#allocation16 + $0x138] sm:$0xf0] }
 0x37d   : > { %v3854_v52 = vor.u32 %v4455_v23, %v3853_v50  ;;  %2158 = vmatpush.bf16.msrb.mxu1 %v3798_v51  ;;  %v3962_v50 = vld [vmem:[#allocation16 + $0x178] sm:$0xf0]  ;;  %v3952_v51 = vld [vmem:[#allocation16 + $0x160] sm:$0xf] }
 0x37e   : > { %v1731_v38 = vpack.c.bf16 %v1697_v37, %v1697_v37  ;;  %v3965_v23 = vor.u32 %v4480_v24, %v3962_v50  ;;  %v3968_v26 = vld [vmem:[#allocation16 + $0x180] sm:$0xf] }
 0x37f   : > { %2172 = vmatpush.bf16.msra.mxu3 %v3854_v52  ;;  %v4479_v52 = vld [vmem:[#allocation16 + $0x164] sm:$0xf0] }
 0x380   : > { %1919 = vmatmul.bf16.vlgmr.msrb.gmra.mxu3 %v1731_v38  ;;  %1945 = vmatmul.bf16.vlgmr.msra.gmra.mxu0 %v1731_v38  ;;  %v3953_v53 = vor.u32 %v4479_v52, %v3952_v51  ;;  %v3912_v52 = vld [vmem:[#allocation16 + $0x110] sm:$0xf] }
 0x381   : > { %2159 = vmatpush.bf16.msrb.mxu1 %v3790_v61  ;;  %2187 = vmatpush.bf16.msra.mxu2 %v3778_v31  ;;  %v3944_v61 = vld [vmem:[#allocation16 + $0x150] sm:$0xf]  ;;  %v4472_v31 = vld [vmem:[#allocation16 + $0x134] sm:$0xf] }
 0x382   : > { %v3945_v1 = vor.u32 %v4477_v62, %v3944_v61  ;;  %2487 = vmatpush.bf16.msra.mxu0 %v4029_v60  ;;  %v3985_v60 = vor.u32 %v4487_v57, %v3984_v56  ;;  %v3986_v61 = vld [vmem:[#allocation16 + $0x1a8] sm:$0xf0]  ;;  %v4525_v56 = vld [vmem:[#allocation15 + $0x2d4] sm:$0xf0]  ;;  %v4510_v57 = vld [vmem:[#allocation15 + $0x264] sm:$0xf] }
 0x383   : > { %2173 = vmatpush.bf16.msra.mxu3 %v3846_v2  ;;  %v3946_v2 = vld [vmem:[#allocation16 + $0x158] sm:$0xf0] }
 0x384   : > { %v3949_v4 = vor.u32 %v4476_v63, %v3946_v2  ;;  %v4467_v2 = vld [vmem:[#allocation16 + $0x104] sm:$0xf0] }
 0x385   : > { %2160 = vmatpush.bf16.msrb.mxu1 %v3782_v11  ;;  %2474 = vmatpush.bf16.msrb.mxu2 %v3965_v23  ;;  %v3936_v11 = vld [vmem:[#allocation16 + $0x140] sm:$0xf]  ;;  %v3994_v23 = vld [vmem:[#allocation16 + $0x1b8] sm:$0xf0] }
 0x386   : > { %v3937_v15 = vor.u32 %v4475_v13, %v3936_v11  ;;  %2488 = vmatpush.bf16.msra.mxu0 %v4021_v10  ;;  %v3976_v11 = vld [vmem:[#allocation16 + $0x190] sm:$0xf]  ;;  %v4485_v13 = vld [vmem:[#allocation16 + $0x194] sm:$0xf0] }
 0x387   : > { %2174 = vmatpush.bf16.msra.mxu3 %v3838_v16  ;;  %v3938_v16 = vld [vmem:[#allocation16 + $0x148] sm:$0xf0] }
 0x388   : > { %v3941_v17 = vor.u32 %v4474_v14, %v3938_v16  ;;  %v4484_v14 = vld [vmem:[#allocation16 + $0x194] sm:$0xf]  ;;  %v3977_v16 = vor.u32 %v4485_v13, %v3976_v11  ;;  %v4075_v11 = vld [vmem:[#allocation15 + $0x258] sm:$0xf0]  ;;  %v4522_v13 = vld [vmem:[#allocation15 + $0x2c4] sm:$0xf] }
 0x389   : > { %2161 = vmatpush.bf16.msrb.mxu1 %v3774_v29  ;;  %v3928_v29 = vld [vmem:[#allocation16 + $0x130] sm:$0xf] }
 0x38a   : > { %2489 = vmatpush.bf16.msra.mxu0 %v4013_v27  ;;  %v4483_v27 = vld [vmem:[#allocation16 + $0x184] sm:$0xf0] }
 0x38b   : > { %2461 = vmatpush.bf16.msrb.mxu3 %v4025_v58  ;;  %v4486_v58 = vld [vmem:[#allocation16 + $0x1a4] sm:$0xf] }
 0x38c   : > { %v3989_v63 = vor.u32 %v4486_v58, %v3986_v61 }
 0x38f   : > { %2462 = vmatpush.bf16.msrb.mxu3 %v4017_v8  ;;  %v3906_v8 = vld [vmem:[#allocation16 + $0x108] sm:$0xf0] }
 0x393   : > { %2463 = vmatpush.bf16.msrb.mxu3 %v4009_v21 }
 0x3f7   : > { %v1907_v32 = vpop.f32.mrf.mxu1 }
 0x3f8   : > { %v1908_v3 = vadd.f32 %v1907_v32, %v1734_v12  ;;  %v3929_v32 = vor.u32 %v4473_v30, %v3928_v29  ;;  %v4490_v12 = vld [vmem:[#allocation16 + $0x1c4] sm:$0xf] }
 0x3f9   : > { %v4482_v29 = vld [vmem:[#allocation16 + $0x184] sm:$0xf] }
 0x3fd   : > { %v1933_v25 = vpop.f32.mrf.mxu2  ;;  %v1946_v35 = vpop.f32.mrf.mxu0 }
 0x3fe   : > { %v1934_v37 = vadd.f32 %v1933_v25, %v1735_v22  ;;  %v3933_v22 = vor.u32 %v4472_v31, %v3930_v33  ;;  %v4000_v25 = vld [vmem:[#allocation16 + $0x1c0] sm:$0xf]  ;;  %v3969_v31 = vor.u32 %v4483_v27, %v3968_v26 }
 0x3ff   : > { %v1909_v38 = vpop.f32.mrf.mxu1 }
 0x400   : > { %v1947_v28 = vadd.f32 %v1946_v35, %v1934_v37  ;;  %v4491_v35 = vld [vmem:[#allocation16 + $0x1c4] sm:$0xf0]  ;;  %v5599_v37 = vld [vmem:[%s5671_s17 + $0x2] sm:$0x3] }
 0x401   : > { %v4001_v38 = vor.u32 %v4491_v35, %v4000_v25  ;;  %v1991_v6 = vperm.slane %v5599_v37, 1 }
 0x402   : > { %v5587_v0 = vadd.f32 %v1947_v28, %v5550_v34  ;;  %v3960_v34 = vld [vmem:[#allocation16 + $0x170] sm:$0xf]  ;;  %v4002_v28 = vld [vmem:[#allocation16 + $0x1c8] sm:$0xf0] }
 0x403   : > { %v1920_v39 = vpop.f32.mrf.mxu3  ;;  %v3961_v49 = vor.u32 %v4481_v48, %v3960_v34  ;;  %2464 = vmatpush.bf16.msrb.mxu3 %v4001_v38  ;;  %v4489_v34 = vld [vmem:[#allocation16 + $0x1b4] sm:$0xf0]  ;;  %v4488_v48 = vld [vmem:[#allocation16 + $0x1b4] sm:$0xf] }
 0x404   : > { %v1986_v40 = vpack.c.bf16 %v5587_v0, %v5587_v0  ;;  %v1921_v41 = vadd.f32 %v1920_v39, %v1908_v3  ;;  %v4005_v3 = vor.u32 %v4490_v12, %v4002_v28  ;;  %v3920_v39 = vld [vmem:[#allocation16 + $0x120] sm:$0xf]  ;;  %v3997_v51 = vor.u32 %v4488_v48, %v3994_v23  ;;  %v4153_v12 = vld [vmem:[#allocation15 + $0x2f0] sm:$0xf]  ;;  %v4528_v28 = vld [vmem:[#allocation15 + $0x2f4] sm:$0xf] }
 0x405   : > { %v1935_v43 = vpop.f32.mrf.mxu2  ;;  %v1948_v42 = vpop.f32.mrf.mxu0  ;;  %2448 = vmatpush.bf16.msra.mxu1 %v3961_v49  ;;  %v1990_v49 = vperm.slane %v5599_v37, 0  ;;  %v4529_v37 = vld [vmem:[#allocation15 + $0x2f4] sm:$0xf0] }
 0x406   : > { %v5592_v44 = vadd.f32 %v1921_v41, %v5554_v36  ;;  %2175 = vmatmul.bf16.vlgmr.msra.gmra.mxu3 %v1986_v40  ;;  %2201 = vmatmul.bf16.vlgmr.msrb.gmra.mxu0 %v1986_v40  ;;  %v4478_v36 = vld [vmem:[#allocation16 + $0x164] sm:$0xf]  ;;  %v4471_v40 = vld [vmem:[#allocation16 + $0x124] sm:$0xf0]  ;;  %v3922_v42 = vld [vmem:[#allocation16 + $0x128] sm:$0xf0]  ;;  %v4154_v38 = vor.u32 %v4529_v37, %v4153_v12 }
 0x407   : > { %v3957_v46 = vor.u32 %v4478_v36, %v3954_v54  ;;  %v4470_v41 = vld [vmem:[#allocation16 + $0x124] sm:$0xf]  ;;  %v3921_v43 = vor.u32 %v4471_v40, %v3920_v39  ;;  %2490 = vmatpush.bf16.msra.mxu0 %v4005_v3  ;;  %v4469_v36 = vld [vmem:[#allocation16 + $0x114] sm:$0xf0]  ;;  %v4155_v3 = vld [vmem:[#allocation15 + $0x2f8] sm:$0xf0] }
 0x408   : > { %v1985_v45 = vpack.c.bf16 %v5592_v44, %v5592_v44  ;;  %v3913_v54 = vor.u32 %v4469_v36, %v3912_v52  ;;  %v4089_v39 = vld [vmem:[#allocation15 + $0x270] sm:$0xf]  ;;  %v4147_v52 = vld [vmem:[#allocation15 + $0x2e8] sm:$0xf0]  ;;  %v4081_v36 = vld [vmem:[#allocation15 + $0x260] sm:$0xf] }
 0x409   : > { %2449 = vmatpush.bf16.msra.mxu1 %v3953_v53  ;;  %2475 = vmatpush.bf16.msrb.mxu2 %v3957_v46  ;;  %v4468_v53 = vld [vmem:[#allocation16 + $0x114] sm:$0xf]  ;;  %v3914_v46 = vld [vmem:[#allocation16 + $0x118] sm:$0xf0] }
 0x40a   : > { %2162 = vmatmul.bf16.vlgmr.msrb.gmra.mxu1 %v1985_v45  ;;  %2188 = vmatmul.bf16.vlgmr.msra.gmra.mxu2 %v1985_v45  ;;  %v3925_v45 = vor.u32 %v4470_v41, %v3922_v42  ;;  %v3917_v55 = vor.u32 %v4468_v53, %v3914_v46  ;;  %v4158_v41 = vor.u32 %v4528_v28, %v4155_v3  ;;  %v4145_v42 = vld [vmem:[#allocation15 + $0x2e0] sm:$0xf]  ;;  %v4511_v53 = vld [vmem:[#allocation15 + $0x264] sm:$0xf0] }
 0x40b   : > { %v1922_v47 = vpop.f32.mrf.mxu3  ;;  %2491 = vmatpush.bf16.msra.mxu0 %v3997_v51  ;;  %v4526_v51 = vld [vmem:[#allocation15 + $0x2e4] sm:$0xf]  ;;  %v4082_v46 = vor.u32 %v4511_v53, %v4081_v36  ;;  %v4123_v36 = vld [vmem:[#allocation15 + $0x2b8] sm:$0xf0]  ;;  %v4057_v53 = vld [vmem:[#allocation15 + $0x230] sm:$0xf] }
 0x40c   : > { %v3992_v47 = vld [vmem:[#allocation16 + $0x1b0] sm:$0xf] }
 0x40d   : > { %2450 = vmatpush.bf16.msra.mxu1 %v3945_v1  ;;  %2476 = vmatpush.bf16.msrb.mxu2 %v3949_v4  ;;  %v3993_v50 = vor.u32 %v4489_v34, %v3992_v47  ;;  %v3904_v1 = vld [vmem:[#allocation16 + $0x100] sm:$0xf]  ;;  %v4466_v4 = vld [vmem:[#allocation16 + $0x104] sm:$0xf] }
 0x40e   : > { %v3905_v7 = vor.u32 %v4467_v2, %v3904_v1  ;;  %v3909_v10 = vor.u32 %v4466_v4, %v3906_v8  ;;  %v4073_v1 = vld [vmem:[#allocation15 + $0x250] sm:$0xf]  ;;  %v4509_v2 = vld [vmem:[#allocation15 + $0x254] sm:$0xf0]  ;;  %v4523_v8 = vld [vmem:[#allocation15 + $0x2c4] sm:$0xf0] }
 0x40f   : > { %2465 = vmatpush.bf16.msrb.mxu3 %v3993_v50  ;;  %2492 = vmatpush.bf16.msra.mxu0 %v3989_v63  ;;  %v4091_v50 = vld [vmem:[#allocation15 + $0x278] sm:$0xf0] }
 0x410   : > { %v4139_v63 = vld [vmem:[#allocation15 + $0x2d8] sm:$0xf0] }
 0x411   : > { %2451 = vmatpush.bf16.msra.mxu1 %v3937_v15  ;;  %2477 = vmatpush.bf16.msrb.mxu2 %v3941_v17  ;;  %v3978_v17 = vld [vmem:[#allocation16 + $0x198] sm:$0xf0] }
 0x412   : > { %v3981_v19 = vor.u32 %v4484_v14, %v3978_v17 }
 0x413   : > { %2466 = vmatpush.bf16.msrb.mxu3 %v3985_v60  ;;  %v4524_v60 = vld [vmem:[#allocation15 + $0x2d4] sm:$0xf] }
 0x414   : > { %2493 = vmatpush.bf16.msra.mxu0 %v3981_v19 }
 0x415   : > { %2452 = vmatpush.bf16.msra.mxu1 %v3929_v32  ;;  %2478 = vmatpush.bf16.msrb.mxu2 %v3933_v22  ;;  %v3970_v32 = vld [vmem:[#allocation16 + $0x188] sm:$0xf0] }
 0x416   : > { %v3973_v22 = vor.u32 %v4482_v29, %v3970_v32 }
 0x417   : > { %2467 = vmatpush.bf16.msrb.mxu3 %v3977_v16  ;;  %v4131_v16 = vld [vmem:[#allocation15 + $0x2c8] sm:$0xf0] }
 0x418   : > { %2494 = vmatpush.bf16.msra.mxu0 %v3973_v22  ;;  %v4134_v19 = vor.u32 %v4522_v13, %v4131_v16  ;;  %v4516_v13 = vld [vmem:[#allocation15 + $0x294] sm:$0xf]  ;;  %v4041_v16 = vld [vmem:[#allocation15 + $0x210] sm:$0xf] }
 0x419   : > { %2453 = vmatpush.bf16.msra.mxu1 %v3921_v43  ;;  %2479 = vmatpush.bf16.msrb.mxu2 %v3925_v45  ;;  %v4513_v43 = vld [vmem:[#allocation15 + $0x274] sm:$0xf0]  ;;  %v4527_v45 = vld [vmem:[#allocation15 + $0x2e4] sm:$0xf0] }
 0x41a   : > { %v4090_v48 = vor.u32 %v4513_v43, %v4089_v39 }
 0x41b   : > { %2468 = vmatpush.bf16.msrb.mxu3 %v3969_v31 }
 0x41c   : > { %2743 = vmatpush.bf16.msrb.mxu0 %v4158_v41 }
 0x41d   : > { %2454 = vmatpush.bf16.msra.mxu1 %v3913_v54  ;;  %2480 = vmatpush.bf16.msrb.mxu2 %v3917_v55  ;;  %v4150_v54 = vor.u32 %v4526_v51, %v4147_v52  ;;  %v4137_v55 = vld [vmem:[#allocation15 + $0x2d0] sm:$0xf]  ;;  %v4520_v52 = vld [vmem:[#allocation15 + $0x2b4] sm:$0xf] }
 0x41e   : > { %v4138_v58 = vor.u32 %v4525_v56, %v4137_v55  ;;  %v4113_v55 = vld [vmem:[#allocation15 + $0x2a0] sm:$0xf] }
 0x41f   : > { %2717 = vmatpush.bf16.msra.mxu3 %v4154_v38 }
 0x420   : > { %2744 = vmatpush.bf16.msrb.mxu0 %v4150_v54  ;;  %v4126_v54 = vor.u32 %v4520_v52, %v4123_v36 }
 0x421   : > { %2455 = vmatpush.bf16.msra.mxu1 %v3905_v7  ;;  %2481 = vmatpush.bf16.msrb.mxu2 %v3909_v10  ;;  %v4129_v7 = vld [vmem:[#allocation15 + $0x2c0] sm:$0xf]  ;;  %v4508_v10 = vld [vmem:[#allocation15 + $0x254] sm:$0xf] }
 0x425   : > { %2704 = vmatpush.bf16.msrb.mxu1 %v4090_v48 }
 0x429   : > { %2705 = vmatpush.bf16.msrb.mxu1 %v4082_v46  ;;  %v4505_v46 = vld [vmem:[#allocation15 + $0x234] sm:$0xf0] }
 0x42a   : > { %v4058_v56 = vor.u32 %v4505_v46, %v4057_v53  ;;  %v4545_v53 = vld [vmem:[#allocation16 + $0x274] sm:$0xf0] }
 0x483   : > { %v2202_v24 = vpop.f32.mrf.mxu0 }
 0x487   : > { %v2163_v59 = vpop.f32.mrf.mxu1 }
 0x488   : > { %v2164_v62 = vadd.f32 %v2163_v59, %v1990_v49  ;;  %v4512_v49 = vld [vmem:[#allocation15 + $0x274] sm:$0xf]  ;;  %v4083_v59 = vld [vmem:[#allocation15 + $0x268] sm:$0xf0] }
 0x489   : > { %v2176_v5 = vpop.f32.mrf.mxu3  ;;  %v4094_v23 = vor.u32 %v4512_v49, %v4091_v50  ;;  %v4506_v49 = vld [vmem:[#allocation15 + $0x244] sm:$0xf]  ;;  %v4067_v50 = vld [vmem:[#allocation15 + $0x248] sm:$0xf0] }
 0x48a   : > { %v5603_v9 = vadd.f32 %v2176_v5, %v2164_v62  ;;  %v4086_v62 = vor.u32 %v4510_v57, %v4083_v59  ;;  %v4142_v5 = vor.u32 %v4524_v60, %v4139_v63  ;;  %v4070_v51 = vor.u32 %v4506_v49, %v4067_v50  ;;  %v4059_v59 = vld [vmem:[#allocation15 + $0x238] sm:$0xf0]  ;;  %v4518_v60 = vld [vmem:[#allocation15 + $0x2a4] sm:$0xf] }
 0x48b   : > { %v2204_v15 = vpop.f32.mrf.mxu0  ;;  %2730 = vmatpush.bf16.msra.mxu2 %v4094_v23 }
 0x48c   : > { %v3899_v18 = vmul.f32 -1.442695, %v5603_v9  ;;  %v4130_v15 = vor.u32 %v4523_v8, %v4129_v7  ;;  %2745 = vmatpush.bf16.msrb.mxu0 %v4142_v5  ;;  %v4502_v7 = vld [vmem:[#allocation15 + $0x224] sm:$0xf]  ;;  %v4051_v8 = vld [vmem:[#allocation15 + $0x228] sm:$0xf0] }
 0x48d   : > { %v2189_v20 = vpop.f32.mrf.mxu2 }
 0x48e   : > { %4740 = vpow2.f32 %v3899_v18  ;;  %v2190_v21 = vadd.f32 %v2189_v20, %v1991_v6  ;;  %v4074_v6 = vor.u32 %v4509_v2, %v4073_v1  ;;  %v4078_v18 = vor.u32 %v4508_v10, %v4075_v11  ;;  %v4049_v1 = vld [vmem:[#allocation15 + $0x220] sm:$0xf]  ;;  %v4503_v2 = vld [vmem:[#allocation15 + $0x224] sm:$0xf0] }
 0x48f   : > { %v2165_v30 = vpop.f32.mrf.mxu1  ;;  %2731 = vmatpush.bf16.msra.mxu2 %v4086_v62  ;;  %v4115_v62 = vld [vmem:[#allocation15 + $0x2a8] sm:$0xf0]  ;;  %v4050_v5 = vor.u32 %v4503_v2, %v4049_v1  ;;  %v4054_v11 = vor.u32 %v4502_v7, %v4051_v8  ;;  %v4286_v2 = vld [vmem:[#allocation16 + $0x2f8] sm:$0xf0]  ;;  %v4540_v7 = vld [vmem:[#allocation16 + $0x254] sm:$0xf] }
 0x490   : > { %v5606_v33 = vadd.f32 %v2202_v24, %v2190_v21  ;;  %v4146_v24 = vor.u32 %v4527_v45, %v4145_v42  ;;  %2706 = vmatpush.bf16.msrb.mxu1 %v4074_v6  ;;  %2746 = vmatpush.bf16.msrb.mxu0 %v4134_v19  ;;  %v4118_v63 = vor.u32 %v4518_v60, %v4115_v62  ;;  %v4517_v6 = vld [vmem:[#allocation15 + $0x294] sm:$0xf0] }
 0x491   : > { %v2178_v25 = vpop.f32.mrf.mxu3  ;;  %v4561_v62 = vld [vmem:[#allocation16 + $0x2f4] sm:$0xf0] }
 0x492   : > { %v3900_v35 = vmul.f32 -1.442695, %v5606_v33  ;;  %2718 = vmatpush.bf16.msra.mxu3 %v4146_v24  ;;  %v4521_v24 = vld [vmem:[#allocation15 + $0x2b4] sm:$0xf0] }
 0x493   : > { %2732 = vmatpush.bf16.msra.mxu2 %v4078_v18  ;;  %v4097_v18 = vld [vmem:[#allocation15 + $0x280] sm:$0xf] }
 0x494   : > { %v4741_v40 = vpop.eup %4740  ;;  %4742 = vpow2.f32 %v3900_v35  ;;  %2747 = vmatpush.bf16.msrb.mxu0 %v4126_v54  ;;  %v4544_v54 = vld [vmem:[#allocation16 + $0x274] sm:$0xf] }
 0x495   : > { %v5609_v47 = vadd.f32 1.0, %v4741_v40  ;;  %v2191_v34 = vpop.f32.mrf.mxu2 }
 0x496   : > { %2719 = vmatpush.bf16.msra.mxu3 %v4138_v58  ;;  %v4121_v34 = vld [vmem:[#allocation15 + $0x2b0] sm:$0xf]  ;;  %v4504_v58 = vld [vmem:[#allocation15 + $0x234] sm:$0xf] }
 0x497   : > { %4744 = vrcp.f32 %v5609_v47  ;;  %v2225_v21 = vand.u32 2147483648, %v5609_v47  ;;  %v2223_v27 = vand.u32 2147483647, %v5609_v47  ;;  %vm2219_vm8 = vweird.f32 %v5609_v47  ;;  %2733 = vmatpush.bf16.msra.mxu2 %v4070_v51 }
 0x498   : > { %v4122_v23 = vor.u32 %v4521_v24, %v4121_v34  ;;  %2748 = vmatpush.bf16.msrb.mxu0 %v4118_v63  ;;  %v4560_v63 = vld [vmem:[#allocation16 + $0x2f4] sm:$0xf] }
 0x499   : > { %v2226_v32 = vor.u32 1.1754944e-38, %v2225_v21  ;;  %vm2224_vm10 = vcmp.eq.f32.partialorder %v2223_v27, 8.507059e+37  ;;  %v4500_v21 = vld [vmem:[#allocation15 + $0x214] sm:$0xf] }
 0x49a   : > { %v4743_v61 = vpop.eup %4742  ;;  %2720 = vmatpush.bf16.msra.mxu3 %v4130_v15 }
 0x49b   : > { %v2213_v4 = vadd.f32 1.0, %v4743_v61  ;;  %v4062_v61 = vor.u32 %v4504_v58, %v4059_v59  ;;  %v4214_v59 = vld [vmem:[#allocation16 + $0x268] sm:$0xf0] }
 0x49d   : > { %v4745_v14 = vpop.eup %4744  ;;  %4746 = vrcp.f32 %v2213_v4  ;;  %v2240_v12 = vand.u32 2147483648, %v2213_v4  ;;  %v2238_v28 = vand.u32 2147483647, %v2213_v4  ;;  %vm2234_vm12 = vweird.f32 %v2213_v4  ;;  %2734 = vmatpush.bf16.msra.mxu2 %v4062_v61  ;;  %v4284_v61 = vld [vmem:[#allocation16 + $0x2f0] sm:$0xf] }
 0x49e   : > { %v2215_v17 = vmul.f32 %v4745_v14, %v5609_v47  ;;  %vm2220_vm7 = vweird.f32 %v4745_v14  ;;  %v4065_v47 = vld [vmem:[#allocation15 + $0x240] sm:$0xf]  ;;  %2721 = vmatpush.bf16.msra.mxu3 %v4122_v23  ;;  %v4285_v1 = vor.u32 %v4561_v62, %v4284_v61 }
 0x49f   : > { %vm2221_vm9 = vmor %vm2219_vm8, %vm2220_vm7  ;;  %v2241_v40 = vor.u32 1.1754944e-38, %v2240_v12  ;;  %vm2239_vm14 = vcmp.eq.f32.partialorder %v2238_v28, 8.507059e+37  ;;  %v4244_v62 = vld [vmem:[#allocation16 + $0x2a0] sm:$0xf] }
 0x4a0   : > { %v2216_v20 = vsub.f32 1.0, %v2215_v17  ;;  %v4501_v17 = vld [vmem:[#allocation15 + $0x214] sm:$0xf0] }
 0x4a1   : > { %2735 = vmatpush.bf16.msra.mxu2 %v4054_v11  ;;  %v4042_v19 = vor.u32 %v4501_v17, %v4041_v16  ;;  %v4278_v17 = vld [vmem:[#allocation16 + $0x2e8] sm:$0xf0] }
 0x4a2   : > { %v2217_v26 = vmul.f32 %v4745_v14, %v2216_v20  ;;  %v4515_v20 = vld [vmem:[#allocation15 + $0x284] sm:$0xf0] }
 0x4a3   : > { %v4747_v29 = vpop.eup %4746  ;;  %v4098_v27 = vor.u32 %v4515_v20, %v4097_v18  ;;  %v4539_v20 = vld [vmem:[#allocation16 + $0x244] sm:$0xf0] }
 0x4a4   : > { %v2218_v30 = vadd.f32 %v4745_v14, %v2217_v26  ;;  %v2230_v31 = vmul.f32 %v4747_v29, %v2213_v4  ;;  %vm2235_vm11 = vweird.f32 %v4747_v29  ;;  %v4105_v4 = vld [vmem:[#allocation15 + $0x290] sm:$0xf]  ;;  %v4043_v26 = vld [vmem:[#allocation15 + $0x218] sm:$0xf0] }
 0x4a5   : > { %vm2236_vm13 = vmor %vm2234_vm12, %vm2235_vm11  ;;  %v4106_v10 = vor.u32 %v4517_v6, %v4105_v4  ;;  %v4289_v4 = vor.u32 %v4560_v63, %v4286_v2  ;;  %v4541_v6 = vld [vmem:[#allocation16 + $0x254] sm:$0xf0]  ;;  %v4551_v63 = vld [vmem:[#allocation16 + $0x2a4] sm:$0xf0] }
 0x4a6   : > { %v2222_v22 = vsel %vm2221_vm9, %v4745_v14, %v2218_v30  ;;  %v2231_v25 = vsub.f32 1.0, %v2230_v31  ;;  %v4107_v14 = vld [vmem:[#allocation15 + $0x298] sm:$0xf0]  ;;  %v4514_v30 = vld [vmem:[#allocation15 + $0x284] sm:$0xf] }
 0x4a7   : > { %v2227_v35 = vsel %vm2224_vm10, %v2226_v32, %v2222_v22  ;;  %v4110_v15 = vor.u32 %v4516_v13, %v4107_v14  ;;  %v4099_v31 = vld [vmem:[#allocation15 + $0x288] sm:$0xf0]  ;;  %v4033_v22 = vld [vmem:[#allocation15 + $0x200] sm:$0xf]  ;;  %v4559_v14 = vld [vmem:[#allocation16 + $0x2e4] sm:$0xf0] }
 0x4a8   : > { %v2244_v37 = vmul.f32 %v2227_v35, %v5603_v9  ;;  %v2232_v38 = vmul.f32 %v4747_v29, %v2231_v25  ;;  %v4507_v9 = vld [vmem:[#allocation15 + $0x244] sm:$0xf0]  ;;  %v4102_v32 = vor.u32 %v4514_v30, %v4099_v31  ;;  %v4498_v35 = vld [vmem:[#allocation15 + $0x204] sm:$0xf]  ;;  %v4276_v13 = vld [vmem:[#allocation16 + $0x2e0] sm:$0xf] }
 0x4a9   : > { %v4066_v48 = vor.u32 %v4507_v9, %v4065_v47  ;;  %2749 = vmatpush.bf16.msrb.mxu0 %v4110_v15  ;;  %v4499_v25 = vld [vmem:[#allocation15 + $0x204] sm:$0xf0]  ;;  %v4558_v15 = vld [vmem:[#allocation16 + $0x2e4] sm:$0xf]  ;;  %v4277_v16 = vor.u32 %v4559_v14, %v4276_v13  ;;  %v4268_v30 = vld [vmem:[#allocation16 + $0x2d0] sm:$0xf] }
 0x4aa   : > { %v2279_v3 = vpack.c.bf16 %v2244_v37, %v2244_v37  ;;  %v2233_v39 = vadd.f32 %v4747_v29, %v2232_v38  ;;  %v4034_v12 = vor.u32 %v4499_v25, %v4033_v22  ;;  %v4035_v37 = vld [vmem:[#allocation15 + $0x208] sm:$0xf0]  ;;  %v4281_v18 = vor.u32 %v4558_v15, %v4278_v17  ;;  %v4557_v31 = vld [vmem:[#allocation16 + $0x2d4] sm:$0xf0]  ;;  %v4270_v25 = vld [vmem:[#allocation16 + $0x2d8] sm:$0xf0] }
 0x4ab   : > { %2707 = vmatpush.bf16.msrb.mxu1 %v4066_v48  ;;  %v4038_v38 = vor.u32 %v4498_v35, %v4035_v37  ;;  %v4269_v22 = vor.u32 %v4557_v31, %v4268_v30  ;;  %v4537_v37 = vld [vmem:[#allocation16 + $0x234] sm:$0xf0] }
 0x4ac   : > { %v2237_v41 = vsel %vm2236_vm13, %v4747_v29, %v2233_v39  ;;  %2456 = vmatmul.bf16.vlgmr.msra.gmra.mxu1 %v2279_v3  ;;  %2482 = vmatmul.bf16.vlgmr.msrb.gmra.mxu2 %v2279_v3  ;;  %v4046_v29 = vor.u32 %v4500_v21, %v4043_v26  ;;  %v3901_v3 = vld [vmem:[%s5673_s19 + $0x2] sm:$0x3] }
 0x4ad   : > { %v2242_v43 = vsel %vm2239_vm14, %v2241_v40, %v2237_v41  ;;  %2750 = vmatpush.bf16.msrb.mxu0 %v4102_v32  ;;  %v2285_v39 = vperm.slane %v3901_v3, 1  ;;  %v4538_v21 = vld [vmem:[#allocation16 + $0x244] sm:$0xf]  ;;  %v4556_v32 = vld [vmem:[#allocation16 + $0x2d4] sm:$0xf] }
 0x4ae   : > { %v2245_v42 = vmul.f32 %v2242_v43, %v5606_v33  ;;  %v4519_v33 = vld [vmem:[#allocation15 + $0x2a4] sm:$0xf0]  ;;  %2736 = vmatpush.bf16.msra.mxu2 %v4046_v29  ;;  %v2284_v43 = vperm.slane %v3901_v3, 0  ;;  %v4273_v35 = vor.u32 %v4556_v32, %v4270_v25  ;;  %v4190_v3 = vld [vmem:[#allocation16 + $0x238] sm:$0xf0] }
 0x4af   : > { %v4114_v57 = vor.u32 %v4519_v33, %v4113_v55  ;;  %2708 = vmatpush.bf16.msrb.mxu1 %v4058_v56  ;;  %v4222_v55 = vld [vmem:[#allocation16 + $0x278] sm:$0xf0]  ;;  %v4212_v56 = vld [vmem:[#allocation16 + $0x260] sm:$0xf] }
 0x4b0   : > { %v2280_v45 = vpack.c.bf16 %v2245_v42, %v2245_v42  ;;  %v4225_v33 = vor.u32 %v4544_v54, %v4222_v55  ;;  %v4228_v25 = vld [vmem:[#allocation16 + $0x280] sm:$0xf] }
 0x4b1   : > { %2722 = vmatpush.bf16.msra.mxu3 %v4114_v57  ;;  %v4543_v57 = vld [vmem:[#allocation16 + $0x264] sm:$0xf0] }
 0x4b2   : > { %2469 = vmatmul.bf16.vlgmr.msrb.gmra.mxu3 %v2280_v45  ;;  %2495 = vmatmul.bf16.vlgmr.msra.gmra.mxu0 %v2280_v45  ;;  %v4213_v58 = vor.u32 %v4543_v57, %v4212_v56  ;;  %v4172_v57 = vld [vmem:[#allocation16 + $0x210] sm:$0xf] }
 0x4b3   : > { %2709 = vmatpush.bf16.msrb.mxu1 %v4050_v5  ;;  %2737 = vmatpush.bf16.msra.mxu2 %v4038_v38  ;;  %v4204_v5 = vld [vmem:[#allocation16 + $0x250] sm:$0xf]  ;;  %v4536_v38 = vld [vmem:[#allocation16 + $0x234] sm:$0xf] }
 0x4b4   : > { %v4205_v8 = vor.u32 %v4541_v6, %v4204_v5  ;;  %3037 = vmatpush.bf16.msra.mxu0 %v4289_v4  ;;  %v4245_v4 = vor.u32 %v4551_v63, %v4244_v62  ;;  %v4246_v5 = vld [vmem:[#allocation16 + $0x2a8] sm:$0xf0] }
 0x4b5   : > { %2723 = vmatpush.bf16.msra.mxu3 %v4106_v10  ;;  %v4206_v10 = vld [vmem:[#allocation16 + $0x258] sm:$0xf0] }
 0x4b6   : > { %v4209_v11 = vor.u32 %v4540_v7, %v4206_v10  ;;  %v4531_v10 = vld [vmem:[#allocation16 + $0x204] sm:$0xf0] }
 0x4b7   : > { %2710 = vmatpush.bf16.msrb.mxu1 %v4042_v19  ;;  %3024 = vmatpush.bf16.msrb.mxu2 %v4225_v33  ;;  %v4196_v19 = vld [vmem:[#allocation16 + $0x240] sm:$0xf]  ;;  %v4254_v33 = vld [vmem:[#allocation16 + $0x2b8] sm:$0xf0] }
 0x4b8   : > { %v4197_v26 = vor.u32 %v4539_v20, %v4196_v19  ;;  %3038 = vmatpush.bf16.msra.mxu0 %v4281_v18  ;;  %v4236_v19 = vld [vmem:[#allocation16 + $0x290] sm:$0xf]  ;;  %v4549_v20 = vld [vmem:[#allocation16 + $0x294] sm:$0xf0] }
 0x4b9   : > { %2724 = vmatpush.bf16.msra.mxu3 %v4098_v27  ;;  %v4198_v27 = vld [vmem:[#allocation16 + $0x248] sm:$0xf0] }
 0x4ba   : > { %v4201_v29 = vor.u32 %v4538_v21, %v4198_v27  ;;  %v4548_v21 = vld [vmem:[#allocation16 + $0x294] sm:$0xf]  ;;  %v4237_v27 = vor.u32 %v4549_v20, %v4236_v19  ;;  %v4563_v19 = vld [vmem:[#allocation18 + $0x8] sm:$0xff]  ;;  %v4570_v20 = vld [vmem:[#allocation18 + $0x40] sm:$0xff] }
 0x4bb   : > { %2711 = vmatpush.bf16.msrb.mxu1 %v4034_v12  ;;  %v4188_v12 = vld [vmem:[#allocation16 + $0x230] sm:$0xf] }
 0x4bc   : > { %3039 = vmatpush.bf16.msra.mxu0 %v4273_v35  ;;  %v4547_v35 = vld [vmem:[#allocation16 + $0x284] sm:$0xf0] }
 0x4bd   : > { %3011 = vmatpush.bf16.msrb.mxu3 %v4285_v1  ;;  %v4550_v1 = vld [vmem:[#allocation16 + $0x2a4] sm:$0xf] }
 0x4be   : > { %v4249_v7 = vor.u32 %v4550_v1, %v4246_v5 }
 0x4c1   : > { %3012 = vmatpush.bf16.msrb.mxu3 %v4277_v16  ;;  %v4166_v16 = vld [vmem:[#allocation16 + $0x208] sm:$0xf0] }
 0x4c5   : > { %3013 = vmatpush.bf16.msrb.mxu3 %v4269_v22 }
 0x529   : > { %v2457_v28 = vpop.f32.mrf.mxu1 }
 0x52a   : > { %v2458_v9 = vadd.f32 %v2457_v28, %v2284_v43  ;;  %v4189_v28 = vor.u32 %v4537_v37, %v4188_v12  ;;  %v4554_v43 = vld [vmem:[#allocation16 + $0x2c4] sm:$0xf] }
 0x52b   : > { %v4546_v12 = vld [vmem:[#allocation16 + $0x284] sm:$0xf] }
 0x52f   : > { %v2483_v40 = vpop.f32.mrf.mxu2  ;;  %v2496_v41 = vpop.f32.mrf.mxu0 }
 0x530   : > { %v2484_v42 = vadd.f32 %v2483_v40, %v2285_v39  ;;  %v4193_v39 = vor.u32 %v4536_v38, %v4190_v3  ;;  %v4260_v40 = vld [vmem:[#allocation16 + $0x2c0] sm:$0xf]  ;;  %v4229_v38 = vor.u32 %v4547_v35, %v4228_v25 }
 0x531   : > { %v2459_v45 = vpop.f32.mrf.mxu1 }
 0x532   : > { %v2497_v47 = vadd.f32 %v2496_v41, %v2484_v42  ;;  %v4555_v41 = vld [vmem:[#allocation16 + $0x2c4] sm:$0xf0]  ;;  %v5634_v42 = vld [vmem:[%s5671_s17 + $0x4] sm:$0x3] }
 0x533   : > { %v4261_v45 = vor.u32 %v4555_v41, %v4260_v40  ;;  %v2541_v14 = vperm.slane %v5634_v42, 1 }
 0x534   : > { %v5622_v34 = vadd.f32 %v2497_v47, %v5587_v0  ;;  %v4220_v0 = vld [vmem:[#allocation16 + $0x270] sm:$0xf]  ;;  %v4262_v47 = vld [vmem:[#allocation16 + $0x2c8] sm:$0xf0] }
 0x535   : > { %v2470_v48 = vpop.f32.mrf.mxu3  ;;  %v4221_v46 = vor.u32 %v4545_v53, %v4220_v0  ;;  %3014 = vmatpush.bf16.msrb.mxu3 %v4261_v45  ;;  %v4553_v0 = vld [vmem:[#allocation16 + $0x2b4] sm:$0xf0]  ;;  %v4552_v53 = vld [vmem:[#allocation16 + $0x2b4] sm:$0xf] }
 0x536   : > { %v2536_v24 = vpack.c.bf16 %v5622_v34, %v5622_v34  ;;  %v2471_v49 = vadd.f32 %v2470_v48, %v2458_v9  ;;  %v4265_v9 = vor.u32 %v4554_v43, %v4262_v47  ;;  %v4180_v48 = vld [vmem:[#allocation16 + $0x220] sm:$0xf]  ;;  %v4257_v56 = vor.u32 %v4552_v53, %v4254_v33  ;;  %v4577_v43 = vld [vmem:[#allocation18 + $0x78] sm:$0xff]  ;;  %v4576_v47 = vld [vmem:[#allocation18 + $0x70] sm:$0xff] }
 0x537   : > { %v2485_v50 = vpop.f32.mrf.mxu2  ;;  %v2498_v23 = vpop.f32.mrf.mxu0  ;;  %2998 = vmatpush.bf16.msra.mxu1 %v4221_v46  ;;  %v2540_v46 = vperm.slane %v5634_v42, 0  ;;  %v4569_v42 = vld [vmem:[#allocation18 + $0x38] sm:$0xff] }
 0x538   : > { %v5627_v51 = vadd.f32 %v2471_v49, %v5592_v44  ;;  %2725 = vmatmul.bf16.vlgmr.msra.gmra.mxu3 %v2536_v24  ;;  %2751 = vmatmul.bf16.vlgmr.msrb.gmra.mxu0 %v2536_v24  ;;  %v4542_v44 = vld [vmem:[#allocation16 + $0x264] sm:$0xf]  ;;  %v4535_v24 = vld [vmem:[#allocation16 + $0x224] sm:$0xf0]  ;;  %v4182_v23 = vld [vmem:[#allocation16 + $0x228] sm:$0xf0] }
 0x539   : > { %v4217_v60 = vor.u32 %v4542_v44, %v4214_v59  ;;  %v4534_v49 = vld [vmem:[#allocation16 + $0x224] sm:$0xf]  ;;  %v4181_v50 = vor.u32 %v4535_v24, %v4180_v48  ;;  %3040 = vmatpush.bf16.msra.mxu0 %v4265_v9  ;;  %v4533_v44 = vld [vmem:[#allocation16 + $0x214] sm:$0xf0]  ;;  %v4568_v9 = vld [vmem:[#allocation18 + $0x30] sm:$0xff] }
 0x53a   : > { %v2535_v52 = vpack.c.bf16 %v5627_v51, %v5627_v51  ;;  %v4173_v59 = vor.u32 %v4533_v44, %v4172_v57 }
 0x53b   : > { %2999 = vmatpush.bf16.msra.mxu1 %v4213_v58  ;;  %3025 = vmatpush.bf16.msrb.mxu2 %v4217_v60  ;;  %v4532_v58 = vld [vmem:[#allocation16 + $0x214] sm:$0xf]  ;;  %v4174_v60 = vld [vmem:[#allocation16 + $0x218] sm:$0xf0] }
 0x53c   : > { %2712 = vmatmul.bf16.vlgmr.msrb.gmra.mxu1 %v2535_v52  ;;  %2738 = vmatmul.bf16.vlgmr.msra.gmra.mxu2 %v2535_v52  ;;  %v4185_v52 = vor.u32 %v4534_v49, %v4182_v23  ;;  %v4177_v61 = vor.u32 %v4532_v58, %v4174_v60  ;;  %v4575_v49 = vld [vmem:[#allocation18 + $0x68] sm:$0xff] }
 0x53d   : > { %v2472_v36 = vpop.f32.mrf.mxu3  ;;  %3041 = vmatpush.bf16.msra.mxu0 %v4257_v56 }
 0x53e   : > { %v4252_v36 = vld [vmem:[#allocation16 + $0x2b0] sm:$0xf] }
 0x53f   : > { %3000 = vmatpush.bf16.msra.mxu1 %v4205_v8  ;;  %3026 = vmatpush.bf16.msrb.mxu2 %v4209_v11  ;;  %v4253_v55 = vor.u32 %v4553_v0, %v4252_v36  ;;  %v4164_v8 = vld [vmem:[#allocation16 + $0x200] sm:$0xf]  ;;  %v4530_v11 = vld [vmem:[#allocation16 + $0x204] sm:$0xf] }
 0x540   : > { %v4165_v15 = vor.u32 %v4531_v10, %v4164_v8  ;;  %v4169_v18 = vor.u32 %v4530_v11, %v4166_v16  ;;  %v4574_v36 = vld [vmem:[#allocation18 + $0x60] sm:$0xff]  ;;  %v4572_v16 = vld [vmem:[#allocation18 + $0x50] sm:$0xff] }
 0x541   : > { %3015 = vmatpush.bf16.msrb.mxu3 %v4253_v55  ;;  %3042 = vmatpush.bf16.msra.mxu0 %v4249_v7 }
 0x543   : > { %3001 = vmatpush.bf16.msra.mxu1 %v4197_v26  ;;  %3027 = vmatpush.bf16.msrb.mxu2 %v4201_v29  ;;  %v4238_v29 = vld [vmem:[#allocation16 + $0x298] sm:$0xf0] }
 0x544   : > { %v4241_v31 = vor.u32 %v4548_v21, %v4238_v29  ;;  %v4562_v21 = vld [vmem:[#allocation18] sm:$0xff] }
 0x545   : > { %3016 = vmatpush.bf16.msrb.mxu3 %v4245_v4 }
 0x546   : > { %3043 = vmatpush.bf16.msra.mxu0 %v4241_v31 }
 0x547   : > { %3002 = vmatpush.bf16.msra.mxu1 %v4189_v28  ;;  %3028 = vmatpush.bf16.msrb.mxu2 %v4193_v39  ;;  %v4230_v28 = vld [vmem:[#allocation16 + $0x288] sm:$0xf0] }
 0x548   : > { %v4233_v39 = vor.u32 %v4546_v12, %v4230_v28 }
 0x549   : > { %3017 = vmatpush.bf16.msrb.mxu3 %v4237_v27  ;;  %v4161_v27 = vld [vmem:[%s5673_s19 + $0x4] sm:$0x3] }
 0x54a   : > { %3044 = vmatpush.bf16.msra.mxu0 %v4233_v39  ;;  %v2835_v29 = vperm.slane %v4161_v27, 1 }
 0x54b   : > { %3003 = vmatpush.bf16.msra.mxu1 %v4181_v50  ;;  %3029 = vmatpush.bf16.msrb.mxu2 %v4185_v52  ;;  %v4567_v50 = vld [vmem:[#allocation18 + $0x28] sm:$0xff] }
 0x54d   : > { %3018 = vmatpush.bf16.msrb.mxu3 %v4229_v38 }
 0x54f   : > { %3004 = vmatpush.bf16.msra.mxu1 %v4173_v59  ;;  %3030 = vmatpush.bf16.msrb.mxu2 %v4177_v61 }
 0x551   : > { %3199 = vmatpush.bf16.msra.mxu3 %v4577_v43 }
 0x553   : > { %3005 = vmatpush.bf16.msra.mxu1 %v4165_v15  ;;  %3031 = vmatpush.bf16.msrb.mxu2 %v4169_v18  ;;  %v4565_v15 = vld [vmem:[#allocation18 + $0x18] sm:$0xff]  ;;  %v4571_v18 = vld [vmem:[#allocation18 + $0x48] sm:$0xff] }
 0x555   : > { %3200 = vmatpush.bf16.msra.mxu3 %v4576_v47 }
 0x557   : > { %3186 = vmatpush.bf16.msrb.mxu1 %v4569_v42 }
 0x559   : > { %3201 = vmatpush.bf16.msra.mxu3 %v4575_v49 }
 0x55b   : > { %3187 = vmatpush.bf16.msrb.mxu1 %v4568_v9 }
 0x55d   : > { %3202 = vmatpush.bf16.msra.mxu3 %v4574_v36 }
 0x55f   : > { %3188 = vmatpush.bf16.msrb.mxu1 %v4567_v50 }
 0x5b5   : > { %v2752_v54 = vpop.f32.mrf.mxu0 }
 0x5b9   : > { %v2713_v2 = vpop.f32.mrf.mxu1 }
 0x5ba   : > { %v2714_v6 = vadd.f32 %v2713_v2, %v2540_v46 }
 0x5bb   : > { %v2726_v13 = vpop.f32.mrf.mxu3 }
 0x5bc   : > { %v5638_v17 = vadd.f32 %v2726_v13, %v2714_v6  ;;  %v4566_v13 = vld [vmem:[#allocation18 + $0x20] sm:$0xff] }
 0x5bd   : > { %v2754_v26 = vpop.f32.mrf.mxu0  ;;  %3189 = vmatpush.bf16.msrb.mxu1 %v4566_v13 }
 0x5be   : > { %v4159_v30 = vmul.f32 -1.442695, %v5638_v17 }
 0x5bf   : > { %v2739_v32 = vpop.f32.mrf.mxu2 }
 0x5c0   : > { %4748 = vpow2.f32 %v4159_v30  ;;  %v2740_v22 = vadd.f32 %v2739_v32, %v2541_v14  ;;  %v4573_v14 = vld [vmem:[#allocation18 + $0x58] sm:$0xff]  ;;  %v2834_v32 = vperm.slane %v4161_v27, 0 }
 0x5c1   : > { %v2715_v37 = vpop.f32.mrf.mxu1  ;;  %3203 = vmatpush.bf16.msra.mxu3 %v4573_v14  ;;  %3190 = vmatpush.bf16.msrb.mxu1 %v4565_v15 }
 0x5c2   : > { %v2753_v3 = vadd.f32 %v2752_v54, %v2740_v22 }
 0x5c3   : > { %v2728_v40 = vpop.f32.mrf.mxu3 }
 0x5c4   : > { %v4160_v41 = vmul.f32 -1.442695, %v2753_v3 }
 0x5c5   : > { %3204 = vmatpush.bf16.msra.mxu3 %v4572_v16 }
 0x5c6   : > { %v4749_v45 = vpop.eup %4748  ;;  %4750 = vpow2.f32 %v4160_v41 }
 0x5c7   : > { %v2762_v48 = vadd.f32 1.0, %v4749_v45  ;;  %v2741_v24 = vpop.f32.mrf.mxu2  ;;  %v4723_v45 = vld [vmem:[#allocation19] ss:$0 sm:$0xff] }
 0x5c9   : > { %4752 = vrcp.f32 %v2762_v48  ;;  %v2775_v46 = vand.u32 2147483648, %v2762_v48  ;;  %v2773_v33 = vand.u32 2147483647, %v2762_v48  ;;  %vm2769_vm1 = vweird.f32 %v2762_v48  ;;  %3205 = vmatpush.bf16.msra.mxu3 %v4571_v18 }
 0x5cb   : > { %v2776_v58 = vor.u32 1.1754944e-38, %v2775_v46  ;;  %vm2774_vm2 = vcmp.eq.f32.partialorder %v2773_v33, 8.507059e+37 }
 0x5cc   : > { %v4751_v23 = vpop.eup %4750 }
 0x5cd   : > { %v2763_v52 = vadd.f32 1.0, %v4751_v23  ;;  %3206 = vmatpush.bf16.msra.mxu3 %v4570_v20 }
 0x5cf   : > { %v4753_v0 = vpop.eup %4752  ;;  %4754 = vrcp.f32 %v2763_v52  ;;  %v2790_v62 = vand.u32 2147483648, %v2763_v52  ;;  %v2788_v2 = vand.u32 2147483647, %v2763_v52  ;;  %vm2784_vm4 = vweird.f32 %v2763_v52 }
 0x5d0   : > { %v2765_v53 = vmul.f32 %v4753_v0, %v2762_v48  ;;  %vm2770_vm0 = vweird.f32 %v4753_v0 }
 0x5d1   : > { %vm2771_vm15 = vmor %vm2769_vm1, %vm2770_vm0  ;;  %v2791_v6 = vor.u32 1.1754944e-38, %v2790_v62  ;;  %vm2789_vm6 = vcmp.eq.f32.partialorder %v2788_v2, 8.507059e+37 }
 0x5d2   : > { %v2766_v54 = vsub.f32 1.0, %v2765_v53 }
 0x5d4   : > { %v2767_v55 = vmul.f32 %v4753_v0, %v2766_v54 }
 0x5d5   : > { %v4755_v56 = vpop.eup %4754 }
 0x5d6   : > { %v2768_v57 = vadd.f32 %v4753_v0, %v2767_v55  ;;  %v2780_v44 = vmul.f32 %v4755_v56, %v2763_v52  ;;  %vm2785_vm3 = vweird.f32 %v4755_v56 }
 0x5d7   : > { %vm2786_vm5 = vmor %vm2784_vm4, %vm2785_vm3 }
 0x5d8   : > { %v2772_v59 = vsel %vm2771_vm15, %v4753_v0, %v2768_v57  ;;  %v2781_v60 = vsub.f32 1.0, %v2780_v44 }
 0x5d9   : > { %v2777_v61 = vsel %vm2774_vm2, %v2776_v58, %v2772_v59 }
 0x5da   : > { %v2794_v63 = vmul.f32 %v2777_v61, %v5638_v17  ;;  %v2782_v1 = vmul.f32 %v4755_v56, %v2781_v60  ;;  %v4564_v17 = vld [vmem:[#allocation18 + $0x10] sm:$0xff] }
 0x5db   : > { %3191 = vmatpush.bf16.msrb.mxu1 %v4564_v17 }
 0x5dc   : > { %v2829_v4 = vpack.c.bf16 %v2794_v63, %v2794_v63  ;;  %v2783_v5 = vadd.f32 %v4755_v56, %v2782_v1 }
 0x5de   : > { %v2787_v7 = vsel %vm2786_vm5, %v4755_v56, %v2783_v5  ;;  %3006 = vmatmul.bf16.vlgmr.msra.gmra.mxu1 %v2829_v4  ;;  %3032 = vmatmul.bf16.vlgmr.msrb.gmra.mxu2 %v2829_v4 }
 0x5df   : > { %v2792_v8 = vsel %vm2789_vm6, %v2791_v6, %v2787_v7  ;;  %3192 = vmatpush.bf16.msrb.mxu1 %v4563_v19 }
 0x5e0   : > { %v2795_v10 = vmul.f32 %v2792_v8, %v2753_v3 }
 0x5e2   : > { %v2830_v11 = vpack.c.bf16 %v2795_v10, %v2795_v10 }
 0x5e3   : > { %3193 = vmatpush.bf16.msrb.mxu1 %v4562_v21 }
 0x5e4   : > { %3019 = vmatmul.bf16.vlgmr.msrb.gmra.mxu3 %v2830_v11  ;;  %3045 = vmatmul.bf16.vlgmr.msra.gmra.mxu0 %v2830_v11 }
 0x65b   : > { %v3007_v26 = vpop.f32.mrf.mxu1 }
 0x65c   : > { %v3008_v12 = vadd.f32 %v3007_v26, %v2834_v32 }
 0x661   : > { %v3033_v30 = vpop.f32.mrf.mxu2  ;;  %v3046_v31 = vpop.f32.mrf.mxu0 }
 0x662   : > { %v3034_v22 = vadd.f32 %v3033_v30, %v2835_v29 }
 0x663   : > { %v3009_v25 = vpop.f32.mrf.mxu1 }
 0x664   : > { %v3047_v35 = vadd.f32 %v3046_v31, %v3034_v22 }
 0x666   : > { %v3051_v37 = vadd.f32 %v3047_v35, %v5622_v34 }
 0x667   : > { %v3020_v38 = vpop.f32.mrf.mxu3 }
 0x668   : > { %v3085_v28 = vpack.c.bf16 %v3051_v37, %v3051_v37  ;;  %v3021_v3 = vadd.f32 %v3020_v38, %v3008_v12 }
 0x669   : > { %v3035_v39 = vpop.f32.mrf.mxu2  ;;  %v3048_v40 = vpop.f32.mrf.mxu0 }
 0x66a   : > { %v3050_v41 = vadd.f32 %v3021_v3, %v5627_v51  ;;  %3207 = vmatmul.bf16.vlgmr.msra.gmra.mxu3 %v3085_v28 }
 0x66c   : > { %v3084_v43 = vpack.c.bf16 %v3050_v41, %v3050_v41 }
 0x66e   : > { %3194 = vmatmul.bf16.vlgmr.msrb.gmra.mxu1 %v3084_v43 }
 0x66f   : > { %v3022_v42 = vpop.f32.mrf.mxu3 }
 0x6eb   : > { %v3195_v47 = vpop.f32.mrf.mxu1 }
 0x6ec   : > { %v3196_v9 = vadd.f32 %v4723_v45, %v3195_v47 }
 0x6ed   : > { %v3208_v48 = vpop.f32.mrf.mxu3 }
 0x6ee   : > { %v3209_v24 = vadd.f32 %v3208_v48, %v3196_v9 }
 0x6f0   : > { %v3212_v34 = vpack.c.bf16 %v3209_v24, %v3209_v24 }
 0x6f2   : > { %3213 = vst [vmem:[%s897_s6] sm:$0xf] %v3212_v34 }
 0x6f3   : > { %v3197_v49 = vpop.f32.mrf.mxu1 }
 0x6f5   : > { %v3210_v50 = vpop.f32.mrf.mxu3 }
 0x6f6 PF: > { %s39_s3 = sadd.s32 1, %s5150_s3  }
 0x6f7   : > { %p36_p7 = scmp.ge.s32.totalorder %s39_s3, 4  }
 0x6f9   :  { %38 = sbr.rel (!%p36_p7) target bundleno = 20 (0x14), region = 201 }
 0x6fe   :  { %3233 = vsyncpa [#allocation3], 1 }
 0x6ff   :  { %3235 = vsyncpa [#allocation3 + $0x1], 1 }
 0x700   :  { %3236 = vsyncpa [#allocation5], 1 }
 0x701   :  { %3237 = vsyncpa [#allocation8], 1 }
 0x702   :  { %3238 = vsyncpa [#allocation11], 1 }
 0x703   :  { %3239 = vsyncpa [#allocation14], 1 }
 0x704   :  { %3240 = vsyncpa [#allocation17], 1 }
 0x705   :  { %3241 = vsyncpa [#allocation20], 1 }

</bundles_post_ra>
